<compile_context>
chip_gen: v6e
topology: v6e:2x2x1
jax: 0.10.0
libtpu: 0.0.40
codegen_flags: <defaults>
</compile_context>

<pallas_src>
import functools

import numpy as np

import jax
import jax.numpy as jnp
from jax.experimental import pallas as pl
from jax.experimental.pallas import tpu as pltpu


def _vmem_limit_bytes():
    # Generation-aware scoped-VMEM cap: ~60% of physical VMEM (128 MiB on v5e/v6e,
    # 64 MiB on v7x) so tiles tuned on one generation don't OOM on another.
    try:
        get_info = getattr(pltpu, "get_tpu_info", None)
        if get_info is not None:
            cap = getattr(get_info(), "vmem_capacity_bytes", None)
            if cap:
                return int(cap) * 3 // 5
    except Exception:
        pass
    return 40 * 1024 * 1024


_VMEM_LIMIT = _vmem_limit_bytes()


def _pick_tile(n, candidates):
    for t in candidates:
        if n >= t and n % t == 0:
            return t
    return n


# ----------------------------- Pallas kernels ------------------------------

def _bilstm_proj_kernel(x_ref, wih_ref, whhf_ref, whhb_ref, bf_ref, bb_ref,
                        wpf_ref, wpb_ref, bp_ref, q_ref, z_sc):
    """Fused bidirectional LSTM (final hidden states) + lstm_proj for one row tile.

    x_ref   : (L, TN, E) time-major word embeddings for TN examples.
    wih_ref : (E, 8H) bf16 = [W_ih_fwd | W_ih_bwd], gate column order [i, f, o, g].
    whhf/whhb: (H, 4H) bf16 per-direction recurrent weights.
    bf/bb   : (1, 4H) f32 combined biases (b_ih + b_hh) per direction.
    wpf/wpb : (H, H) bf16 lstm_proj rows for h_fwd / h_bwd; bp: (1, H) f32.
    z_sc    : (L*TN, 8H) bf16 VMEM scratch for the hoisted input projection.
    """
    L, TN, E = x_ref.shape
    H = whhf_ref.shape[0]

    # Hoisted input projection for BOTH directions in one matmul, parked in bf16
    # scratch so the recurrent loop carries only (TN, H) state.
    x = x_ref[...].reshape(L * TN, E).astype(jnp.bfloat16)
    z_sc[...] = jnp.dot(x, wih_ref[...],
                        preferred_element_type=jnp.float32).astype(jnp.bfloat16)

    whh_f = whhf_ref[...]
    whh_b = whhb_ref[...]
    b_f = bf_ref[...]
    b_b = bb_ref[...]

    def gates(z):                                   # gate columns: [i, f, o, g]
        s = jax.nn.sigmoid(z[:, 0:3 * H])
        g = jnp.tanh(z[:, 3 * H:4 * H])
        return s[:, 0:H], s[:, H:2 * H], s[:, 2 * H:3 * H], g

    def step(t, carry):
        h_f, c_f, h_b, c_b = carry
        off_f = pl.multiple_of(t * TN, TN)                    # fwd reads x[t]
        off_b = pl.multiple_of((L - 1 - t) * TN, TN)          # bwd reads x[L-1-t]
        zf = (z_sc[pl.ds(off_f, TN), 0:4 * H].astype(jnp.float32) + b_f
              + jnp.dot(h_f.astype(jnp.bfloat16), whh_f,
                        preferred_element_type=jnp.float32))
        zb = (z_sc[pl.ds(off_b, TN), 4 * H:8 * H].astype(jnp.float32) + b_b
              + jnp.dot(h_b.astype(jnp.bfloat16), whh_b,
                        preferred_element_type=jnp.float32))
        i_f, f_f, o_f, g_f = gates(zf)
        c_f = f_f * c_f + i_f * g_f
        h_f = o_f * jnp.tanh(c_f)
        i_b, f_b, o_b, g_b = gates(zb)
        c_b = f_b * c_b + i_b * g_b
        h_b = o_b * jnp.tanh(c_b)
        return h_f, c_f, h_b, c_b

    zeros = jnp.zeros((TN, H), jnp.float32)
    h_f, _, h_b, _ = jax.lax.fori_loop(0, L, step, (zeros, zeros, zeros, zeros),
                                       unroll=True)

    # lstm_proj on [h_f | h_b], expressed as two dense matmuls (no concat relayout).
    q_ref[...] = (jnp.dot(h_f.astype(jnp.bfloat16), wpf_ref[...],
                          preferred_element_type=jnp.float32)
                  + jnp.dot(h_b.astype(jnp.bfloat16), wpb_ref[...],
                            preferred_element_type=jnp.float32)
                  + bp_ref[...])


def _head_kernel(img_ref, q_ref, expand_ref,
                 wv_ref, wq_ref, batt_ref, wl_ref,
                 wqn_ref, bqn_ref, wvn_ref, bvn_ref,
                 w1_ref, b1_ref,
                 joint_ref, h1_ref, *, num_objs):
    """Attention -> attended feature -> q/v nets -> joint -> classifier hidden h1.

    img_ref comes in as bf16 (halves DMA bytes); f32 is used only for softmax
    and accumulation.  expand_ref is a precomputed bf16 0/1 matrix that broadcasts
    hq over each example's `num_objs` rows with a single-pass bf16 MXU matmul.
    """
    O = num_objs
    TM, H = q_ref.shape

    img = img_ref[...]                                                   # (TM*O, H) bf16
    q = q_ref[...]                                                       # (TM, H)   f32

    hv = jnp.dot(img, wv_ref[...], preferred_element_type=jnp.float32)  # (TM*O, H)
    hq = jnp.dot(q.astype(jnp.bfloat16), wq_ref[...],
                 preferred_element_type=jnp.float32)                     # (TM, H)
    hq_exp = jnp.dot(expand_ref[...], hq.astype(jnp.bfloat16),
                     preferred_element_type=jnp.float32)                 # (TM*O, H)

    hid = jnp.maximum(hv + hq_exp + batt_ref[...], 0.0)                  # (TM*O, H)
    logit = jnp.sum(hid * wl_ref[...], axis=-1, keepdims=True)           # (TM*O, 1)

    # Per-example softmax over the O objects (f32).
    # TODO(synk): O assumed multiple of 8 so the (TM*O,.) <-> (TM,O,.) reshapes stay
    #             tile-aligned; a lane-major (TM, O) softmax would reduce vreg churn
    #             further but needs a lane<->sublane relayout of the weights.
    lg = logit.reshape(TM, O, 1)
    m = jnp.max(lg, axis=1, keepdims=True)
    e = jnp.exp(lg - m)
    att = e * pl.reciprocal(jnp.sum(e, axis=1, keepdims=True), approx=True)
    v_emb = jnp.sum(att * img.reshape(TM, O, H).astype(jnp.float32), axis=1)

    q_repr = jnp.maximum(
        jnp.dot(q.astype(jnp.bfloat16), wqn_ref[...],
                preferred_element_type=jnp.float32) + bqn_ref[...], 0.0)
    v_repr = jnp.maximum(
        jnp.dot(v_emb.astype(jnp.bfloat16), wvn_ref[...],
                preferred_element_type=jnp.float32) + bvn_ref[...], 0.0)
    joint = q_repr * v_repr
    joint_ref[...] = joint

    # Classifier first layer (Dropout(0.5) is identity at inference).
    h1 = jnp.maximum(
        jnp.dot(joint.astype(jnp.bfloat16), w1_ref[...],
                preferred_element_type=jnp.float32) + b1_ref[...], 0.0)
    h1_ref[...] = h1.astype(jnp.bfloat16)


def _logits_kernel(h1_ref, w2_ref, b2_ref, out_ref):
    """Classifier output layer: h1 (N, 2H) bf16 stays VMEM-resident (constant block
    index) while w2 is streamed over vocab tiles exactly once."""
    out_ref[...] = (jnp.dot(h1_ref[...], w2_ref[...],
                            preferred_element_type=jnp.float32) + b2_ref[...])


def _rel_kernel(joint_ref, ea_ref, eb_ref, seg_ref,
                w1a_ref, w1b_ref, b1_ref, w2_ref, b2_ref, w3_ref, b3_ref,
                w4_ref, b4_ref, wf1_ref, bf1_ref, wf2_ref, bf2_ref, out_ref):
    """Relational network over all role pairs of a batch tile.

    The (pair, 2H) concat tensor is never built: the first g-layer is computed per
    role and expanded to pair rows with the precomputed bf16 0/1 matrices ea/eb
    (ea selects joint[b, j], eb selects joint[b, i] for pair row (b, i, j)); the
    per-batch pair sum is the precomputed bf16 0/1 segment matmul `seg`.
    """
    jt = joint_ref[...].astype(jnp.bfloat16)
    pa = jnp.dot(jt, w1a_ref[...], preferred_element_type=jnp.float32)   # (TBR, H)
    pb = jnp.dot(jt, w1b_ref[...], preferred_element_type=jnp.float32)   # (TBR, H)

    h = jnp.maximum(
        jnp.dot(ea_ref[...], pa.astype(jnp.bfloat16),
                preferred_element_type=jnp.float32)
        + jnp.dot(eb_ref[...], pb.astype(jnp.bfloat16),
                  preferred_element_type=jnp.float32)
        + b1_ref[...], 0.0)                                              # (TP, H)
    h = jnp.maximum(jnp.dot(h.astype(jnp.bfloat16), w2_ref[...],
                            preferred_element_type=jnp.float32) + b2_ref[...], 0.0)
    h = jnp.maximum(jnp.dot(h.astype(jnp.bfloat16), w3_ref[...],
                            preferred_element_type=jnp.float32) + b3_ref[...], 0.0)
    h = jnp.maximum(jnp.dot(h.astype(jnp.bfloat16), w4_ref[...],
                            preferred_element_type=jnp.float32) + b4_ref[...], 0.0)

    gs = jnp.dot(seg_ref[...], h.astype(jnp.bfloat16),
                 preferred_element_type=jnp.float32)                     # (TB, H)

    f = jnp.maximum(jnp.dot(gs.astype(jnp.bfloat16), wf1_ref[...],
                            preferred_element_type=jnp.float32) + bf1_ref[...], 0.0)
    f = jnp.dot(f.astype(jnp.bfloat16), wf2_ref[...],
                preferred_element_type=jnp.float32) + bf2_ref[...]

    # l2norm; rsqrt + tiny eps (reference has no eps; eps only guards a zero vector).
    inv = jax.lax.rsqrt(jnp.sum(f * f, axis=-1, keepdims=True) + 1e-12)
    out_ref[...] = f * inv


# ----------------------------- wrappers (glue) ------------------------------

def bilstm_q_emb(w_emb, lstm):
    """w_emb: (N, L, E) role-question word embeddings -> q_emb (N, H)."""
    N, L, E = w_emb.shape
    H = lstm["wp_f"].shape[1]
    Np = ((N + 7) // 8) * 8
    x = jnp.transpose(w_emb, (1, 0, 2))                  # time-major (L, N, E)
    if Np != N:
        x = jnp.pad(x, ((0, 0), (0, Np - N), (0, 0)))
    TN = _pick_tile(Np, (128, 64, 32, 16, 8))            # examples per row tile
    # TODO(synk): for very long sequences shrink TN so the (L*TN, 8H) bf16 scratch
    #             stays comfortably inside the per-generation VMEM budget.
    q = pl.pallas_call(
        _bilstm_proj_kernel,
        grid=(Np // TN,),
        in_specs=[
            pl.BlockSpec((L, TN, E), lambda i: (0, i, 0)),
            pl.BlockSpec((E, 8 * H), lambda i: (0, 0)),
            pl.BlockSpec((H, 4 * H), lambda i: (0, 0)),
            pl.BlockSpec((H, 4 * H), lambda i: (0, 0)),
            pl.BlockSpec((1, 4 * H), lambda i: (0, 0)),
            pl.BlockSpec((1, 4 * H), lambda i: (0, 0)),
            pl.BlockSpec((H, H), lambda i: (0, 0)),
            pl.BlockSpec((H, H), lambda i: (0, 0)),
            pl.BlockSpec((1, H), lambda i: (0, 0)),
        ],
        out_specs=pl.BlockSpec((TN, H), lambda i: (i, 0)),
        out_shape=jax.ShapeDtypeStruct((Np, H), jnp.float32),
        scratch_shapes=[pltpu.VMEM((L * TN, 8 * H), jnp.bfloat16)],
        compiler_params=pltpu.CompilerParams(
            dimension_semantics=("parallel",),
            vmem_limit_bytes=_VMEM_LIMIT),
    )(x, lstm["wih"], lstm["whh_f"], lstm["whh_b"], lstm["b_f"], lstm["b_b"],
      lstm["wp_f"], lstm["wp_b"], lstm["bproj"])
    return q[:N]


def _expand_matrix(tm, o):
    """0/1 bf16 matrix mapping example rows -> their o object rows (row k <- k//o)."""
    ex = np.zeros((tm * o, tm), np.float32)
    k = np.arange(tm * o)
    ex[k, k // o] = 1.0
    return jnp.asarray(ex, dtype=jnp.bfloat16)


def _pick_row_tile(n, num_objs, h):
    budget = _VMEM_LIMIT // 4        # double-buffered bf16 img tile's share of VMEM
    for t in (256, 128, 64, 32, 16, 8):
        if n % t == 0 and n >= t and 2 * t * num_objs * h * 2 <= budget:
            return t
    return n


def head_forward(img_flat, q_emb, params, *, num_objs):
    """Split head: (a) attention/joint/h1 over row tiles, (b) logits over vocab tiles.

    img_flat: (N*O, H) f32 (cast to bf16 at the kernel boundary), q_emb: (N, H).
    """
    N, H = q_emb.shape
    O = num_objs
    att, qn, vn, clf = params["att"], params["q_net"], params["v_net"], params["clf"]
    V = clf["w2"].shape[1]

    TM = _pick_row_tile(N, O, H)
    expand = _expand_matrix(TM, O)

    joint, h1 = pl.pallas_call(
        functools.partial(_head_kernel, num_objs=O),
        grid=(N // TM,),
        in_specs=[
            pl.BlockSpec((TM * O, H), lambda i: (i, 0)),      # image regions (bf16)
            pl.BlockSpec((TM, H), lambda i: (i, 0)),          # q_emb
            pl.BlockSpec((TM * O, TM), lambda i: (0, 0)),     # bf16 0/1 expand
            pl.BlockSpec((H, H), lambda i: (0, 0)),           # att wv
            pl.BlockSpec((H, H), lambda i: (0, 0)),           # att wq
            pl.BlockSpec((1, H), lambda i: (0, 0)),           # att bias
            pl.BlockSpec((1, H), lambda i: (0, 0)),           # att logit weight
            pl.BlockSpec((H, H), lambda i: (0, 0)),           # q_net w
            pl.BlockSpec((1, H), lambda i: (0, 0)),           # q_net b
            pl.BlockSpec((H, H), lambda i: (0, 0)),           # v_net w
            pl.BlockSpec((1, H), lambda i: (0, 0)),           # v_net b
            pl.BlockSpec((H, 2 * H), lambda i: (0, 0)),       # clf w1
            pl.BlockSpec((1, 2 * H), lambda i: (0, 0)),       # clf b1
        ],
        out_specs=[
            pl.BlockSpec((TM, H), lambda i: (i, 0)),          # joint (for relational)
            pl.BlockSpec((TM, 2 * H), lambda i: (i, 0)),      # h1 (bf16)
        ],
        out_shape=[jax.ShapeDtypeStruct((N, H), jnp.float32),
                   jax.ShapeDtypeStruct((N, 2 * H), jnp.bfloat16)],
        compiler_params=pltpu.CompilerParams(
            dimension_semantics=("parallel",),
            vmem_limit_bytes=_VMEM_LIMIT),
    )(img_flat.astype(jnp.bfloat16), q_emb, expand,
      att["wv"], att["wq"], att["b"], att["wl"],
      qn["w"], qn["b"], vn["w"], vn["b"], clf["w1"], clf["b1"])

    TV = _pick_tile(V, (4096, 2048, 1024, 512, 256, 128))
    logits = pl.pallas_call(
        _logits_kernel,
        grid=(V // TV,),
        in_specs=[
            pl.BlockSpec((N, 2 * H), lambda j: (0, 0)),       # h1 resident, DMA'd once
            pl.BlockSpec((2 * H, TV), lambda j: (0, j)),      # w2 streamed once
            pl.BlockSpec((1, TV), lambda j: (0, j)),
        ],
        out_specs=pl.BlockSpec((N, TV), lambda j: (0, j)),
        out_shape=jax.ShapeDtypeStruct((N, V), jnp.float32),
        compiler_params=pltpu.CompilerParams(
            dimension_semantics=("parallel",),
            vmem_limit_bytes=_VMEM_LIMIT),
    )(h1, clf["w2"], clf["b2"])
    return logits, joint


def _pair_select_matrices(tb, r):
    """bf16 0/1 matrices: pair-row expansion (ea/eb) + per-batch segment sum (seg)."""
    tp, tbr = tb * r * r, tb * r
    k = np.arange(tp)
    b = k // (r * r)
    i = (k // r) % r
    j = k % r
    ea = np.zeros((tp, tbr), np.float32)
    eb = np.zeros((tp, tbr), np.float32)
    ea[k, b * r + j] = 1.0          # rolerep1[b, i, j] = joint[b, j]
    eb[k, b * r + i] = 1.0          # rolerep2[b, i, j] = joint[b, i]
    seg = np.zeros((tb, tp), np.float32)
    seg[b, k] = 1.0                 # sum over the r*r pairs of each batch element
    return (jnp.asarray(ea, jnp.bfloat16), jnp.asarray(eb, jnp.bfloat16),
            jnp.asarray(seg, jnp.bfloat16))


def relational(joint, gp, fp, *, batch, roles):
    B, R = batch, roles
    H = joint.shape[1]
    TB = B                           # fallback: whole batch in one tile
    for t in (16, 8):                # multiples of 8 keep (TB*R, H) blocks tile-legal
        if B % t == 0:
            TB = t
            break
    # TODO(synk): for large B not divisible by 8/16 the TB=B fallback builds
    #             O(B^2*R^3) selection constants; pad B to a multiple of 8 instead.
    ea, eb, seg = _pair_select_matrices(TB, R)

    fixed = (ea, eb, seg,
             gp["w1a"], gp["w1b"], gp["b1"], gp["w2"], gp["b2"],
             gp["w3"], gp["b3"], gp["w4"], gp["b4"],
             fp["w1"], fp["b1"], fp["w2"], fp["b2"])
    in_specs = ([pl.BlockSpec((TB * R, H), lambda b: (b, 0))]
                + [pl.BlockSpec(a.shape, lambda b: (0, 0)) for a in fixed])

    return pl.pallas_call(
        _rel_kernel,
        grid=(B // TB,),
        in_specs=in_specs,
        out_specs=pl.BlockSpec((TB, H), lambda b: (b, 0)),
        out_shape=jax.ShapeDtypeStruct((B, H), jnp.float32),
        compiler_params=pltpu.CompilerParams(
            dimension_semantics=("parallel",),
            vmem_limit_bytes=_VMEM_LIMIT),
    )(joint, *fixed)


# ----------------------------- parameters ------------------------------

def init_params(key, *, embed_hidden, mlp_hidden, vocab_size, q_vocab,
                num_verbs, max_roles, q_len):
    E, H = embed_hidden, mlp_hidden
    bf = jnp.bfloat16
    keys = iter(jax.random.split(key, 64))

    def w(shape, scale=None, dtype=jnp.float32):
        k = next(keys)
        if scale is None:
            scale = 1.0 / float(shape[0]) ** 0.5
        return (jax.random.normal(k, shape, jnp.float32) * scale).astype(dtype)

    # Bidirectional LSTM weights.  Gate column order inside each 4H block is
    # [i, f, o, g] (see TODO at top for converting real checkpoints); biases are
    # the combined b_ih + b_hh per direction.
    lstm = dict(
        wih=jnp.concatenate([w((E, 4 * H)), w((E, 4 * H))], axis=1).astype(bf),
        whh_f=w((H, 4 * H), dtype=bf),
        whh_b=w((H, 4 * H), dtype=bf),
        b_f=w((1, 4 * H)),
        b_b=w((1, 4 * H)),
        wp_f=w((H, H), dtype=bf),     # lstm_proj rows acting on h_fwd
        wp_b=w((H, H), dtype=bf),     # lstm_proj rows acting on h_bwd
        bproj=w((1, H)),
    )

    return dict(
        role_q_table=jax.random.randint(next(keys), (num_verbs, max_roles, q_len),
                                        0, q_vocab),
        qword_emb=w((q_vocab, E), 0.1),
        lstm=lstm,
        att=dict(wv=w((H, H), dtype=bf), wq=w((H, H), dtype=bf),
                 b=w((1, H)), wl=w((1, H))),
        q_net=dict(w=w((H, H), dtype=bf), b=w((1, H))),
        v_net=dict(w=w((H, H), dtype=bf), b=w((1, H))),
        clf=dict(w1=w((H, 2 * H), dtype=bf), b1=w((1, 2 * H)),
                 w2=w((2 * H, vocab_size), dtype=bf), b2=w((1, vocab_size))),
        # g first layer stored pre-split: w1a multiplies rolerep1, w1b rolerep2.
        g=dict(w1a=w((H, H), dtype=bf), w1b=w((H, H), dtype=bf), b1=w((1, H)),
               w2=w((H, H), dtype=bf), b2=w((1, H)),
               w3=w((H, H), dtype=bf), b3=w((1, H)),
               w4=w((H, H), dtype=bf), b4=w((1, H))),
        f=dict(w1=w((H, H), dtype=bf), b1=w((1, H)),
               w2=w((H, H), dtype=bf), b2=w((1, H))),
    )


# ----------------------------- forward ------------------------------

def forward(params, img, verb, *, mlp_hidden):
    H = mlp_hidden
    B = verb.shape[0]

    # encoder.get_role_questions_batch(verb) (synthetic table) + nn.Embedding
    # (both are gathers, done in XLA).
    role_qs = params["role_q_table"][verb]               # (B, R, L)
    R = role_qs.shape[1]
    role_qs = role_qs.reshape(B * R, role_qs.shape[-1])
    w_emb = params["qword_emb"][role_qs]                  # (B*R, L, E)

    # Fused bidirectional LSTM (final hidden states) + lstm_proj.
    q_emb = bilstm_q_emb(w_emb, params["lstm"])           # (B*R, H)

    # Attention -> attended feature -> q/v nets -> joint -> classifier.
    N, O, _ = img.shape
    logits, joint = head_forward(img.reshape(N * O, H), q_emb, params, num_objs=O)

    # Relational g/f network over role pairs + l2norm.
    recreated_img = relational(joint, params["g"], params["f"], batch=B, roles=R)
    return logits, recreated_img


# ----------------------------- demo ------------------------------

if __name__ == "__main__":
    # Small demo shapes (module defaults are embed_hidden=300, mlp_hidden=512).
    B, R, L = 2, 3, 4          # batch, max_role_count, question length
    E, H = 64, 128             # embed_hidden, mlp_hidden
    O = 8                      # number of image regions (multiple of 8)
    VOCAB = 256                # answer vocab size
    Q_VOCAB = 50               # question-word vocab size
    NUM_VERBS = 5

    key = jax.random.PRNGKey(0)
    pkey, ikey, vkey = jax.random.split(key, 3)
    params = init_params(pkey, embed_hidden=E, mlp_hidden=H, vocab_size=VOCAB,
                         q_vocab=Q_VOCAB, num_verbs=NUM_VERBS, max_roles=R, q_len=L)

    img = jax.random.normal(ikey, (B * R, O, H), jnp.float32)
    verb = jax.random.randint(vkey, (B,), 0, NUM_VERBS)

    fwd = jax.jit(functools.partial(forward, mlp_hidden=H))
    logits, recreated = fwd(params, img, verb)
    jax.block_until_ready((logits, recreated))

    assert logits.shape == (B * R, VOCAB)
    assert recreated.shape == (B, H)
    assert bool(jnp.all(jnp.isfinite(logits)))
    assert bool(jnp.all(jnp.isfinite(recreated)))
    print("KERNEL_OK")
</pallas_src>

<mosaic_0001>
module attributes {stable_mosaic.version = 11 : i64} {
  func.func @_logits_kernel(%arg0: i32, %arg1: memref<6x256xbf16, #tpu.memory_space<vmem>>, %arg2: memref<256x256xbf16, #tpu.memory_space<vmem>>, %arg3: memref<1x256xf32, #tpu.memory_space<vmem>>, %arg4: memref<6x256xf32, #tpu.memory_space<vmem>>) attributes {dimension_semantics = [#tpu.dimension_semantics<parallel>], iteration_bounds = array<i64: 1>, scalar_prefetch = 0 : i64, scratch_operands = 0 : i64, tpu.core_type = #tpu.core_type<tc>, window_params = [{pipeline_mode = #tpu.pipeline_mode<synchronous>, transform_indices = @transform_0, window_bounds = array<i64: 6, 256>}, {transform_indices = @transform_1, window_bounds = array<i64: 256, 256>}, {transform_indices = @transform_2, window_bounds = array<i64: 1, 256>}, {transform_indices = @transform_3, window_bounds = array<i64: 6, 256>}]} {
    %c0 = arith.constant 0 : index
    %c0_0 = arith.constant 0 : index
    %0 = vector.load %arg1[%c0, %c0_0] : memref<6x256xbf16, #tpu.memory_space<vmem>>, vector<6x256xbf16>
    %c0_1 = arith.constant 0 : index
    %c0_2 = arith.constant 0 : index
    %1 = vector.load %arg2[%c0_1, %c0_2] : memref<256x256xbf16, #tpu.memory_space<vmem>>, vector<256x256xbf16>
    %cst = arith.constant dense<0.000000e+00> : vector<6x256xf32>
    %2 = tpu.matmul %0, %1, %cst {dimension_numbers = #tpu.dot_dimension_numbers<[1], [0], [0], [1], [0, 0, 1, 1], [], []>} : vector<6x256xbf16>, vector<256x256xbf16>, vector<6x256xf32> -> vector<6x256xf32>
    %c0_3 = arith.constant 0 : index
    %c0_4 = arith.constant 0 : index
    %3 = vector.load %arg3[%c0_3, %c0_4] : memref<1x256xf32, #tpu.memory_space<vmem>>, vector<1x256xf32>
    %4 = vector.broadcast %3 : vector<1x256xf32> to vector<6x256xf32>
    %5 = arith.addf %2, %4 : vector<6x256xf32>
    %c0_5 = arith.constant 0 : index
    %c0_6 = arith.constant 0 : index
    %6 = vector.load %arg4[%c0_5, %c0_6] : memref<6x256xf32, #tpu.memory_space<vmem>>, vector<6x256xf32>
    tpu.vector_store %arg4[%c0_5, %c0_6], %5 {strides = array<i32>} : memref<6x256xf32, #tpu.memory_space<vmem>>, vector<6x256xf32>,
    return
  }
  func.func @transform_0(%arg0: i32) -> (i32, i32) {
    %c0_i32 = arith.constant 0 : i32
    %c0_i32_0 = arith.constant 0 : i32
    %c0_i32_1 = arith.constant 0 : i32
    return %c0_i32, %c0_i32_0 : i32, i32
  }
  func.func @transform_1(%arg0: i32) -> (i32, i32) {
    %c0_i32 = arith.constant 0 : i32
    %c0_i32_0 = arith.constant 0 : i32
    return %c0_i32, %arg0 : i32, i32
  }
  func.func @transform_2(%arg0: i32) -> (i32, i32) {
    %c0_i32 = arith.constant 0 : i32
    %c0_i32_0 = arith.constant 0 : i32
    return %c0_i32, %arg0 : i32, i32
  }
  func.func @transform_3(%arg0: i32) -> (i32, i32) {
    %c0_i32 = arith.constant 0 : i32
    %c0_i32_0 = arith.constant 0 : i32
    return %c0_i32, %arg0 : i32, i32
  }
}

module attributes {stable_mosaic.version = 11 : i64} {
  func.func @_head_kernel(%arg0: i32, %arg1: memref<48x128xbf16, #tpu.memory_space<vmem>>, %arg2: memref<6x128xf32, #tpu.memory_space<vmem>>, %arg3: memref<48x6xbf16, #tpu.memory_space<vmem>>, %arg4: memref<128x128xbf16, #tpu.memory_space<vmem>>, %arg5: memref<128x128xbf16, #tpu.memory_space<vmem>>, %arg6: memref<1x128xf32, #tpu.memory_space<vmem>>, %arg7: memref<1x128xf32, #tpu.memory_space<vmem>>, %arg8: memref<128x128xbf16, #tpu.memory_space<vmem>>, %arg9: memref<1x128xf32, #tpu.memory_space<vmem>>, %arg10: memref<128x128xbf16, #tpu.memory_space<vmem>>, %arg11: memref<1x128xf32, #tpu.memory_space<vmem>>, %arg12: memref<128x256xbf16, #tpu.memory_space<vmem>>, %arg13: memref<1x256xf32, #tpu.memory_space<vmem>>, %arg14: memref<6x128xf32, #tpu.memory_space<vmem>>, %arg15: memref<6x256xbf16, #tpu.memory_space<vmem>>) attributes {dimension_semantics = [#tpu.dimension_semantics<parallel>], iteration_bounds = array<i64: 1>, scalar_prefetch = 0 : i64, scratch_operands = 0 : i64, tpu.core_type = #tpu.core_type<tc>, window_params = [{transform_indices = @transform_0, window_bounds = array<i64: 48, 128>}, {transform_indices = @transform_1, window_bounds = array<i64: 6, 128>}, {pipeline_mode = #tpu.pipeline_mode<synchronous>, transform_indices = @transform_2, window_bounds = array<i64: 48, 6>}, {pipeline_mode = #tpu.pipeline_mode<synchronous>, transform_indices = @transform_3, window_bounds = array<i64: 128, 128>}, {pipeline_mode = #tpu.pipeline_mode<synchronous>, transform_indices = @transform_4, window_bounds = array<i64: 128, 128>}, {pipeline_mode = #tpu.pipeline_mode<synchronous>, transform_indices = @transform_5, window_bounds = array<i64: 1, 128>}, {pipeline_mode = #tpu.pipeline_mode<synchronous>, transform_indices = @transform_6, window_bounds = array<i64: 1, 128>}, {pipeline_mode = #tpu.pipeline_mode<synchronous>, transform_indices = @transform_7, window_bounds = array<i64: 128, 128>}, {pipeline_mode = #tpu.pipeline_mode<synchronous>, transform_indices = @transform_8, window_bounds = array<i64: 1, 128>}, {pipeline_mode = #tpu.pipeline_mode<synchronous>, transform_indices = @transform_9, window_bounds = array<i64: 128, 128>}, {pipeline_mode = #tpu.pipeline_mode<synchronous>, transform_indices = @transform_10, window_bounds = array<i64: 1, 128>}, {pipeline_mode = #tpu.pipeline_mode<synchronous>, transform_indices = @transform_11, window_bounds = array<i64: 128, 256>}, {pipeline_mode = #tpu.pipeline_mode<synchronous>, transform_indices = @transform_12, window_bounds = array<i64: 1, 256>}, {transform_indices = @transform_13, window_bounds = array<i64: 6, 128>}, {transform_indices = @transform_14, window_bounds = array<i64: 6, 256>}]} {
    %c0 = arith.constant 0 : index
    %c0_0 = arith.constant 0 : index
    %0 = vector.load %arg1[%c0, %c0_0] : memref<48x128xbf16, #tpu.memory_space<vmem>>, vector<48x128xbf16>
    %c0_1 = arith.constant 0 : index
    %c0_2 = arith.constant 0 : index
    %1 = vector.load %arg2[%c0_1, %c0_2] : memref<6x128xf32, #tpu.memory_space<vmem>>, vector<6x128xf32>
    %c0_3 = arith.constant 0 : index
    %c0_4 = arith.constant 0 : index
    %2 = vector.load %arg4[%c0_3, %c0_4] : memref<128x128xbf16, #tpu.memory_space<vmem>>, vector<128x128xbf16>
    %cst = arith.constant dense<0.000000e+00> : vector<48x128xf32>
    %3 = tpu.matmul %0, %2, %cst {dimension_numbers = #tpu.dot_dimension_numbers<[1], [0], [0], [1], [0, 0, 1, 1], [], []>} : vector<48x128xbf16>, vector<128x128xbf16>, vector<48x128xf32> -> vector<48x128xf32>
    %4 = arith.truncf %1 : vector<6x128xf32> to vector<6x128xbf16>
    %c0_5 = arith.constant 0 : index
    %c0_6 = arith.constant 0 : index
    %5 = vector.load %arg5[%c0_5, %c0_6] : memref<128x128xbf16, #tpu.memory_space<vmem>>, vector<128x128xbf16>
    %cst_7 = arith.constant dense<0.000000e+00> : vector<6x128xf32>
    %6 = tpu.matmul %4, %5, %cst_7 {dimension_numbers = #tpu.dot_dimension_numbers<[1], [0], [0], [1], [0, 0, 1, 1], [], []>} : vector<6x128xbf16>, vector<128x128xbf16>, vector<6x128xf32> -> vector<6x128xf32>
    %c0_8 = arith.constant 0 : index
    %c0_9 = arith.constant 0 : index
    %7 = vector.load %arg3[%c0_8, %c0_9] : memref<48x6xbf16, #tpu.memory_space<vmem>>, vector<48x6xbf16>
    %8 = arith.truncf %6 : vector<6x128xf32> to vector<6x128xbf16>
    %cst_10 = arith.constant dense<0.000000e+00> : vector<48x128xf32>
    %9 = tpu.matmul %7, %8, %cst_10 {dimension_numbers = #tpu.dot_dimension_numbers<[1], [0], [0], [1], [0, 0, 1, 1], [], []>} : vector<48x6xbf16>, vector<6x128xbf16>, vector<48x128xf32> -> vector<48x128xf32>
    %10 = arith.addf %3, %9 : vector<48x128xf32>
    %c0_11 = arith.constant 0 : index
    %c0_12 = arith.constant 0 : index
    %11 = vector.load %arg6[%c0_11, %c0_12] : memref<1x128xf32, #tpu.memory_space<vmem>>, vector<1x128xf32>
    %12 = vector.broadcast %11 : vector<1x128xf32> to vector<48x128xf32>
    %13 = arith.addf %10, %12 : vector<48x128xf32>
    %cst_13 = arith.constant 0.000000e+00 : f32
    %14 = vector.broadcast %cst_13 : f32 to vector<48x128xf32>
    %15 = arith.maximumf %13, %14 : vector<48x128xf32>
    %c0_14 = arith.constant 0 : index
    %c0_15 = arith.constant 0 : index
    %16 = vector.load %arg7[%c0_14, %c0_15] : memref<1x128xf32, #tpu.memory_space<vmem>>, vector<1x128xf32>
    %17 = vector.broadcast %16 : vector<1x128xf32> to vector<48x128xf32>
    %18 = arith.mulf %15, %17 : vector<48x128xf32>
    %cst_16 = arith.constant dense<0.000000e+00> : vector<48xf32>
    %19 = vector.multi_reduction <add>, %18, %cst_16 [1] : vector<48x128xf32> to vector<48xf32>
    %20 = vector.shape_cast %19 : vector<48xf32> to vector<48x1xf32>
    %21 = vector.shape_cast %20 : vector<48x1xf32> to vector<6x8x1xf32>
    %cst_17 = arith.constant dense<0xFF800000> : vector<6x1xf32>
    %22 = vector.multi_reduction <maximumf>, %21, %cst_17 [1] : vector<6x8x1xf32> to vector<6x1xf32>
    %23 = vector.shape_cast %22 : vector<6x1xf32> to vector<6x1x1xf32>
    %24 = vector.broadcast %23 : vector<6x1x1xf32> to vector<6x8x1xf32>
    %25 = arith.subf %21, %24 : vector<6x8x1xf32>
    %26 = math.exp %25 : vector<6x8x1xf32>
    %cst_18 = arith.constant dense<0.000000e+00> : vector<6x1xf32>
    %27 = vector.multi_reduction <add>, %26, %cst_18 [1] : vector<6x8x1xf32> to vector<6x1xf32>
    %28 = vector.shape_cast %27 : vector<6x1xf32> to vector<6x1x1xf32>
    %29 = tpu.reciprocal %28 {approx = true} : vector<6x1x1xf32> -> vector<6x1x1xf32>
    %30 = vector.broadcast %29 : vector<6x1x1xf32> to vector<6x8x1xf32>
    %31 = arith.mulf %26, %30 : vector<6x8x1xf32>
    %32 = vector.shape_cast %0 : vector<48x128xbf16> to vector<6x8x128xbf16>
    %33 = arith.extf %32 : vector<6x8x128xbf16> to vector<6x8x128xf32>
    %34 = vector.broadcast %31 : vector<6x8x1xf32> to vector<6x8x128xf32>
    %35 = arith.mulf %34, %33 : vector<6x8x128xf32>
    %cst_19 = arith.constant dense<0.000000e+00> : vector<6x128xf32>
    %36 = vector.multi_reduction <add>, %35, %cst_19 [1] : vector<6x8x128xf32> to vector<6x128xf32>
    %37 = arith.truncf %1 : vector<6x128xf32> to vector<6x128xbf16>
    %c0_20 = arith.constant 0 : index
    %c0_21 = arith.constant 0 : index
    %38 = vector.load %arg8[%c0_20, %c0_21] : memref<128x128xbf16, #tpu.memory_space<vmem>>, vector<128x128xbf16>
    %cst_22 = arith.constant dense<0.000000e+00> : vector<6x128xf32>
    %39 = tpu.matmul %37, %38, %cst_22 {dimension_numbers = #tpu.dot_dimension_numbers<[1], [0], [0], [1], [0, 0, 1, 1], [], []>} : vector<6x128xbf16>, vector<128x128xbf16>, vector<6x128xf32> -> vector<6x128xf32>
    %c0_23 = arith.constant 0 : index
    %c0_24 = arith.constant 0 : index
    %40 = vector.load %arg9[%c0_23, %c0_24] : memref<1x128xf32, #tpu.memory_space<vmem>>, vector<1x128xf32>
    %41 = vector.broadcast %40 : vector<1x128xf32> to vector<6x128xf32>
    %42 = arith.addf %39, %41 : vector<6x128xf32>
    %cst_25 = arith.constant 0.000000e+00 : f32
    %43 = vector.broadcast %cst_25 : f32 to vector<6x128xf32>
    %44 = arith.maximumf %42, %43 : vector<6x128xf32>
    %45 = arith.truncf %36 : vector<6x128xf32> to vector<6x128xbf16>
    %c0_26 = arith.constant 0 : index
    %c0_27 = arith.constant 0 : index
    %46 = vector.load %arg10[%c0_26, %c0_27] : memref<128x128xbf16, #tpu.memory_space<vmem>>, vector<128x128xbf16>
    %cst_28 = arith.constant dense<0.000000e+00> : vector<6x128xf32>
    %47 = tpu.matmul %45, %46, %cst_28 {dimension_numbers = #tpu.dot_dimension_numbers<[1], [0], [0], [1], [0, 0, 1, 1], [], []>} : vector<6x128xbf16>, vector<128x128xbf16>, vector<6x128xf32> -> vector<6x128xf32>
    %c0_29 = arith.constant 0 : index
    %c0_30 = arith.constant 0 : index
    %48 = vector.load %arg11[%c0_29, %c0_30] : memref<1x128xf32, #tpu.memory_space<vmem>>, vector<1x128xf32>
    %49 = vector.broadcast %48 : vector<1x128xf32> to vector<6x128xf32>
    %50 = arith.addf %47, %49 : vector<6x128xf32>
    %cst_31 = arith.constant 0.000000e+00 : f32
    %51 = vector.broadcast %cst_31 : f32 to vector<6x128xf32>
    %52 = arith.maximumf %50, %51 : vector<6x128xf32>
    %53 = arith.mulf %44, %52 : vector<6x128xf32>
    %c0_32 = arith.constant 0 : index
    %c0_33 = arith.constant 0 : index
    %54 = vector.load %arg14[%c0_32, %c0_33] : memref<6x128xf32, #tpu.memory_space<vmem>>, vector<6x128xf32>
    tpu.vector_store %arg14[%c0_32, %c0_33], %53 {strides = array<i32>} : memref<6x128xf32, #tpu.memory_space<vmem>>, vector<6x128xf32>,
    %55 = arith.truncf %53 : vector<6x128xf32> to vector<6x128xbf16>
    %c0_34 = arith.constant 0 : index
    %c0_35 = arith.constant 0 : index
    %56 = vector.load %arg12[%c0_34, %c0_35] : memref<128x256xbf16, #tpu.memory_space<vmem>>, vector<128x256xbf16>
    %cst_36 = arith.constant dense<0.000000e+00> : vector<6x256xf32>
    %57 = tpu.matmul %55, %56, %cst_36 {dimension_numbers = #tpu.dot_dimension_numbers<[1], [0], [0], [1], [0, 0, 1, 1], [], []>} : vector<6x128xbf16>, vector<128x256xbf16>, vector<6x256xf32> -> vector<6x256xf32>
    %c0_37 = arith.constant 0 : index
    %c0_38 = arith.constant 0 : index
    %58 = vector.load %arg13[%c0_37, %c0_38] : memref<1x256xf32, #tpu.memory_space<vmem>>, vector<1x256xf32>
    %59 = vector.broadcast %58 : vector<1x256xf32> to vector<6x256xf32>
    %60 = arith.addf %57, %59 : vector<6x256xf32>
    %cst_39 = arith.constant 0.000000e+00 : f32
    %61 = vector.broadcast %cst_39 : f32 to vector<6x256xf32>
    %62 = arith.maximumf %60, %61 : vector<6x256xf32>
    %63 = arith.truncf %62 : vector<6x256xf32> to vector<6x256xbf16>
    %c0_40 = arith.constant 0 : index
    %c0_41 = arith.constant 0 : index
    %64 = vector.load %arg15[%c0_40, %c0_41] : memref<6x256xbf16, #tpu.memory_space<vmem>>, vector<6x256xbf16>
    tpu.vector_store %arg15[%c0_40, %c0_41], %63 {strides = array<i32>} : memref<6x256xbf16, #tpu.memory_space<vmem>>, vector<6x256xbf16>,
    return
  }
  func.func @transform_0(%arg0: i32) -> (i32, i32) {
    %c0_i32 = arith.constant 0 : i32
    %c0_i32_0 = arith.constant 0 : i32
    return %arg0, %c0_i32 : i32, i32
  }
  func.func @transform_1(%arg0: i32) -> (i32, i32) {
    %c0_i32 = arith.constant 0 : i32
    %c0_i32_0 = arith.constant 0 : i32
    return %arg0, %c0_i32 : i32, i32
  }
  func.func @transform_2(%arg0: i32) -> (i32, i32) {
    %c0_i32 = arith.constant 0 : i32
    %c0_i32_0 = arith.constant 0 : i32
    %c0_i32_1 = arith.constant 0 : i32
    return %c0_i32, %c0_i32_0 : i32, i32
  }
  func.func @transform_3(%arg0: i32) -> (i32, i32) {
    %c0_i32 = arith.constant 0 : i32
    %c0_i32_0 = arith.constant 0 : i32
    %c0_i32_1 = arith.constant 0 : i32
    return %c0_i32, %c0_i32_0 : i32, i32
  }
  func.func @transform_4(%arg0: i32) -> (i32, i32) {
    %c0_i32 = arith.constant 0 : i32
    %c0_i32_0 = arith.constant 0 : i32
    %c0_i32_1 = arith.constant 0 : i32
    return %c0_i32, %c0_i32_0 : i32, i32
  }
  func.func @transform_5(%arg0: i32) -> (i32, i32) {
    %c0_i32 = arith.constant 0 : i32
    %c0_i32_0 = arith.constant 0 : i32
    %c0_i32_1 = arith.constant 0 : i32
    return %c0_i32, %c0_i32_0 : i32, i32
  }
  func.func @transform_6(%arg0: i32) -> (i32, i32) {
    %c0_i32 = arith.constant 0 : i32
    %c0_i32_0 = arith.constant 0 : i32
    %c0_i32_1 = arith.constant 0 : i32
    return %c0_i32, %c0_i32_0 : i32, i32
  }
  func.func @transform_7(%arg0: i32) -> (i32, i32) {
    %c0_i32 = arith.constant 0 : i32
    %c0_i32_0 = arith.constant 0 : i32
    %c0_i32_1 = arith.constant 0 : i32
    return %c0_i32, %c0_i32_0 : i32, i32
  }
  func.func @transform_8(%arg0: i32) -> (i32, i32) {
    %c0_i32 = arith.constant 0 : i32
    %c0_i32_0 = arith.constant 0 : i32
    %c0_i32_1 = arith.constant 0 : i32
    return %c0_i32, %c0_i32_0 : i32, i32
  }
  func.func @transform_9(%arg0: i32) -> (i32, i32) {
    %c0_i32 = arith.constant 0 : i32
    %c0_i32_0 = arith.constant 0 : i32
    %c0_i32_1 = arith.constant 0 : i32
    return %c0_i32, %c0_i32_0 : i32, i32
  }
  func.func @transform_10(%arg0: i32) -> (i32, i32) {
    %c0_i32 = arith.constant 0 : i32
    %c0_i32_0 = arith.constant 0 : i32
    %c0_i32_1 = arith.constant 0 : i32
    return %c0_i32, %c0_i32_0 : i32, i32
  }
  func.func @transform_11(%arg0: i32) -> (i32, i32) {
    %c0_i32 = arith.constant 0 : i32
    %c0_i32_0 = arith.constant 0 : i32
    %c0_i32_1 = arith.constant 0 : i32
    return %c0_i32, %c0_i32_0 : i32, i32
  }
  func.func @transform_12(%arg0: i32) -> (i32, i32) {
    %c0_i32 = arith.constant 0 : i32
    %c0_i32_0 = arith.constant 0 : i32
    %c0_i32_1 = arith.constant 0 : i32
    return %c0_i32, %c0_i32_0 : i32, i32
  }
  func.func @transform_13(%arg0: i32) -> (i32, i32) {
    %c0_i32 = arith.constant 0 : i32
    %c0_i32_0 = arith.constant 0 : i32
    return %arg0, %c0_i32 : i32, i32
  }
  func.func @transform_14(%arg0: i32) -> (i32, i32) {
    %c0_i32 = arith.constant 0 : i32
    %c0_i32_0 = arith.constant 0 : i32
    return %arg0, %c0_i32 : i32, i32
  }
}

module attributes {stable_mosaic.version = 11 : i64} {
  func.func @_rel_kernel(%arg0: i32, %arg1: memref<6x128xf32, #tpu.memory_space<vmem>>, %arg2: memref<18x6xbf16, #tpu.memory_space<vmem>>, %arg3: memref<18x6xbf16, #tpu.memory_space<vmem>>, %arg4: memref<2x18xbf16, #tpu.memory_space<vmem>>, %arg5: memref<128x128xbf16, #tpu.memory_space<vmem>>, %arg6: memref<128x128xbf16, #tpu.memory_space<vmem>>, %arg7: memref<1x128xf32, #tpu.memory_space<vmem>>, %arg8: memref<128x128xbf16, #tpu.memory_space<vmem>>, %arg9: memref<1x128xf32, #tpu.memory_space<vmem>>, %arg10: memref<128x128xbf16, #tpu.memory_space<vmem>>, %arg11: memref<1x128xf32, #tpu.memory_space<vmem>>, %arg12: memref<128x128xbf16, #tpu.memory_space<vmem>>, %arg13: memref<1x128xf32, #tpu.memory_space<vmem>>, %arg14: memref<128x128xbf16, #tpu.memory_space<vmem>>, %arg15: memref<1x128xf32, #tpu.memory_space<vmem>>, %arg16: memref<128x128xbf16, #tpu.memory_space<vmem>>, %arg17: memref<1x128xf32, #tpu.memory_space<vmem>>, %arg18: memref<2x128xf32, #tpu.memory_space<vmem>>) attributes {dimension_semantics = [#tpu.dimension_semantics<parallel>], iteration_bounds = array<i64: 1>, scalar_prefetch = 0 : i64, scratch_operands = 0 : i64, tpu.core_type = #tpu.core_type<tc>, window_params = [{transform_indices = @transform_0, window_bounds = array<i64: 6, 128>}, {pipeline_mode = #tpu.pipeline_mode<synchronous>, transform_indices = @transform_1, window_bounds = array<i64: 18, 6>}, {pipeline_mode = #tpu.pipeline_mode<synchronous>, transform_indices = @transform_2, window_bounds = array<i64: 18, 6>}, {pipeline_mode = #tpu.pipeline_mode<synchronous>, transform_indices = @transform_3, window_bounds = array<i64: 2, 18>}, {pipeline_mode = #tpu.pipeline_mode<synchronous>, transform_indices = @transform_4, window_bounds = array<i64: 128, 128>}, {pipeline_mode = #tpu.pipeline_mode<synchronous>, transform_indices = @transform_5, window_bounds = array<i64: 128, 128>}, {pipeline_mode = #tpu.pipeline_mode<synchronous>, transform_indices = @transform_6, window_bounds = array<i64: 1, 128>}, {pipeline_mode = #tpu.pipeline_mode<synchronous>, transform_indices = @transform_7, window_bounds = array<i64: 128, 128>}, {pipeline_mode = #tpu.pipeline_mode<synchronous>, transform_indices = @transform_8, window_bounds = array<i64: 1, 128>}, {pipeline_mode = #tpu.pipeline_mode<synchronous>, transform_indices = @transform_9, window_bounds = array<i64: 128, 128>}, {pipeline_mode = #tpu.pipeline_mode<synchronous>, transform_indices = @transform_10, window_bounds = array<i64: 1, 128>}, {pipeline_mode = #tpu.pipeline_mode<synchronous>, transform_indices = @transform_11, window_bounds = array<i64: 128, 128>}, {pipeline_mode = #tpu.pipeline_mode<synchronous>, transform_indices = @transform_12, window_bounds = array<i64: 1, 128>}, {pipeline_mode = #tpu.pipeline_mode<synchronous>, transform_indices = @transform_13, window_bounds = array<i64: 128, 128>}, {pipeline_mode = #tpu.pipeline_mode<synchronous>, transform_indices = @transform_14, window_bounds = array<i64: 1, 128>}, {pipeline_mode = #tpu.pipeline_mode<synchronous>, transform_indices = @transform_15, window_bounds = array<i64: 128, 128>}, {pipeline_mode = #tpu.pipeline_mode<synchronous>, transform_indices = @transform_16, window_bounds = array<i64: 1, 128>}, {transform_indices = @transform_17, window_bounds = array<i64: 2, 128>}]} {
    %c0 = arith.constant 0 : index
    %c0_0 = arith.constant 0 : index
    %0 = vector.load %arg1[%c0, %c0_0] : memref<6x128xf32, #tpu.memory_space<vmem>>, vector<6x128xf32>
    %1 = arith.truncf %0 : vector<6x128xf32> to vector<6x128xbf16>
    %c0_1 = arith.constant 0 : index
    %c0_2 = arith.constant 0 : index
    %2 = vector.load %arg5[%c0_1, %c0_2] : memref<128x128xbf16, #tpu.memory_space<vmem>>, vector<128x128xbf16>
    %cst = arith.constant dense<0.000000e+00> : vector<6x128xf32>
    %3 = tpu.matmul %1, %2, %cst {dimension_numbers = #tpu.dot_dimension_numbers<[1], [0], [0], [1], [0, 0, 1, 1], [], []>} : vector<6x128xbf16>, vector<128x128xbf16>, vector<6x128xf32> -> vector<6x128xf32>
    %c0_3 = arith.constant 0 : index
    %c0_4 = arith.constant 0 : index
    %4 = vector.load %arg6[%c0_3, %c0_4] : memref<128x128xbf16, #tpu.memory_space<vmem>>, vector<128x128xbf16>
    %cst_5 = arith.constant dense<0.000000e+00> : vector<6x128xf32>
    %5 = tpu.matmul %1, %4, %cst_5 {dimension_numbers = #tpu.dot_dimension_numbers<[1], [0], [0], [1], [0, 0, 1, 1], [], []>} : vector<6x128xbf16>, vector<128x128xbf16>, vector<6x128xf32> -> vector<6x128xf32>
    %c0_6 = arith.constant 0 : index
    %c0_7 = arith.constant 0 : index
    %6 = vector.load %arg2[%c0_6, %c0_7] : memref<18x6xbf16, #tpu.memory_space<vmem>>, vector<18x6xbf16>
    %7 = arith.truncf %3 : vector<6x128xf32> to vector<6x128xbf16>
    %cst_8 = arith.constant dense<0.000000e+00> : vector<18x128xf32>
    %8 = tpu.matmul %6, %7, %cst_8 {dimension_numbers = #tpu.dot_dimension_numbers<[1], [0], [0], [1], [0, 0, 1, 1], [], []>} : vector<18x6xbf16>, vector<6x128xbf16>, vector<18x128xf32> -> vector<18x128xf32>
    %c0_9 = arith.constant 0 : index
    %c0_10 = arith.constant 0 : index
    %9 = vector.load %arg3[%c0_9, %c0_10] : memref<18x6xbf16, #tpu.memory_space<vmem>>, vector<18x6xbf16>
    %10 = arith.truncf %5 : vector<6x128xf32> to vector<6x128xbf16>
    %cst_11 = arith.constant dense<0.000000e+00> : vector<18x128xf32>
    %11 = tpu.matmul %9, %10, %cst_11 {dimension_numbers = #tpu.dot_dimension_numbers<[1], [0], [0], [1], [0, 0, 1, 1], [], []>} : vector<18x6xbf16>, vector<6x128xbf16>, vector<18x128xf32> -> vector<18x128xf32>
    %12 = arith.addf %8, %11 : vector<18x128xf32>
    %c0_12 = arith.constant 0 : index
    %c0_13 = arith.constant 0 : index
    %13 = vector.load %arg7[%c0_12, %c0_13] : memref<1x128xf32, #tpu.memory_space<vmem>>, vector<1x128xf32>
    %14 = vector.broadcast %13 : vector<1x128xf32> to vector<18x128xf32>
    %15 = arith.addf %12, %14 : vector<18x128xf32>
    %cst_14 = arith.constant 0.000000e+00 : f32
    %16 = vector.broadcast %cst_14 : f32 to vector<18x128xf32>
    %17 = arith.maximumf %15, %16 : vector<18x128xf32>
    %18 = arith.truncf %17 : vector<18x128xf32> to vector<18x128xbf16>
    %c0_15 = arith.constant 0 : index
    %c0_16 = arith.constant 0 : index
    %19 = vector.load %arg8[%c0_15, %c0_16] : memref<128x128xbf16, #tpu.memory_space<vmem>>, vector<128x128xbf16>
    %cst_17 = arith.constant dense<0.000000e+00> : vector<18x128xf32>
    %20 = tpu.matmul %18, %19, %cst_17 {dimension_numbers = #tpu.dot_dimension_numbers<[1], [0], [0], [1], [0, 0, 1, 1], [], []>} : vector<18x128xbf16>, vector<128x128xbf16>, vector<18x128xf32> -> vector<18x128xf32>
    %c0_18 = arith.constant 0 : index
    %c0_19 = arith.constant 0 : index
    %21 = vector.load %arg9[%c0_18, %c0_19] : memref<1x128xf32, #tpu.memory_space<vmem>>, vector<1x128xf32>
    %22 = vector.broadcast %21 : vector<1x128xf32> to vector<18x128xf32>
    %23 = arith.addf %20, %22 : vector<18x128xf32>
    %cst_20 = arith.constant 0.000000e+00 : f32
    %24 = vector.broadcast %cst_20 : f32 to vector<18x128xf32>
    %25 = arith.maximumf %23, %24 : vector<18x128xf32>
    %26 = arith.truncf %25 : vector<18x128xf32> to vector<18x128xbf16>
    %c0_21 = arith.constant 0 : index
    %c0_22 = arith.constant 0 : index
    %27 = vector.load %arg10[%c0_21, %c0_22] : memref<128x128xbf16, #tpu.memory_space<vmem>>, vector<128x128xbf16>
    %cst_23 = arith.constant dense<0.000000e+00> : vector<18x128xf32>
    %28 = tpu.matmul %26, %27, %cst_23 {dimension_numbers = #tpu.dot_dimension_numbers<[1], [0], [0], [1], [0, 0, 1, 1], [], []>} : vector<18x128xbf16>, vector<128x128xbf16>, vector<18x128xf32> -> vector<18x128xf32>
    %c0_24 = arith.constant 0 : index
    %c0_25 = arith.constant 0 : index
    %29 = vector.load %arg11[%c0_24, %c0_25] : memref<1x128xf32, #tpu.memory_space<vmem>>, vector<1x128xf32>
    %30 = vector.broadcast %29 : vector<1x128xf32> to vector<18x128xf32>
    %31 = arith.addf %28, %30 : vector<18x128xf32>
    %cst_26 = arith.constant 0.000000e+00 : f32
    %32 = vector.broadcast %cst_26 : f32 to vector<18x128xf32>
    %33 = arith.maximumf %31, %32 : vector<18x128xf32>
    %34 = arith.truncf %33 : vector<18x128xf32> to vector<18x128xbf16>
    %c0_27 = arith.constant 0 : index
    %c0_28 = arith.constant 0 : index
    %35 = vector.load %arg12[%c0_27, %c0_28] : memref<128x128xbf16, #tpu.memory_space<vmem>>, vector<128x128xbf16>
    %cst_29 = arith.constant dense<0.000000e+00> : vector<18x128xf32>
    %36 = tpu.matmul %34, %35, %cst_29 {dimension_numbers = #tpu.dot_dimension_numbers<[1], [0], [0], [1], [0, 0, 1, 1], [], []>} : vector<18x128xbf16>, vector<128x128xbf16>, vector<18x128xf32> -> vector<18x128xf32>
    %c0_30 = arith.constant 0 : index
    %c0_31 = arith.constant 0 : index
    %37 = vector.load %arg13[%c0_30, %c0_31] : memref<1x128xf32, #tpu.memory_space<vmem>>, vector<1x128xf32>
    %38 = vector.broadcast %37 : vector<1x128xf32> to vector<18x128xf32>
    %39 = arith.addf %36, %38 : vector<18x128xf32>
    %cst_32 = arith.constant 0.000000e+00 : f32
    %40 = vector.broadcast %cst_32 : f32 to vector<18x128xf32>
    %41 = arith.maximumf %39, %40 : vector<18x128xf32>
    %c0_33 = arith.constant 0 : index
    %c0_34 = arith.constant 0 : index
    %42 = vector.load %arg4[%c0_33, %c0_34] : memref<2x18xbf16, #tpu.memory_space<vmem>>, vector<2x18xbf16>
    %43 = arith.truncf %41 : vector<18x128xf32> to vector<18x128xbf16>
    %cst_35 = arith.constant dense<0.000000e+00> : vector<2x128xf32>
    %44 = tpu.matmul %42, %43, %cst_35 {dimension_numbers = #tpu.dot_dimension_numbers<[1], [0], [0], [1], [0, 0, 1, 1], [], []>} : vector<2x18xbf16>, vector<18x128xbf16>, vector<2x128xf32> -> vector<2x128xf32>
    %45 = arith.truncf %44 : vector<2x128xf32> to vector<2x128xbf16>
    %c0_36 = arith.constant 0 : index
    %c0_37 = arith.constant 0 : index
    %46 = vector.load %arg14[%c0_36, %c0_37] : memref<128x128xbf16, #tpu.memory_space<vmem>>, vector<128x128xbf16>
    %cst_38 = arith.constant dense<0.000000e+00> : vector<2x128xf32>
    %47 = tpu.matmul %45, %46, %cst_38 {dimension_numbers = #tpu.dot_dimension_numbers<[1], [0], [0], [1], [0, 0, 1, 1], [], []>} : vector<2x128xbf16>, vector<128x128xbf16>, vector<2x128xf32> -> vector<2x128xf32>
    %c0_39 = arith.constant 0 : index
    %c0_40 = arith.constant 0 : index
    %48 = vector.load %arg15[%c0_39, %c0_40] : memref<1x128xf32, #tpu.memory_space<vmem>>, vector<1x128xf32>
    %49 = vector.broadcast %48 : vector<1x128xf32> to vector<2x128xf32>
    %50 = arith.addf %47, %49 : vector<2x128xf32>
    %cst_41 = arith.constant 0.000000e+00 : f32
    %51 = vector.broadcast %cst_41 : f32 to vector<2x128xf32>
    %52 = arith.maximumf %50, %51 : vector<2x128xf32>
    %53 = arith.truncf %52 : vector<2x128xf32> to vector<2x128xbf16>
    %c0_42 = arith.constant 0 : index
    %c0_43 = arith.constant 0 : index
    %54 = vector.load %arg16[%c0_42, %c0_43] : memref<128x128xbf16, #tpu.memory_space<vmem>>, vector<128x128xbf16>
    %cst_44 = arith.constant dense<0.000000e+00> : vector<2x128xf32>
    %55 = tpu.matmul %53, %54, %cst_44 {dimension_numbers = #tpu.dot_dimension_numbers<[1], [0], [0], [1], [0, 0, 1, 1], [], []>} : vector<2x128xbf16>, vector<128x128xbf16>, vector<2x128xf32> -> vector<2x128xf32>
    %c0_45 = arith.constant 0 : index
    %c0_46 = arith.constant 0 : index
    %56 = vector.load %arg17[%c0_45, %c0_46] : memref<1x128xf32, #tpu.memory_space<vmem>>, vector<1x128xf32>
    %57 = vector.broadcast %56 : vector<1x128xf32> to vector<2x128xf32>
    %58 = arith.addf %55, %57 : vector<2x128xf32>
    %59 = arith.mulf %58, %58 : vector<2x128xf32>
    %cst_47 = arith.constant dense<0.000000e+00> : vector<2xf32>
    %60 = vector.multi_reduction <add>, %59, %cst_47 [1] : vector<2x128xf32> to vector<2xf32>
    %61 = vector.shape_cast %60 : vector<2xf32> to vector<2x1xf32>
    %cst_48 = arith.constant 9.99999996E-13 : f32
    %62 = vector.broadcast %cst_48 : f32 to vector<2x1xf32>
    %63 = arith.addf %61, %62 : vector<2x1xf32>
    %64 = math.rsqrt %63 : vector<2x1xf32>
    %65 = vector.broadcast %64 : vector<2x1xf32> to vector<2x128xf32>
    %66 = arith.mulf %58, %65 : vector<2x128xf32>
    %c0_49 = arith.constant 0 : index
    %c0_50 = arith.constant 0 : index
    %67 = vector.load %arg18[%c0_49, %c0_50] : memref<2x128xf32, #tpu.memory_space<vmem>>, vector<2x128xf32>
    tpu.vector_store %arg18[%c0_49, %c0_50], %66 {strides = array<i32>} : memref<2x128xf32, #tpu.memory_space<vmem>>, vector<2x128xf32>,
    return
  }
  func.func @transform_0(%arg0: i32) -> (i32, i32) {
    %c0_i32 = arith.constant 0 : i32
    %c0_i32_0 = arith.constant 0 : i32
    return %arg0, %c0_i32 : i32, i32
  }
  func.func @transform_1(%arg0: i32) -> (i32, i32) {
    %c0_i32 = arith.constant 0 : i32
    %c0_i32_0 = arith.constant 0 : i32
    %c0_i32_1 = arith.constant 0 : i32
    return %c0_i32, %c0_i32_0 : i32, i32
  }
  func.func @transform_2(%arg0: i32) -> (i32, i32) {
    %c0_i32 = arith.constant 0 : i32
    %c0_i32_0 = arith.constant 0 : i32
    %c0_i32_1 = arith.constant 0 : i32
    return %c0_i32, %c0_i32_0 : i32, i32
  }
  func.func @transform_3(%arg0: i32) -> (i32, i32) {
    %c0_i32 = arith.constant 0 : i32
    %c0_i32_0 = arith.constant 0 : i32
    %c0_i32_1 = arith.constant 0 : i32
    return %c0_i32, %c0_i32_0 : i32, i32
  }
  func.func @transform_4(%arg0: i32) -> (i32, i32) {
    %c0_i32 = arith.constant 0 : i32
    %c0_i32_0 = arith.constant 0 : i32
    %c0_i32_1 = arith.constant 0 : i32
    return %c0_i32, %c0_i32_0 : i32, i32
  }
  func.func @transform_5(%arg0: i32) -> (i32, i32) {
    %c0_i32 = arith.constant 0 : i32
    %c0_i32_0 = arith.constant 0 : i32
    %c0_i32_1 = arith.constant 0 : i32
    return %c0_i32, %c0_i32_0 : i32, i32
  }
  func.func @transform_6(%arg0: i32) -> (i32, i32) {
    %c0_i32 = arith.constant 0 : i32
    %c0_i32_0 = arith.constant 0 : i32
    %c0_i32_1 = arith.constant 0 : i32
    return %c0_i32, %c0_i32_0 : i32, i32
  }
  func.func @transform_7(%arg0: i32) -> (i32, i32) {
    %c0_i32 = arith.constant 0 : i32
    %c0_i32_0 = arith.constant 0 : i32
    %c0_i32_1 = arith.constant 0 : i32
    return %c0_i32, %c0_i32_0 : i32, i32
  }
  func.func @transform_8(%arg0: i32) -> (i32, i32) {
    %c0_i32 = arith.constant 0 : i32
    %c0_i32_0 = arith.constant 0 : i32
    %c0_i32_1 = arith.constant 0 : i32
    return %c0_i32, %c0_i32_0 : i32, i32
  }
  func.func @transform_9(%arg0: i32) -> (i32, i32) {
    %c0_i32 = arith.constant 0 : i32
    %c0_i32_0 = arith.constant 0 : i32
    %c0_i32_1 = arith.constant 0 : i32
    return %c0_i32, %c0_i32_0 : i32, i32
  }
  func.func @transform_10(%arg0: i32) -> (i32, i32) {
    %c0_i32 = arith.constant 0 : i32
    %c0_i32_0 = arith.constant 0 : i32
    %c0_i32_1 = arith.constant 0 : i32
    return %c0_i32, %c0_i32_0 : i32, i32
  }
  func.func @transform_11(%arg0: i32) -> (i32, i32) {
    %c0_i32 = arith.constant 0 : i32
    %c0_i32_0 = arith.constant 0 : i32
    %c0_i32_1 = arith.constant 0 : i32
    return %c0_i32, %c0_i32_0 : i32, i32
  }
  func.func @transform_12(%arg0: i32) -> (i32, i32) {
    %c0_i32 = arith.constant 0 : i32
    %c0_i32_0 = arith.constant 0 : i32
    %c0_i32_1 = arith.constant 0 : i32
    return %c0_i32, %c0_i32_0 : i32, i32
  }
  func.func @transform_13(%arg0: i32) -> (i32, i32) {
    %c0_i32 = arith.constant 0 : i32
    %c0_i32_0 = arith.constant 0 : i32
    %c0_i32_1 = arith.constant 0 : i32
    return %c0_i32, %c0_i32_0 : i32, i32
  }
  func.func @transform_14(%arg0: i32) -> (i32, i32) {
    %c0_i32 = arith.constant 0 : i32
    %c0_i32_0 = arith.constant 0 : i32
    %c0_i32_1 = arith.constant 0 : i32
    return %c0_i32, %c0_i32_0 : i32, i32
  }
  func.func @transform_15(%arg0: i32) -> (i32, i32) {
    %c0_i32 = arith.constant 0 : i32
    %c0_i32_0 = arith.constant 0 : i32
    %c0_i32_1 = arith.constant 0 : i32
    return %c0_i32, %c0_i32_0 : i32, i32
  }
  func.func @transform_16(%arg0: i32) -> (i32, i32) {
    %c0_i32 = arith.constant 0 : i32
    %c0_i32_0 = arith.constant 0 : i32
    %c0_i32_1 = arith.constant 0 : i32
    return %c0_i32, %c0_i32_0 : i32, i32
  }
  func.func @transform_17(%arg0: i32) -> (i32, i32) {
    %c0_i32 = arith.constant 0 : i32
    %c0_i32_0 = arith.constant 0 : i32
    return %arg0, %c0_i32 : i32, i32
  }
}

module attributes {stable_mosaic.version = 11 : i64} {
  func.func @_bilstm_proj_kernel(%arg0: i32, %arg1: memref<4x8x64xf32, #tpu.memory_space<vmem>>, %arg2: memref<64x1024xbf16, #tpu.memory_space<vmem>>, %arg3: memref<128x512xbf16, #tpu.memory_space<vmem>>, %arg4: memref<128x512xbf16, #tpu.memory_space<vmem>>, %arg5: memref<1x512xf32, #tpu.memory_space<vmem>>, %arg6: memref<1x512xf32, #tpu.memory_space<vmem>>, %arg7: memref<128x128xbf16, #tpu.memory_space<vmem>>, %arg8: memref<128x128xbf16, #tpu.memory_space<vmem>>, %arg9: memref<1x128xf32, #tpu.memory_space<vmem>>, %arg10: memref<8x128xf32, #tpu.memory_space<vmem>>, %arg11: memref<32x1024xbf16, #tpu.memory_space<vmem>>) attributes {dimension_semantics = [#tpu.dimension_semantics<parallel>], iteration_bounds = array<i64: 1>, scalar_prefetch = 0 : i64, scratch_operands = 1 : i64, tpu.core_type = #tpu.core_type<tc>, window_params = [{transform_indices = @transform_0, window_bounds = array<i64: 4, 8, 64>}, {pipeline_mode = #tpu.pipeline_mode<synchronous>, transform_indices = @transform_1, window_bounds = array<i64: 64, 1024>}, {pipeline_mode = #tpu.pipeline_mode<synchronous>, transform_indices = @transform_2, window_bounds = array<i64: 128, 512>}, {pipeline_mode = #tpu.pipeline_mode<synchronous>, transform_indices = @transform_3, window_bounds = array<i64: 128, 512>}, {pipeline_mode = #tpu.pipeline_mode<synchronous>, transform_indices = @transform_4, window_bounds = array<i64: 1, 512>}, {pipeline_mode = #tpu.pipeline_mode<synchronous>, transform_indices = @transform_5, window_bounds = array<i64: 1, 512>}, {pipeline_mode = #tpu.pipeline_mode<synchronous>, transform_indices = @transform_6, window_bounds = array<i64: 128, 128>}, {pipeline_mode = #tpu.pipeline_mode<synchronous>, transform_indices = @transform_7, window_bounds = array<i64: 128, 128>}, {pipeline_mode = #tpu.pipeline_mode<synchronous>, transform_indices = @transform_8, window_bounds = array<i64: 1, 128>}, {transform_indices = @transform_9, window_bounds = array<i64: 8, 128>}]} {
    %c0 = arith.constant 0 : index
    %c0_0 = arith.constant 0 : index
    %c0_1 = arith.constant 0 : index
    %0 = vector.load %arg1[%c0, %c0_0, %c0_1] : memref<4x8x64xf32, #tpu.memory_space<vmem>>, vector<4x8x64xf32>
    %1 = vector.shape_cast %0 : vector<4x8x64xf32> to vector<32x64xf32>
    %2 = arith.truncf %1 : vector<32x64xf32> to vector<32x64xbf16>
    %c0_2 = arith.constant 0 : index
    %c0_3 = arith.constant 0 : index
    %3 = vector.load %arg2[%c0_2, %c0_3] : memref<64x1024xbf16, #tpu.memory_space<vmem>>, vector<64x1024xbf16>
    %cst = arith.constant dense<0.000000e+00> : vector<32x1024xf32>
    %4 = tpu.matmul %2, %3, %cst {dimension_numbers = #tpu.dot_dimension_numbers<[1], [0], [0], [1], [0, 0, 1, 1], [], []>} : vector<32x64xbf16>, vector<64x1024xbf16>, vector<32x1024xf32> -> vector<32x1024xf32>
    %5 = arith.truncf %4 : vector<32x1024xf32> to vector<32x1024xbf16>
    %c0_4 = arith.constant 0 : index
    %c0_5 = arith.constant 0 : index
    %6 = vector.load %arg11[%c0_4, %c0_5] : memref<32x1024xbf16, #tpu.memory_space<vmem>>, vector<32x1024xbf16>
    tpu.vector_store %arg11[%c0_4, %c0_5], %5 {strides = array<i32>} : memref<32x1024xbf16, #tpu.memory_space<vmem>>, vector<32x1024xbf16>,
    %c0_6 = arith.constant 0 : index
    %c0_7 = arith.constant 0 : index
    %7 = vector.load %arg3[%c0_6, %c0_7] : memref<128x512xbf16, #tpu.memory_space<vmem>>, vector<128x512xbf16>
    %c0_8 = arith.constant 0 : index
    %c0_9 = arith.constant 0 : index
    %8 = vector.load %arg4[%c0_8, %c0_9] : memref<128x512xbf16, #tpu.memory_space<vmem>>, vector<128x512xbf16>
    %c0_10 = arith.constant 0 : index
    %c0_11 = arith.constant 0 : index
    %9 = vector.load %arg5[%c0_10, %c0_11] : memref<1x512xf32, #tpu.memory_space<vmem>>, vector<1x512xf32>
    %c0_12 = arith.constant 0 : index
    %c0_13 = arith.constant 0 : index
    %10 = vector.load %arg6[%c0_12, %c0_13] : memref<1x512xf32, #tpu.memory_space<vmem>>, vector<1x512xf32>
    %cst_14 = arith.constant 0.000000e+00 : f32
    %11 = vector.broadcast %cst_14 : f32 to vector<8x128xf32>
    %c0_i32 = arith.constant 0 : i32
    %c8_i32 = arith.constant 8 : i32
    %12 = arith.muli %c0_i32, %c8_i32 : i32
    %13 = tpu.assume_multiple %12, 8 : i32
    %c3_i32 = arith.constant 3 : i32
    %14 = arith.subi %c3_i32, %c0_i32 : i32
    %c8_i32_15 = arith.constant 8 : i32
    %15 = arith.muli %14, %c8_i32_15 : i32
    %16 = tpu.assume_multiple %15, 8 : i32
    %17 = arith.index_cast %13 : i32 to index
    %c0_16 = arith.constant 0 : index
    %18 = vector.load %arg11[%17, %c0_16] : memref<32x1024xbf16, #tpu.memory_space<vmem>>, vector<8x512xbf16>
    %19 = arith.extf %18 : vector<8x512xbf16> to vector<8x512xf32>
    %20 = vector.broadcast %9 : vector<1x512xf32> to vector<8x512xf32>
    %21 = arith.addf %19, %20 : vector<8x512xf32>
    %22 = arith.truncf %11 : vector<8x128xf32> to vector<8x128xbf16>
    %cst_17 = arith.constant dense<0.000000e+00> : vector<8x512xf32>
    %23 = tpu.matmul %22, %7, %cst_17 {dimension_numbers = #tpu.dot_dimension_numbers<[1], [0], [0], [1], [0, 0, 1, 1], [], []>} : vector<8x128xbf16>, vector<128x512xbf16>, vector<8x512xf32> -> vector<8x512xf32>
    %24 = arith.addf %21, %23 : vector<8x512xf32>
    %25 = arith.index_cast %16 : i32 to index
    %c512 = arith.constant 512 : index
    %26 = vector.load %arg11[%25, %c512] : memref<32x1024xbf16, #tpu.memory_space<vmem>>, vector<8x512xbf16>
    %27 = arith.extf %26 : vector<8x512xbf16> to vector<8x512xf32>
    %28 = vector.broadcast %10 : vector<1x512xf32> to vector<8x512xf32>
    %29 = arith.addf %27, %28 : vector<8x512xf32>
    %30 = arith.truncf %11 : vector<8x128xf32> to vector<8x128xbf16>
    %cst_18 = arith.constant dense<0.000000e+00> : vector<8x512xf32>
    %31 = tpu.matmul %30, %8, %cst_18 {dimension_numbers = #tpu.dot_dimension_numbers<[1], [0], [0], [1], [0, 0, 1, 1], [], []>} : vector<8x128xbf16>, vector<128x512xbf16>, vector<8x512xf32> -> vector<8x512xf32>
    %32 = arith.addf %29, %31 : vector<8x512xf32>
    %33 = vector.extract_strided_slice %24 {offsets = [0, 0], sizes = [8, 384], strides = [1, 1]} : vector<8x512xf32> to vector<8x384xf32>
    %34 = arith.negf %33 : vector<8x384xf32>
    %35 = math.exp %34 : vector<8x384xf32>
    %cst_19 = arith.constant 1.000000e+00 : f32
    %36 = vector.broadcast %cst_19 : f32 to vector<8x384xf32>
    %37 = arith.addf %36, %35 : vector<8x384xf32>
    %38 = arith.divf %36, %37 : vector<8x384xf32>
    %39 = vector.extract_strided_slice %24 {offsets = [0, 384], sizes = [8, 128], strides = [1, 1]} : vector<8x512xf32> to vector<8x128xf32>
    %40 = math.tanh %39 : vector<8x128xf32>
    %41 = vector.extract_strided_slice %38 {offsets = [0, 0], sizes = [8, 128], strides = [1, 1]} : vector<8x384xf32> to vector<8x128xf32>
    %42 = vector.extract_strided_slice %38 {offsets = [0, 128], sizes = [8, 128], strides = [1, 1]} : vector<8x384xf32> to vector<8x128xf32>
    %43 = vector.extract_strided_slice %38 {offsets = [0, 256], sizes = [8, 128], strides = [1, 1]} : vector<8x384xf32> to vector<8x128xf32>
    %44 = arith.mulf %42, %11 : vector<8x128xf32>
    %45 = arith.mulf %41, %40 : vector<8x128xf32>
    %46 = arith.addf %44, %45 : vector<8x128xf32>
    %47 = math.tanh %46 : vector<8x128xf32>
    %48 = arith.mulf %43, %47 : vector<8x128xf32>
    %49 = vector.extract_strided_slice %32 {offsets = [0, 0], sizes = [8, 384], strides = [1, 1]} : vector<8x512xf32> to vector<8x384xf32>
    %50 = arith.negf %49 : vector<8x384xf32>
    %51 = math.exp %50 : vector<8x384xf32>
    %cst_20 = arith.constant 1.000000e+00 : f32
    %52 = vector.broadcast %cst_20 : f32 to vector<8x384xf32>
    %53 = arith.addf %52, %51 : vector<8x384xf32>
    %54 = arith.divf %52, %53 : vector<8x384xf32>
    %55 = vector.extract_strided_slice %32 {offsets = [0, 384], sizes = [8, 128], strides = [1, 1]} : vector<8x512xf32> to vector<8x128xf32>
    %56 = math.tanh %55 : vector<8x128xf32>
    %57 = vector.extract_strided_slice %54 {offsets = [0, 0], sizes = [8, 128], strides = [1, 1]} : vector<8x384xf32> to vector<8x128xf32>
    %58 = vector.extract_strided_slice %54 {offsets = [0, 128], sizes = [8, 128], strides = [1, 1]} : vector<8x384xf32> to vector<8x128xf32>
    %59 = vector.extract_strided_slice %54 {offsets = [0, 256], sizes = [8, 128], strides = [1, 1]} : vector<8x384xf32> to vector<8x128xf32>
    %60 = arith.mulf %58, %11 : vector<8x128xf32>
    %61 = arith.mulf %57, %56 : vector<8x128xf32>
    %62 = arith.addf %60, %61 : vector<8x128xf32>
    %63 = math.tanh %62 : vector<8x128xf32>
    %64 = arith.mulf %59, %63 : vector<8x128xf32>
    %c1_i32 = arith.constant 1 : i32
    %c8_i32_21 = arith.constant 8 : i32
    %65 = arith.muli %c1_i32, %c8_i32_21 : i32
    %66 = tpu.assume_multiple %65, 8 : i32
    %c3_i32_22 = arith.constant 3 : i32
    %67 = arith.subi %c3_i32_22, %c1_i32 : i32
    %c8_i32_23 = arith.constant 8 : i32
    %68 = arith.muli %67, %c8_i32_23 : i32
    %69 = tpu.assume_multiple %68, 8 : i32
    %70 = arith.index_cast %66 : i32 to index
    %c0_24 = arith.constant 0 : index
    %71 = vector.load %arg11[%70, %c0_24] : memref<32x1024xbf16, #tpu.memory_space<vmem>>, vector<8x512xbf16>
    %72 = arith.extf %71 : vector<8x512xbf16> to vector<8x512xf32>
    %73 = vector.broadcast %9 : vector<1x512xf32> to vector<8x512xf32>
    %74 = arith.addf %72, %73 : vector<8x512xf32>
    %75 = arith.truncf %48 : vector<8x128xf32> to vector<8x128xbf16>
    %cst_25 = arith.constant dense<0.000000e+00> : vector<8x512xf32>
    %76 = tpu.matmul %75, %7, %cst_25 {dimension_numbers = #tpu.dot_dimension_numbers<[1], [0], [0], [1], [0, 0, 1, 1], [], []>} : vector<8x128xbf16>, vector<128x512xbf16>, vector<8x512xf32> -> vector<8x512xf32>
    %77 = arith.addf %74, %76 : vector<8x512xf32>
    %78 = arith.index_cast %69 : i32 to index
    %c512_26 = arith.constant 512 : index
    %79 = vector.load %arg11[%78, %c512_26] : memref<32x1024xbf16, #tpu.memory_space<vmem>>, vector<8x512xbf16>
    %80 = arith.extf %79 : vector<8x512xbf16> to vector<8x512xf32>
    %81 = vector.broadcast %10 : vector<1x512xf32> to vector<8x512xf32>
    %82 = arith.addf %80, %81 : vector<8x512xf32>
    %83 = arith.truncf %64 : vector<8x128xf32> to vector<8x128xbf16>
    %cst_27 = arith.constant dense<0.000000e+00> : vector<8x512xf32>
    %84 = tpu.matmul %83, %8, %cst_27 {dimension_numbers = #tpu.dot_dimension_numbers<[1], [0], [0], [1], [0, 0, 1, 1], [], []>} : vector<8x128xbf16>, vector<128x512xbf16>, vector<8x512xf32> -> vector<8x512xf32>
    %85 = arith.addf %82, %84 : vector<8x512xf32>
    %86 = vector.extract_strided_slice %77 {offsets = [0, 0], sizes = [8, 384], strides = [1, 1]} : vector<8x512xf32> to vector<8x384xf32>
    %87 = arith.negf %86 : vector<8x384xf32>
    %88 = math.exp %87 : vector<8x384xf32>
    %cst_28 = arith.constant 1.000000e+00 : f32
    %89 = vector.broadcast %cst_28 : f32 to vector<8x384xf32>
    %90 = arith.addf %89, %88 : vector<8x384xf32>
    %91 = arith.divf %89, %90 : vector<8x384xf32>
    %92 = vector.extract_strided_slice %77 {offsets = [0, 384], sizes = [8, 128], strides = [1, 1]} : vector<8x512xf32> to vector<8x128xf32>
    %93 = math.tanh %92 : vector<8x128xf32>
    %94 = vector.extract_strided_slice %91 {offsets = [0, 0], sizes = [8, 128], strides = [1, 1]} : vector<8x384xf32> to vector<8x128xf32>
    %95 = vector.extract_strided_slice %91 {offsets = [0, 128], sizes = [8, 128], strides = [1, 1]} : vector<8x384xf32> to vector<8x128xf32>
    %96 = vector.extract_strided_slice %91 {offsets = [0, 256], sizes = [8, 128], strides = [1, 1]} : vector<8x384xf32> to vector<8x128xf32>
    %97 = arith.mulf %95, %46 : vector<8x128xf32>
    %98 = arith.mulf %94, %93 : vector<8x128xf32>
    %99 = arith.addf %97, %98 : vector<8x128xf32>
    %100 = math.tanh %99 : vector<8x128xf32>
    %101 = arith.mulf %96, %100 : vector<8x128xf32>
    %102 = vector.extract_strided_slice %85 {offsets = [0, 0], sizes = [8, 384], strides = [1, 1]} : vector<8x512xf32> to vector<8x384xf32>
    %103 = arith.negf %102 : vector<8x384xf32>
    %104 = math.exp %103 : vector<8x384xf32>
    %cst_29 = arith.constant 1.000000e+00 : f32
    %105 = vector.broadcast %cst_29 : f32 to vector<8x384xf32>
    %106 = arith.addf %105, %104 : vector<8x384xf32>
    %107 = arith.divf %105, %106 : vector<8x384xf32>
    %108 = vector.extract_strided_slice %85 {offsets = [0, 384], sizes = [8, 128], strides = [1, 1]} : vector<8x512xf32> to vector<8x128xf32>
    %109 = math.tanh %108 : vector<8x128xf32>
    %110 = vector.extract_strided_slice %107 {offsets = [0, 0], sizes = [8, 128], strides = [1, 1]} : vector<8x384xf32> to vector<8x128xf32>
    %111 = vector.extract_strided_slice %107 {offsets = [0, 128], sizes = [8, 128], strides = [1, 1]} : vector<8x384xf32> to vector<8x128xf32>
    %112 = vector.extract_strided_slice %107 {offsets = [0, 256], sizes = [8, 128], strides = [1, 1]} : vector<8x384xf32> to vector<8x128xf32>
    %113 = arith.mulf %111, %62 : vector<8x128xf32>
    %114 = arith.mulf %110, %109 : vector<8x128xf32>
    %115 = arith.addf %113, %114 : vector<8x128xf32>
    %116 = math.tanh %115 : vector<8x128xf32>
    %117 = arith.mulf %112, %116 : vector<8x128xf32>
    %c2_i32 = arith.constant 2 : i32
    %c8_i32_30 = arith.constant 8 : i32
    %118 = arith.muli %c2_i32, %c8_i32_30 : i32
    %119 = tpu.assume_multiple %118, 8 : i32
    %c3_i32_31 = arith.constant 3 : i32
    %120 = arith.subi %c3_i32_31, %c2_i32 : i32
    %c8_i32_32 = arith.constant 8 : i32
    %121 = arith.muli %120, %c8_i32_32 : i32
    %122 = tpu.assume_multiple %121, 8 : i32
    %123 = arith.index_cast %119 : i32 to index
    %c0_33 = arith.constant 0 : index
    %124 = vector.load %arg11[%123, %c0_33] : memref<32x1024xbf16, #tpu.memory_space<vmem>>, vector<8x512xbf16>
    %125 = arith.extf %124 : vector<8x512xbf16> to vector<8x512xf32>
    %126 = vector.broadcast %9 : vector<1x512xf32> to vector<8x512xf32>
    %127 = arith.addf %125, %126 : vector<8x512xf32>
    %128 = arith.truncf %101 : vector<8x128xf32> to vector<8x128xbf16>
    %cst_34 = arith.constant dense<0.000000e+00> : vector<8x512xf32>
    %129 = tpu.matmul %128, %7, %cst_34 {dimension_numbers = #tpu.dot_dimension_numbers<[1], [0], [0], [1], [0, 0, 1, 1], [], []>} : vector<8x128xbf16>, vector<128x512xbf16>, vector<8x512xf32> -> vector<8x512xf32>
    %130 = arith.addf %127, %129 : vector<8x512xf32>
    %131 = arith.index_cast %122 : i32 to index
    %c512_35 = arith.constant 512 : index
    %132 = vector.load %arg11[%131, %c512_35] : memref<32x1024xbf16, #tpu.memory_space<vmem>>, vector<8x512xbf16>
    %133 = arith.extf %132 : vector<8x512xbf16> to vector<8x512xf32>
    %134 = vector.broadcast %10 : vector<1x512xf32> to vector<8x512xf32>
    %135 = arith.addf %133, %134 : vector<8x512xf32>
    %136 = arith.truncf %117 : vector<8x128xf32> to vector<8x128xbf16>
    %cst_36 = arith.constant dense<0.000000e+00> : vector<8x512xf32>
    %137 = tpu.matmul %136, %8, %cst_36 {dimension_numbers = #tpu.dot_dimension_numbers<[1], [0], [0], [1], [0, 0, 1, 1], [], []>} : vector<8x128xbf16>, vector<128x512xbf16>, vector<8x512xf32> -> vector<8x512xf32>
    %138 = arith.addf %135, %137 : vector<8x512xf32>
    %139 = vector.extract_strided_slice %130 {offsets = [0, 0], sizes = [8, 384], strides = [1, 1]} : vector<8x512xf32> to vector<8x384xf32>
    %140 = arith.negf %139 : vector<8x384xf32>
    %141 = math.exp %140 : vector<8x384xf32>
    %cst_37 = arith.constant 1.000000e+00 : f32
    %142 = vector.broadcast %cst_37 : f32 to vector<8x384xf32>
    %143 = arith.addf %142, %141 : vector<8x384xf32>
    %144 = arith.divf %142, %143 : vector<8x384xf32>
    %145 = vector.extract_strided_slice %130 {offsets = [0, 384], sizes = [8, 128], strides = [1, 1]} : vector<8x512xf32> to vector<8x128xf32>
    %146 = math.tanh %145 : vector<8x128xf32>
    %147 = vector.extract_strided_slice %144 {offsets = [0, 0], sizes = [8, 128], strides = [1, 1]} : vector<8x384xf32> to vector<8x128xf32>
    %148 = vector.extract_strided_slice %144 {offsets = [0, 128], sizes = [8, 128], strides = [1, 1]} : vector<8x384xf32> to vector<8x128xf32>
    %149 = vector.extract_strided_slice %144 {offsets = [0, 256], sizes = [8, 128], strides = [1, 1]} : vector<8x384xf32> to vector<8x128xf32>
    %150 = arith.mulf %148, %99 : vector<8x128xf32>
    %151 = arith.mulf %147, %146 : vector<8x128xf32>
    %152 = arith.addf %150, %151 : vector<8x128xf32>
    %153 = math.tanh %152 : vector<8x128xf32>
    %154 = arith.mulf %149, %153 : vector<8x128xf32>
    %155 = vector.extract_strided_slice %138 {offsets = [0, 0], sizes = [8, 384], strides = [1, 1]} : vector<8x512xf32> to vector<8x384xf32>
    %156 = arith.negf %155 : vector<8x384xf32>
    %157 = math.exp %156 : vector<8x384xf32>
    %cst_38 = arith.constant 1.000000e+00 : f32
    %158 = vector.broadcast %cst_38 : f32 to vector<8x384xf32>
    %159 = arith.addf %158, %157 : vector<8x384xf32>
    %160 = arith.divf %158, %159 : vector<8x384xf32>
    %161 = vector.extract_strided_slice %138 {offsets = [0, 384], sizes = [8, 128], strides = [1, 1]} : vector<8x512xf32> to vector<8x128xf32>
    %162 = math.tanh %161 : vector<8x128xf32>
    %163 = vector.extract_strided_slice %160 {offsets = [0, 0], sizes = [8, 128], strides = [1, 1]} : vector<8x384xf32> to vector<8x128xf32>
    %164 = vector.extract_strided_slice %160 {offsets = [0, 128], sizes = [8, 128], strides = [1, 1]} : vector<8x384xf32> to vector<8x128xf32>
    %165 = vector.extract_strided_slice %160 {offsets = [0, 256], sizes = [8, 128], strides = [1, 1]} : vector<8x384xf32> to vector<8x128xf32>
    %166 = arith.mulf %164, %115 : vector<8x128xf32>
    %167 = arith.mulf %163, %162 : vector<8x128xf32>
    %168 = arith.addf %166, %167 : vector<8x128xf32>
    %169 = math.tanh %168 : vector<8x128xf32>
    %170 = arith.mulf %165, %169 : vector<8x128xf32>
    %c3_i32_39 = arith.constant 3 : i32
    %c8_i32_40 = arith.constant 8 : i32
    %171 = arith.muli %c3_i32_39, %c8_i32_40 : i32
    %172 = tpu.assume_multiple %171, 8 : i32
    %c3_i32_41 = arith.constant 3 : i32
    %173 = arith.subi %c3_i32_41, %c3_i32_39 : i32
    %c8_i32_42 = arith.constant 8 : i32
    %174 = arith.muli %173, %c8_i32_42 : i32
    %175 = tpu.assume_multiple %174, 8 : i32
    %176 = arith.index_cast %172 : i32 to index
    %c0_43 = arith.constant 0 : index
    %177 = vector.load %arg11[%176, %c0_43] : memref<32x1024xbf16, #tpu.memory_space<vmem>>, vector<8x512xbf16>
    %178 = arith.extf %177 : vector<8x512xbf16> to vector<8x512xf32>
    %179 = vector.broadcast %9 : vector<1x512xf32> to vector<8x512xf32>
    %180 = arith.addf %178, %179 : vector<8x512xf32>
    %181 = arith.truncf %154 : vector<8x128xf32> to vector<8x128xbf16>
    %cst_44 = arith.constant dense<0.000000e+00> : vector<8x512xf32>
    %182 = tpu.matmul %181, %7, %cst_44 {dimension_numbers = #tpu.dot_dimension_numbers<[1], [0], [0], [1], [0, 0, 1, 1], [], []>} : vector<8x128xbf16>, vector<128x512xbf16>, vector<8x512xf32> -> vector<8x512xf32>
    %183 = arith.addf %180, %182 : vector<8x512xf32>
    %184 = arith.index_cast %175 : i32 to index
    %c512_45 = arith.constant 512 : index
    %185 = vector.load %arg11[%184, %c512_45] : memref<32x1024xbf16, #tpu.memory_space<vmem>>, vector<8x512xbf16>
    %186 = arith.extf %185 : vector<8x512xbf16> to vector<8x512xf32>
    %187 = vector.broadcast %10 : vector<1x512xf32> to vector<8x512xf32>
    %188 = arith.addf %186, %187 : vector<8x512xf32>
    %189 = arith.truncf %170 : vector<8x128xf32> to vector<8x128xbf16>
    %cst_46 = arith.constant dense<0.000000e+00> : vector<8x512xf32>
    %190 = tpu.matmul %189, %8, %cst_46 {dimension_numbers = #tpu.dot_dimension_numbers<[1], [0], [0], [1], [0, 0, 1, 1], [], []>} : vector<8x128xbf16>, vector<128x512xbf16>, vector<8x512xf32> -> vector<8x512xf32>
    %191 = arith.addf %188, %190 : vector<8x512xf32>
    %192 = vector.extract_strided_slice %183 {offsets = [0, 0], sizes = [8, 384], strides = [1, 1]} : vector<8x512xf32> to vector<8x384xf32>
    %193 = arith.negf %192 : vector<8x384xf32>
    %194 = math.exp %193 : vector<8x384xf32>
    %cst_47 = arith.constant 1.000000e+00 : f32
    %195 = vector.broadcast %cst_47 : f32 to vector<8x384xf32>
    %196 = arith.addf %195, %194 : vector<8x384xf32>
    %197 = arith.divf %195, %196 : vector<8x384xf32>
    %198 = vector.extract_strided_slice %183 {offsets = [0, 384], sizes = [8, 128], strides = [1, 1]} : vector<8x512xf32> to vector<8x128xf32>
    %199 = math.tanh %198 : vector<8x128xf32>
    %200 = vector.extract_strided_slice %197 {offsets = [0, 0], sizes = [8, 128], strides = [1, 1]} : vector<8x384xf32> to vector<8x128xf32>
    %201 = vector.extract_strided_slice %197 {offsets = [0, 128], sizes = [8, 128], strides = [1, 1]} : vector<8x384xf32> to vector<8x128xf32>
    %202 = vector.extract_strided_slice %197 {offsets = [0, 256], sizes = [8, 128], strides = [1, 1]} : vector<8x384xf32> to vector<8x128xf32>
    %203 = arith.mulf %201, %152 : vector<8x128xf32>
    %204 = arith.mulf %200, %199 : vector<8x128xf32>
    %205 = arith.addf %203, %204 : vector<8x128xf32>
    %206 = math.tanh %205 : vector<8x128xf32>
    %207 = arith.mulf %202, %206 : vector<8x128xf32>
    %208 = vector.extract_strided_slice %191 {offsets = [0, 0], sizes = [8, 384], strides = [1, 1]} : vector<8x512xf32> to vector<8x384xf32>
    %209 = arith.negf %208 : vector<8x384xf32>
    %210 = math.exp %209 : vector<8x384xf32>
    %cst_48 = arith.constant 1.000000e+00 : f32
    %211 = vector.broadcast %cst_48 : f32 to vector<8x384xf32>
    %212 = arith.addf %211, %210 : vector<8x384xf32>
    %213 = arith.divf %211, %212 : vector<8x384xf32>
    %214 = vector.extract_strided_slice %191 {offsets = [0, 384], sizes = [8, 128], strides = [1, 1]} : vector<8x512xf32> to vector<8x128xf32>
    %215 = math.tanh %214 : vector<8x128xf32>
    %216 = vector.extract_strided_slice %213 {offsets = [0, 0], sizes = [8, 128], strides = [1, 1]} : vector<8x384xf32> to vector<8x128xf32>
    %217 = vector.extract_strided_slice %213 {offsets = [0, 128], sizes = [8, 128], strides = [1, 1]} : vector<8x384xf32> to vector<8x128xf32>
    %218 = vector.extract_strided_slice %213 {offsets = [0, 256], sizes = [8, 128], strides = [1, 1]} : vector<8x384xf32> to vector<8x128xf32>
    %219 = arith.mulf %217, %168 : vector<8x128xf32>
    %220 = arith.mulf %216, %215 : vector<8x128xf32>
    %221 = arith.addf %219, %220 : vector<8x128xf32>
    %222 = math.tanh %221 : vector<8x128xf32>
    %223 = arith.mulf %218, %222 : vector<8x128xf32>
    %c4_i32 = arith.constant 4 : i32
    %224 = arith.truncf %207 : vector<8x128xf32> to vector<8x128xbf16>
    %c0_49 = arith.constant 0 : index
    %c0_50 = arith.constant 0 : index
    %225 = vector.load %arg7[%c0_49, %c0_50] : memref<128x128xbf16, #tpu.memory_space<vmem>>, vector<128x128xbf16>
    %cst_51 = arith.constant dense<0.000000e+00> : vector<8x128xf32>
    %226 = tpu.matmul %224, %225, %cst_51 {dimension_numbers = #tpu.dot_dimension_numbers<[1], [0], [0], [1], [0, 0, 1, 1], [], []>} : vector<8x128xbf16>, vector<128x128xbf16>, vector<8x128xf32> -> vector<8x128xf32>
    %227 = arith.truncf %223 : vector<8x128xf32> to vector<8x128xbf16>
    %c0_52 = arith.constant 0 : index
    %c0_53 = arith.constant 0 : index
    %228 = vector.load %arg8[%c0_52, %c0_53] : memref<128x128xbf16, #tpu.memory_space<vmem>>, vector<128x128xbf16>
    %cst_54 = arith.constant dense<0.000000e+00> : vector<8x128xf32>
    %229 = tpu.matmul %227, %228, %cst_54 {dimension_numbers = #tpu.dot_dimension_numbers<[1], [0], [0], [1], [0, 0, 1, 1], [], []>} : vector<8x128xbf16>, vector<128x128xbf16>, vector<8x128xf32> -> vector<8x128xf32>
    %230 = arith.addf %226, %229 : vector<8x128xf32>
    %c0_55 = arith.constant 0 : index
    %c0_56 = arith.constant 0 : index
    %231 = vector.load %arg9[%c0_55, %c0_56] : memref<1x128xf32, #tpu.memory_space<vmem>>, vector<1x128xf32>
    %232 = vector.broadcast %231 : vector<1x128xf32> to vector<8x128xf32>
    %233 = arith.addf %230, %232 : vector<8x128xf32>
    %c0_57 = arith.constant 0 : index
    %c0_58 = arith.constant 0 : index
    %234 = vector.load %arg10[%c0_57, %c0_58] : memref<8x128xf32, #tpu.memory_space<vmem>>, vector<8x128xf32>
    tpu.vector_store %arg10[%c0_57, %c0_58], %233 {strides = array<i32>} : memref<8x128xf32, #tpu.memory_space<vmem>>, vector<8x128xf32>,
    return
  }
  func.func @transform_0(%arg0: i32) -> (i32, i32, i32) {
    %c0_i32 = arith.constant 0 : i32
    %c0_i32_0 = arith.constant 0 : i32
    %c0_i32_1 = arith.constant 0 : i32
    return %c0_i32, %arg0, %c0_i32_0 : i32, i32, i32
  }
  func.func @transform_1(%arg0: i32) -> (i32, i32) {
    %c0_i32 = arith.constant 0 : i32
    %c0_i32_0 = arith.constant 0 : i32
    %c0_i32_1 = arith.constant 0 : i32
    return %c0_i32, %c0_i32_0 : i32, i32
  }
  func.func @transform_2(%arg0: i32) -> (i32, i32) {
    %c0_i32 = arith.constant 0 : i32
    %c0_i32_0 = arith.constant 0 : i32
    %c0_i32_1 = arith.constant 0 : i32
    return %c0_i32, %c0_i32_0 : i32, i32
  }
  func.func @transform_3(%arg0: i32) -> (i32, i32) {
    %c0_i32 = arith.constant 0 : i32
    %c0_i32_0 = arith.constant 0 : i32
    %c0_i32_1 = arith.constant 0 : i32
    return %c0_i32, %c0_i32_0 : i32, i32
  }
  func.func @transform_4(%arg0: i32) -> (i32, i32) {
    %c0_i32 = arith.constant 0 : i32
    %c0_i32_0 = arith.constant 0 : i32
    %c0_i32_1 = arith.constant 0 : i32
    return %c0_i32, %c0_i32_0 : i32, i32
  }
  func.func @transform_5(%arg0: i32) -> (i32, i32) {
    %c0_i32 = arith.constant 0 : i32
    %c0_i32_0 = arith.constant 0 : i32
    %c0_i32_1 = arith.constant 0 : i32
    return %c0_i32, %c0_i32_0 : i32, i32
  }
  func.func @transform_6(%arg0: i32) -> (i32, i32) {
    %c0_i32 = arith.constant 0 : i32
    %c0_i32_0 = arith.constant 0 : i32
    %c0_i32_1 = arith.constant 0 : i32
    return %c0_i32, %c0_i32_0 : i32, i32
  }
  func.func @transform_7(%arg0: i32) -> (i32, i32) {
    %c0_i32 = arith.constant 0 : i32
    %c0_i32_0 = arith.constant 0 : i32
    %c0_i32_1 = arith.constant 0 : i32
    return %c0_i32, %c0_i32_0 : i32, i32
  }
  func.func @transform_8(%arg0: i32) -> (i32, i32) {
    %c0_i32 = arith.constant 0 : i32
    %c0_i32_0 = arith.constant 0 : i32
    %c0_i32_1 = arith.constant 0 : i32
    return %c0_i32, %c0_i32_0 : i32, i32
  }
  func.func @transform_9(%arg0: i32) -> (i32, i32) {
    %c0_i32 = arith.constant 0 : i32
    %c0_i32_0 = arith.constant 0 : i32
    return %arg0, %c0_i32 : i32, i32
  }
}

</mosaic_0001>

<bundles_post_ra>
// kernel: forward.6
= control target key start
LH: loop header
LB: loop body
LE: loop exit
PB: predicated region body
PF: predicated region fallthrough
CT: control target
= control target key end

     0   :  { %s517_s0 = inlined_call_operand.vmem [shape: bf16[6,256], index: 0, kind: input, shape index: {}]   ;;  %s518_s1 = inlined_call_operand.vmem [shape: bf16[256,256], index: 1, kind: input, shape index: {}]   ;;  %s519_s2 = inlined_call_operand.vmem [shape: f32[1,256], index: 2, kind: input, shape index: {}]   ;;  %s520_s3 = inlined_call_operand.hbm [shape: f32[6,256], index: 3, kind: output, shape index: {}]  }
   0x1   :  { %v319_v0 = vld [vmem:[%s518_s1 + $0x74] ss:$8 sps:$4 sm:$0xff]   ;;  %v321_v1 = vld [vmem:[%s518_s1 + $0x70] ss:$8 sps:$4 sm:$0xff]   ;;  %v322_v2 = vld [vmem:[%s518_s1 + $0x64] ss:$8 sps:$4 sm:$0xff]  }
   0x2   :  { %227 = vmatprep.subr.bf16.mxu0 %v319_v0  ;;  %v324_v3 = vld [vmem:[%s518_s1 + $0x60] ss:$8 sps:$4 sm:$0xff]   ;;  %v325_v4 = vld [vmem:[%s518_s1 + $0x54] ss:$8 sps:$4 sm:$0xff]   ;;  %v327_v5 = vld [vmem:[%s518_s1 + $0x50] ss:$8 sps:$4 sm:$0xff]  }
   0x3   :  { %228 = vmatpush1.bf16.msra.mxu0 %v321_v1  ;;  %v328_v6 = vld [vmem:[%s518_s1 + $0x44] ss:$8 sps:$4 sm:$0xff]   ;;  %v330_v7 = vld [vmem:[%s518_s1 + $0x40] ss:$8 sps:$4 sm:$0xff]   ;;  %v331_v8 = vld [vmem:[%s518_s1 + $0x34] ss:$8 sps:$4 sm:$0xff]  }
   0x4   :  { %229 = vmatprep.subr.bf16.mxu0 %v322_v2  ;;  %v333_v9 = vld [vmem:[%s518_s1 + $0x30] ss:$8 sps:$4 sm:$0xff]   ;;  %v334_v10 = vld [vmem:[%s518_s1 + $0x24] ss:$8 sps:$4 sm:$0xff]   ;;  %v336_v11 = vld [vmem:[%s518_s1 + $0x20] ss:$8 sps:$4 sm:$0xff]  }
   0x5   :  { %v337_v12 = vld [vmem:[%s518_s1 + $0x14] ss:$8 sps:$4 sm:$0xff]   ;;  %v15_v13 = vld [vmem:[%s517_s0] sm:$0x77] }
   0x6   :  { %v285_v14 = vcombine.high %v15_v13, %v15_v13 }
   0x7   :  { %230 = vmatpush1.bf16.msra.mxu0 %v324_v3 }
   0x8   :  { %231 = vmatprep.subr.bf16.mxu0 %v325_v4 }
   0xb   :  { %232 = vmatpush1.bf16.msra.mxu0 %v327_v5 }
   0xc   :  { %233 = vmatprep.subr.bf16.mxu0 %v328_v6 }
   0xf   :  { %234 = vmatpush1.bf16.msra.mxu0 %v330_v7 }
  0x10   :  { %235 = vmatprep.subr.bf16.mxu0 %v331_v8 }
  0x13   :  { %236 = vmatpush1.bf16.msra.mxu0 %v333_v9 }
  0x14   :  { %237 = vmatprep.subr.bf16.mxu0 %v334_v10 }
  0x15   :  { %8 = vsyncpa [#allocation3], 0  ;;  %v339_v15 = vld [vmem:[%s518_s1 + $0x10] ss:$8 sps:$4 sm:$0xff]   ;;  %v340_v16 = vld [vmem:[%s518_s1 + $0x4] ss:$8 sps:$4 sm:$0xff]   ;;  %259 = vmatprep.mubr.bf16.mxu0 %v285_v14  ;;  %v284_v34 = vcombine.low %v15_v13, %v15_v13  ;;  %v50_v35 = vlaneseq }
  0x16   :  { %v342_v17 = vld [vmem:[%s518_s1] ss:$8 sps:$4 sm:$0xff]   ;;  %v343_v18 = vld [vmem:[%s518_s1 + $0xf4] ss:$8 sps:$4 sm:$0xff]   ;;  %v345_v19 = vld [vmem:[%s518_s1 + $0xf0] ss:$8 sps:$4 sm:$0xff]  }
  0x17   :  { %238 = vmatpush1.bf16.msra.mxu0 %v336_v11  ;;  %v346_v20 = vld [vmem:[%s518_s1 + $0xe4] ss:$8 sps:$4 sm:$0xff]   ;;  %v348_v21 = vld [vmem:[%s518_s1 + $0xe0] ss:$8 sps:$4 sm:$0xff]   ;;  %v349_v22 = vld [vmem:[%s518_s1 + $0xd4] ss:$8 sps:$4 sm:$0xff]  }
  0x18   :  { %239 = vmatprep.subr.bf16.mxu0 %v337_v12  ;;  %v351_v23 = vld [vmem:[%s518_s1 + $0xd0] ss:$8 sps:$4 sm:$0xff]   ;;  %v352_v24 = vld [vmem:[%s518_s1 + $0xc4] ss:$8 sps:$4 sm:$0xff]   ;;  %v354_v25 = vld [vmem:[%s518_s1 + $0xc0] ss:$8 sps:$4 sm:$0xff]  }
  0x19   :  { %v355_v26 = vld [vmem:[%s518_s1 + $0xb4] ss:$8 sps:$4 sm:$0xff]   ;;  %v357_v27 = vld [vmem:[%s518_s1 + $0xb0] ss:$8 sps:$4 sm:$0xff]   ;;  %v358_v28 = vld [vmem:[%s518_s1 + $0xa4] ss:$8 sps:$4 sm:$0xff]  }
  0x1a   :  { %v360_v29 = vld [vmem:[%s518_s1 + $0xa0] ss:$8 sps:$4 sm:$0xff]   ;;  %v361_v30 = vld [vmem:[%s518_s1 + $0x94] ss:$8 sps:$4 sm:$0xff]   ;;  %v363_v31 = vld [vmem:[%s518_s1 + $0x90] ss:$8 sps:$4 sm:$0xff]  }
  0x1b   :  { %240 = vmatpush1.bf16.msra.mxu0 %v339_v15  ;;  %v364_v32 = vld [vmem:[%s518_s1 + $0x84] ss:$8 sps:$4 sm:$0xff]   ;;  %v366_v33 = vld [vmem:[%s518_s1 + $0x80] ss:$8 sps:$4 sm:$0xff]   ;;  %v51_v36 = vshrl.u32 %v50_v35, 7  ;;  %s391_s24 = smov [#allocation2]  }
  0x1c   :  { %241 = vmatprep.subr.bf16.mxu0 %v340_v16  ;;  %v48_v38 = vld [vmem:[%s519_s2] sm:$0x3]  ;;  %s276_s25 = sshll.u32 %s391_s24, 4  ;;  %s277_s25 = int_to_ptr.vmem [resolvable:$true] %s276_s25 }
  0x1d   :  { %v52_v37 = vsub.s32 0, %v51_v36  ;;  %v56_v39 = vsub.s32 1, %v51_v36  ;;  %s369_s1 = scalar_lea.vmem %s277_s25, 256  ;;  %p374_p1 = scmp.lt.s32.totalorder %s277_s25, %s277_s25 }
  0x1e   :  { %p370_p0 = scmp.ne.s32.totalorder %s277_s25, %s369_s1  ;;  %p375_p2 = scmp.lt.s32.totalorder %s369_s1, %s369_s1 }
  0x1f   :  { %242 = vmatpush1.bf16.msra.mxu0 %v342_v17  ;;  %v53_v40 = vrot.slane %v48_v38, %v52_v37  ;;  %v57_v41 = vrot.slane %v48_v38, %v56_v39 }
  0x20   :  { %243 = vmatprep.subr.bf16.mxu0 %v343_v18  ;;  %p376_p3 = por %p375_p2, %p374_p1 }
  0x22   :  { %p377_p4 = pnand %p376_p3, %p370_p0 }
  0x23   :  { %244 = vmatpush2.bf16.msra.mxu0 %v345_v19 }
  0x24   :  { %245 = vmatprep.subr.bf16.mxu0 %v346_v20 }
  0x27   :  { %246 = vmatpush2.bf16.msra.mxu0 %v348_v21 }
  0x28   :  { %247 = vmatprep.subr.bf16.mxu0 %v349_v22 }
  0x2b   :  { %248 = vmatpush2.bf16.msra.mxu0 %v351_v23 }
  0x2c   :  { %249 = vmatprep.subr.bf16.mxu0 %v352_v24 }
  0x2f   :  { %250 = vmatpush2.bf16.msra.mxu0 %v354_v25 }
  0x30   :  { %251 = vmatprep.subr.bf16.mxu0 %v355_v26 }
  0x33   :  { %252 = vmatpush2.bf16.msra.mxu0 %v357_v27 }
  0x34   :  { %253 = vmatprep.subr.bf16.mxu0 %v358_v28 }
  0x37   :  { %254 = vmatpush2.bf16.msra.mxu0 %v360_v29 }
  0x38   :  { %255 = vmatprep.subr.bf16.mxu0 %v361_v30 }
  0x3b   :  { %256 = vmatpush2.bf16.msra.mxu0 %v363_v31 }
  0x3c   :  { %257 = vmatprep.subr.bf16.mxu0 %v364_v32 }
  0x3f   :  { %258 = vmatpush2.bf16.msra.mxu0 %v366_v33 }
  0x42   :  { %260 = vmatmul.mubr.bf16.vlgmr.msra.gmra.mxu0 %v284_v34 }
 0x102   :  { %v261_v42 = vpop.f32.mrf.mxu0 }
 0x103   :  { %v262_v43 = vadd.f32 %v261_v42, %v53_v40 }
 0x104   :  { %v263_v44 = vpop.f32.mrf.mxu0 }
 0x105   :  { %268 = vst [vmem:[#allocation2] sm:$0x3f] %v262_v43  ;;  %v264_v45 = vadd.f32 %v263_v44, %v57_v41 }
 0x106   :  { %v265_v46 = vpop.f32.mrf.mxu0 }
 0x107   :  { %269 = vst [vmem:[#allocation2 + $0x8] sm:$0x3f] %v264_v45 }
 0x108   :  { %v266_v47 = vpop.f32.mrf.mxu0 }
 0x109   :  { %380 = shalt.err (!%p377_p4)
}
 0x10a   :  { %279 = dma.vmem_to_hbm [thread:$0]  %s277_s25, 256, %s520_s3, [#allocation3]  }
 0x10b   :  { %389 = dma.done.wait [#allocation3], 256  }
 0x10c   :  { %390 = vsyncadd [#allocation3], 4294967040 }
 0x10d   :  { %283 = vsyncpa [#allocation3], 1 }

// kernel: forward.5
= control target key start
LH: loop header
LB: loop body
LE: loop exit
PB: predicated region body
PF: predicated region fallthrough
CT: control target
= control target key end

     0   :  { %v1309_v0 = vmov 0.0   ;;  %vm1310_vm0 = vmmov 0   ;;  %vm207_vm1 = vcmask 1042432   ;;  %vm197_vm2 = vcmask 48128   ;;  %s1646_s4 = inlined_call_operand.vmem [shape: bf16[128,128], index: 4, kind: input, shape index: {}]   ;;  %s1647_s1 = inlined_call_operand.vmem [shape: f32[6,128], index: 1, kind: input, shape index: {}]   ;;  %s1648_s2 = inlined_call_operand.vmem [shape: bf16[48,6], index: 2, kind: input, shape index: {}]   ;;  %s1649_s3 = inlined_call_operand.vmem [shape: bf16[128,128], index: 3, kind: input, shape index: {}]   ;;  %s1650_s0 = inlined_call_operand.vmem [shape: bf16[48,128], index: 0, kind: input, shape index: {}]   ;;  %s1651_s5 = inlined_call_operand.vmem [shape: f32[1,128], index: 5, kind: input, shape index: {}]   ;;  %s1652_s6 = inlined_call_operand.vmem [shape: f32[1,128], index: 6, kind: input, shape index: {}]   ;;  %s1653_s7 = inlined_call_operand.vmem [shape: bf16[128,128], index: 7, kind: input, shape index: {}]   ;;  %s1654_s9 = inlined_call_operand.vmem [shape: bf16[128,128], index: 9, kind: input, shape index: {}]   ;;  %s1655_s11 = inlined_call_operand.vmem [shape: bf16[128,256], index: 11, kind: input, shape index: {}]   ;;  %s1656_s8 = inlined_call_operand.vmem [shape: f32[1,128], index: 8, kind: input, shape index: {}]   ;;  %s1657_s10 = inlined_call_operand.vmem [shape: f32[1,128], index: 10, kind: input, shape index: {}]   ;;  %s1658_s13 = inlined_call_operand.vmem [shape: f32[6,128], index: 13, kind: output, shape index: {0}]   ;;  %s1659_s12 = inlined_call_operand.vmem [shape: f32[1,256], index: 12, kind: input, shape index: {}]   ;;  %s1660_s14 = inlined_call_operand.vmem [shape: bf16[6,256], index: 14, kind: output, shape index: {1}]  }
   0x1   :  { %1115 = vmatprep.subr.bf16.mxu0 %v1309_v0  ;;  %v1220_v1 = vld [vmem:[%s1646_s4 + $0x38] sm:$0xff]   ;;  %1131 = vmatprep.mubr.msk.bf16.mxu0 %vm1310_vm0, %v1309_v0  ;;  %v1221_v2 = vld [vmem:[%s1646_s4 + $0x30] sm:$0xff]   ;;  %v1222_v3 = vld [vmem:[%s1646_s4 + $0x28] sm:$0xff]   ;;  %vm738_vm3 = vcmask 1041409   ;;  %vm740_vm4 = vcmask 1042434   ;;  %vm742_vm5 = vcmask 1043459  }
   0x2   :  { %1135 = vmatprep.subr.bf16.mxu1 %v1309_v0  ;;  %1137 = vmatprep.mubr.msk.bf16.mxu1 %vm1310_vm0, %v1309_v0  ;;  %v1223_v4 = vld [vmem:[%s1646_s4 + $0x20] sm:$0xff]   ;;  %v1224_v5 = vld [vmem:[%s1646_s4 + $0x18] sm:$0xff]   ;;  %v1225_v6 = vld [vmem:[%s1646_s4 + $0x10] sm:$0xff]   ;;  %vm744_vm6 = vcmask 1044484   ;;  %vm746_vm7 = vcmask 1045509  }
   0x3   :  { %1116 = vmatpush3.bf16.msra.mxu0 %v1220_v1  ;;  %v1226_v7 = vld [vmem:[%s1646_s4 + $0x8] sm:$0xff]   ;;  %v1227_v8 = vld [vmem:[%s1646_s4] sm:$0xff]   ;;  %v1229_v17 = vld [vmem:[%s1649_s3 + $0x38] sm:$0xff]  }
   0x4   :  { %1117 = vmatprep.subr.bf16.mxu0 %v1309_v0  ;;  %v53_v9 = vld [vmem:[%s1647_s1] sm:$0x3f]  ;;  %v1230_v19 = vld [vmem:[%s1649_s3 + $0x30] sm:$0xff]   ;;  %v1232_v20 = vld [vmem:[%s1648_s2 + $0x8] sm:$0xff]  }
   0x5   :  { %v1427_v10 = vpack.c.bf16 %v53_v9, %v53_v9  ;;  %v1228_v15 = vld [vmem:[%s1648_s2] sm:$0xff]   ;;  %v1231_v21 = vld [vmem:[%s1649_s3 + $0x28] sm:$0xff]   ;;  %v1235_v23 = vld [vmem:[%s1648_s2 + $0x10] sm:$0xff]  }
   0x6   :  { %v1233_v22 = vld [vmem:[%s1649_s3 + $0x20] sm:$0xff]   ;;  %v1234_v24 = vld [vmem:[%s1649_s3 + $0x18] sm:$0xff]   ;;  %v1236_v25 = vld [vmem:[%s1649_s3 + $0x10] sm:$0xff]  }
   0x7   :  { %1118 = vmatpush3.bf16.msra.mxu0 %v1221_v2  ;;  %v1237_v26 = vld [vmem:[%s1649_s3 + $0x8] sm:$0xff]   ;;  %v1238_v27 = vld [vmem:[%s1649_s3] sm:$0xff]   ;;  %v1503_v30 = vld [vmem:[%s1650_s0 + $0x10] sm:$0xff]  }
   0x8   :  { %1119 = vmatprep.subr.bf16.mxu0 %v1309_v0  ;;  %v1485_v28 = vld [vmem:[%s1650_s0] sm:$0xff]   ;;  %v1495_v29 = vld [vmem:[%s1650_s0 + $0x8] sm:$0xff]  }
   0x9   :  { %v1035_v44 = vld [vmem:[%s1651_s5] ss:$0 sm:$0xff] }
   0xa   :  { %v1036_v49 = vld [vmem:[%s1652_s6] ss:$0 sm:$0xff] }
   0xb   :  { %1120 = vmatpush3.bf16.msra.mxu0 %v1222_v3 }
   0xc   :  { %1121 = vmatprep.subr.bf16.mxu0 %v1309_v0 }
   0xf   :  { %1122 = vmatpush3.bf16.msra.mxu0 %v1223_v4 }
  0x10   :  { %1123 = vmatprep.subr.bf16.mxu0 %v1309_v0 }
  0x13   :  { %1124 = vmatpush3.bf16.msra.mxu0 %v1224_v5 }
  0x14   :  { %1125 = vmatprep.subr.bf16.mxu0 %v1309_v0 }
  0x17   :  { %1126 = vmatpush3.bf16.msra.mxu0 %v1225_v6 }
  0x18   :  { %1127 = vmatprep.subr.bf16.mxu0 %v1309_v0 }
  0x1b   :  { %1128 = vmatpush3.bf16.msra.mxu0 %v1226_v7 }
  0x1c   :  { %1129 = vmatprep.subr.bf16.mxu0 %v1309_v0 }
  0x1f   :  { %1130 = vmatpush3.bf16.msra.mxu0 %v1227_v8 }
  0x20   :  { %1177 = vmatprep.subr.bf16.mxu0 %v1309_v0 }
  0x22   :  { %1132 = vmatmul.mubr.bf16.vlgmr.msra.gmra.mxu0 %v1427_v10 }
  0x23   :  { %1193 = vmatprep.mubr.msk.bf16.mxu0 %vm1310_vm0, %v1309_v0 }
  0xe2   :  { %v169_v11 = vpop.f32.mrf.mxu0 }
  0xe3   :  { %v181_v12 = vpack.c.bf16 %v169_v11, %v169_v11 }
  0xe4   :  { %v1133_v13 = vpop.f32.mrf.mxu0 }
  0xe5   :  { %v209_v14 = vsel %vm207_vm1, %v181_v12, 0 }
  0xe6   :  { %v172_v16 = vpop.f32.mrf.mxu0  ;;  %1136 = vmatpush3.bf16.msra.mxu1 %v209_v14 }
  0xe7   :  { %1149 = vmatprep.subr.bf16.mxu1 %v1309_v0 }
  0xe8   :  { %v1134_v18 = vpop.f32.mrf.mxu0 }
  0xe9   :  { %1138 = vmatmul.mubr.msk.bf16.vlgmr.msra.gmra.mxu1 %vm197_vm2, %v1228_v15 }
  0xea   :  { %1150 = vmatpush3.bf16.msra.mxu1 %v1229_v17  ;;  %1141 = vmatprep.mubr.msk.bf16.mxu1 %vm1310_vm0, %v1309_v0 }
  0xeb   :  { %1151 = vmatprep.subr.bf16.mxu1 %v1309_v0 }
  0xee   :  { %1152 = vmatpush3.bf16.msra.mxu1 %v1230_v19  ;;  %v1242_v19 = vld [vmem:[%s1653_s7 + $0x38] sm:$0xff]  }
  0xef   :  { %1153 = vmatprep.subr.bf16.mxu1 %v1309_v0  ;;  %1178 = vmatpush3.bf16.msra.mxu0 %v1242_v19 }
  0xf0   :  { %1179 = vmatprep.subr.bf16.mxu0 %v1309_v0 }
  0xf1   :  { %1142 = vmatmul.mubr.msk.bf16.gmra.mxu1 %vm197_vm2, %v1232_v20  ;;  %v1243_v20 = vld [vmem:[%s1653_s7 + $0x30] sm:$0xff]  }
  0xf2   :  { %1154 = vmatpush3.bf16.msra.mxu1 %v1231_v21  ;;  %1145 = vmatprep.mubr.msk.bf16.mxu1 %vm1310_vm0, %v1309_v0  ;;  %v1244_v21 = vld [vmem:[%s1654_s9 + $0x38] sm:$0xff]  }
  0xf3   :  { %1155 = vmatprep.subr.bf16.mxu1 %v1309_v0  ;;  %1180 = vmatpush3.bf16.msra.mxu0 %v1243_v20 }
  0xf4   :  { %1181 = vmatprep.subr.bf16.mxu0 %v1309_v0 }
  0xf6   :  { %1156 = vmatpush3.bf16.msra.mxu1 %v1233_v22  ;;  %v1246_v22 = vld [vmem:[%s1654_s9 + $0x30] sm:$0xff]  }
  0xf7   :  { %1157 = vmatprep.subr.bf16.mxu1 %v1309_v0 }
  0xf9   :  { %1146 = vmatmul.mubr.msk.bf16.gmra.mxu1 %vm197_vm2, %v1235_v23  ;;  %v1245_v23 = vld [vmem:[%s1653_s7 + $0x28] sm:$0xff]  }
  0xfa   :  { %1158 = vmatpush3.bf16.msra.mxu1 %v1234_v24  ;;  %1165 = vmatprep.mubr.msk.bf16.mxu1 %vm1310_vm0, %v1309_v0  ;;  %v1248_v24 = vld [vmem:[%s1654_s9 + $0x28] sm:$0xff]  }
  0xfb   :  { %1159 = vmatprep.subr.bf16.mxu1 %v1309_v0  ;;  %1182 = vmatpush3.bf16.msra.mxu0 %v1245_v23 }
  0xfc   :  { %1183 = vmatprep.subr.bf16.mxu0 %v1309_v0 }
  0xfe   :  { %1160 = vmatpush3.bf16.msra.mxu1 %v1236_v25  ;;  %v1247_v25 = vld [vmem:[%s1653_s7 + $0x20] sm:$0xff]  }
  0xff   :  { %1161 = vmatprep.subr.bf16.mxu1 %v1309_v0  ;;  %1184 = vmatpush3.bf16.msra.mxu0 %v1247_v25 }
 0x100   :  { %1185 = vmatprep.subr.bf16.mxu0 %v1309_v0 }
 0x102   :  { %1162 = vmatpush3.bf16.msra.mxu1 %v1237_v26  ;;  %v1250_v26 = vld [vmem:[%s1654_s9 + $0x20] sm:$0xff]  }
 0x103   :  { %1163 = vmatprep.subr.bf16.mxu1 %v1309_v0 }
 0x106   :  { %1164 = vmatpush3.bf16.msra.mxu1 %v1238_v27  ;;  %v1249_v27 = vld [vmem:[%s1653_s7 + $0x18] sm:$0xff]  }
 0x107   :  { %1197 = vmatprep.subr.bf16.mxu1 %v1309_v0  ;;  %1186 = vmatpush3.bf16.msra.mxu0 %v1249_v27 }
 0x108   :  { %1187 = vmatprep.subr.bf16.mxu0 %v1309_v0 }
 0x109   :  { %1166 = vmatmul.mubr.bf16.vlgmr.msra.gmra.mxu1 %v1485_v28 }
 0x10a   :  { %1169 = vmatprep.mubr.msk.bf16.mxu1 %vm1310_vm0, %v1309_v0  ;;  %1198 = vmatpush3.bf16.msra.mxu1 %v1244_v21 }
 0x10b   :  { %1199 = vmatprep.subr.bf16.mxu1 %v1309_v0 }
 0x10e   :  { %1200 = vmatpush3.bf16.msra.mxu1 %v1246_v22 }
 0x10f   :  { %1201 = vmatprep.subr.bf16.mxu1 %v1309_v0 }
 0x111   :  { %1170 = vmatmul.mubr.bf16.gmra.mxu1 %v1495_v29 }
 0x112   :  { %1173 = vmatprep.mubr.msk.bf16.mxu1 %vm1310_vm0, %v1309_v0  ;;  %1202 = vmatpush3.bf16.msra.mxu1 %v1248_v24 }
 0x113   :  { %1203 = vmatprep.subr.bf16.mxu1 %v1309_v0 }
 0x116   :  { %1204 = vmatpush3.bf16.msra.mxu1 %v1250_v26 }
 0x117   :  { %1205 = vmatprep.subr.bf16.mxu1 %v1309_v0 }
 0x119   :  { %1174 = vmatmul.mubr.bf16.gmra.mxu1 %v1503_v30 }
 0x11a   :  { %1213 = vmatprep.mubr.msk.bf16.mxu1 %vm1310_vm0, %v1309_v0 }
 0x1a9   :  { %v245_v31 = vpop.f32.mrf.mxu1 }
 0x1ab   :  { %v1139_v32 = vpop.f32.mrf.mxu1 }
 0x1ac   :  { %v1251_v32 = vld [vmem:[%s1653_s7 + $0x10] sm:$0xff]  }
 0x1ad   :  { %v248_v33 = vpop.f32.mrf.mxu1  ;;  %1188 = vmatpush3.bf16.msra.mxu0 %v1251_v32 }
 0x1ae   :  { %1189 = vmatprep.subr.bf16.mxu0 %v1309_v0 }
 0x1af   :  { %v1140_v34 = vpop.f32.mrf.mxu1 }
 0x1b0   :  { %v1253_v34 = vld [vmem:[%s1653_s7 + $0x8] sm:$0xff]  }
 0x1b1   :  { %v253_v35 = vpop.f32.mrf.mxu1  ;;  %1190 = vmatpush3.bf16.msra.mxu0 %v1253_v34 }
 0x1b2   :  { %1191 = vmatprep.subr.bf16.mxu0 %v1309_v0 }
 0x1b3   :  { %v1143_v36 = vpop.f32.mrf.mxu1 }
 0x1b4   :  { %v1255_v36 = vld [vmem:[%s1653_s7] sm:$0xff]  }
 0x1b5   :  { %v256_v37 = vpop.f32.mrf.mxu1  ;;  %1192 = vmatpush3.bf16.msra.mxu0 %v1255_v36 }
 0x1b7   :  { %v1144_v38 = vpop.f32.mrf.mxu1 }
 0x1b8   :  { %1194 = vmatmul.mubr.bf16.vlgmr.msra.gmra.mxu0 %v1427_v10  ;;  %v1258_v38 = vld [vmem:[%s1655_s11 + $0x70] ss:$8 sps:$4 sm:$0xff]   ;;  %v1266_v10 = vld [vmem:[%s1655_s11 + $0x54] ss:$8 sps:$4 sm:$0xff]  }
 0x1b9   :  { %v261_v39 = vpop.f32.mrf.mxu1 }
 0x1bb   :  { %v1147_v40 = vpop.f32.mrf.mxu1 }
 0x1bc   :  { %v1263_v40 = vld [vmem:[%s1655_s11 + $0x64] ss:$8 sps:$4 sm:$0xff]  }
 0x1bd   :  { %v264_v41 = vpop.f32.mrf.mxu1 }
 0x1bf   :  { %v1148_v42 = vpop.f32.mrf.mxu1 }
 0x1c0   :  { %v1269_v42 = vld [vmem:[%s1655_s11 + $0x44] ss:$8 sps:$4 sm:$0xff]  }
 0x1c9   :  { %v368_v43 = vpop.f32.mrf.mxu1 }
 0x1ca   :  { %v369_v45 = vadd.f32 %v368_v43, %v245_v31  ;;  %v1252_v31 = vld [vmem:[%s1654_s9 + $0x18] sm:$0xff]   ;;  %v1267_v43 = vld [vmem:[%s1655_s11 + $0x40] ss:$8 sps:$4 sm:$0xff]  }
 0x1cb   :  { %v1167_v46 = vpop.f32.mrf.mxu1  ;;  %1206 = vmatpush3.bf16.msra.mxu1 %v1252_v31 }
 0x1cc   :  { %v398_v47 = vadd.f32 %v1035_v44, %v369_v45  ;;  %1207 = vmatprep.subr.bf16.mxu1 %v1309_v0  ;;  %v1270_v45 = vld [vmem:[%s1655_s11 + $0x30] ss:$8 sps:$4 sm:$0xff]  }
 0x1cd   :  { %v371_v48 = vpop.f32.mrf.mxu1 }
 0x1ce   :  { %v372_v50 = vadd.f32 %v371_v48, %v248_v33  ;;  %v404_v51 = vmax.f32 %v398_v47, 0.0  ;;  %v1254_v33 = vld [vmem:[%s1654_s9 + $0x10] sm:$0xff]  }
 0x1cf   :  { %v1168_v52 = vpop.f32.mrf.mxu1  ;;  %1208 = vmatpush3.bf16.msra.mxu1 %v1254_v33 }
 0x1d0   :  { %v399_v53 = vadd.f32 %v1035_v44, %v372_v50  ;;  %v417_v54 = vmul.f32 %v1036_v49, %v404_v51  ;;  %1209 = vmatprep.subr.bf16.mxu1 %v1309_v0 }
 0x1d1   :  { %v376_v55 = vpop.f32.mrf.mxu1 }
 0x1d2   :  { %v405_v56 = vmax.f32 %v399_v53, 0.0  ;;  %v377_v57 = vadd.f32 %v376_v55, %v253_v35  ;;  %423 = vadd.xlane.f32.xlu0 %v417_v54  ;;  %v1256_v35 = vld [vmem:[%s1654_s9 + $0x8] sm:$0xff]  }
 0x1d3   :  { %v1171_v58 = vpop.f32.mrf.mxu1  ;;  %1210 = vmatpush3.bf16.msra.mxu1 %v1256_v35 }
 0x1d4   :  { %v418_v59 = vmul.f32 %v1036_v49, %v405_v56  ;;  %v400_v60 = vadd.f32 %v1035_v44, %v377_v57  ;;  %1211 = vmatprep.subr.bf16.mxu1 %v1309_v0  ;;  %v1261_v0 = vld [vmem:[%s1655_s11 + $0x60] ss:$8 sps:$4 sm:$0xff]  }
 0x1d5   :  { %v379_v61 = vpop.f32.mrf.mxu1 }
 0x1d6   :  { %v380_v62 = vadd.f32 %v379_v61, %v256_v37  ;;  %425 = vadd.xlane.f32.xlu0 %v418_v59  ;;  %v406_v63 = vmax.f32 %v400_v60, 0.0  ;;  %v1257_v37 = vld [vmem:[%s1654_s9] sm:$0xff]  }
 0x1d7   :  { %v1172_v1 = vpop.f32.mrf.mxu1  ;;  %1212 = vmatpush3.bf16.msra.mxu1 %v1257_v37 }
 0x1d8   :  { %v401_v2 = vadd.f32 %v1035_v44, %v380_v62  ;;  %v419_v3 = vmul.f32 %v1036_v49, %v406_v63 }
 0x1d9   :  { %v384_v4 = vpop.f32.mrf.mxu1 }
 0x1da   :  { %v407_v5 = vmax.f32 %v401_v2, 0.0  ;;  %v385_v6 = vadd.f32 %v384_v4, %v261_v39  ;;  %427 = vadd.xlane.f32.xlu1 %v419_v3  ;;  %v1260_v39 = vld [vmem:[%s1655_s11 + $0x74] ss:$8 sps:$4 sm:$0xff]  }
 0x1db   :  { %v1175_v7 = vpop.f32.mrf.mxu1  ;;  %950 = vmatprep.subr.bf16.mxu0 %v1260_v39 }
 0x1dc   :  { %v402_v8 = vadd.f32 %v1035_v44, %v385_v6  ;;  %v420_v9 = vmul.f32 %v1036_v49, %v407_v5  ;;  %951 = vmatpush1.bf16.msra.mxu0 %v1258_v38 }
 0x1dd   :  { %v387_v11 = vpop.f32.mrf.mxu1  ;;  %952 = vmatprep.subr.bf16.mxu0 %v1263_v40 }
 0x1de   :  { %v408_v12 = vmax.f32 %v402_v8, 0.0  ;;  %v388_v13 = vadd.f32 %v387_v11, %v264_v41  ;;  %429 = vadd.xlane.f32.xlu1 %v420_v9  ;;  %v1264_v41 = vld [vmem:[%s1655_s11 + $0x50] ss:$8 sps:$4 sm:$0xff]  }
 0x1df   :  { %v1176_v14 = vpop.f32.mrf.mxu1 }
 0x1e0   :  { %v403_v15 = vadd.f32 %v1035_v44, %v388_v13  ;;  %v421_v16 = vmul.f32 %v1036_v49, %v408_v12  ;;  %953 = vmatpush1.bf16.msra.mxu0 %v1261_v0  ;;  %v1272_v44 = vld [vmem:[%s1655_s11 + $0x34] ss:$8 sps:$4 sm:$0xff]  }
 0x1e1   :  { %954 = vmatprep.subr.bf16.mxu0 %v1266_v10 }
 0x1e2   :  { %v409_v17 = vmax.f32 %v403_v15, 0.0  ;;  %431 = vadd.xlane.f32.xlu0 %v421_v16 }
 0x1e4   :  { %v422_v18 = vmul.f32 %v1036_v49, %v409_v17  ;;  %955 = vmatpush1.bf16.msra.mxu0 %v1264_v41 }
 0x1e5   :  { %956 = vmatprep.subr.bf16.mxu0 %v1269_v42  ;;  %v1273_v42 = vld [vmem:[%s1655_s11 + $0x20] ss:$8 sps:$4 sm:$0xff]  }
 0x1e6   :  { %433 = vadd.xlane.f32.xlu1 %v422_v18 }
 0x1e8   :  { %957 = vmatpush1.bf16.msra.mxu0 %v1267_v43  ;;  %v1275_v43 = vld [vmem:[%s1655_s11 + $0x24] ss:$8 sps:$4 sm:$0xff]  }
 0x1e9   :  { %958 = vmatprep.subr.bf16.mxu0 %v1272_v44 }
 0x1ec   :  { %959 = vmatpush1.bf16.msra.mxu0 %v1270_v45 }
 0x1ed   :  { %960 = vmatprep.subr.bf16.mxu0 %v1275_v43 }
 0x1f0   :  { %961 = vmatpush1.bf16.msra.mxu0 %v1273_v42 }
 0x25b   :  { %v424_v46 = vpop.xlane.xlu0 %423 }
 0x25c   :  { %v435_v47 = vrot.slane %v424_v46, 4 }
 0x25e   :  { %v436_v48 = vmax.f32 %v424_v46, %v435_v47 }
 0x25f   :  { %v426_v49 = vpop.xlane.xlu0 %425 }
 0x260   :  { %v437_v50 = vrot.slane %v436_v48, 2  ;;  %v441_v51 = vrot.slane %v426_v49, 4 }
 0x262   :  { %v438_v52 = vmax.f32 %v436_v48, %v437_v50  ;;  %v442_v53 = vmax.f32 %v426_v49, %v441_v51 }
 0x263   :  { %v428_v54 = vpop.xlane.xlu1 %427 }
 0x264   :  { %v439_v55 = vrot.slane %v438_v52, 1  ;;  %v443_v56 = vrot.slane %v442_v53, 2  ;;  %v447_v57 = vrot.slane %v428_v54, 4 }
 0x266   :  { %v440_v58 = vmax.f32 %v438_v52, %v439_v55  ;;  %v444_v59 = vmax.f32 %v442_v53, %v443_v56  ;;  %v448_v60 = vmax.f32 %v428_v54, %v447_v57 }
 0x267   :  { %v430_v61 = vpop.xlane.xlu1 %429 }
 0x268   :  { %v471_v62 = vsub.f32 %v424_v46, %v440_v58  ;;  %v445_v63 = vrot.slane %v444_v59, 1  ;;  %v449_v1 = vrot.slane %v448_v60, 2  ;;  %v453_v2 = vrot.slane %v430_v61, 4 }
 0x26a   :  { %v477_v3 = vmul.f32 1.442695, %v471_v62  ;;  %v446_v4 = vmax.f32 %v444_v59, %v445_v63  ;;  %v450_v5 = vmax.f32 %v448_v60, %v449_v1  ;;  %v454_v6 = vmax.f32 %v430_v61, %v453_v2 }
 0x26b   :  { %v432_v7 = vpop.xlane.xlu0 %431 }
 0x26c   :  { %1285 = vpow2.f32 %v477_v3  ;;  %v472_v8 = vsub.f32 %v426_v49, %v446_v4  ;;  %v451_v9 = vrot.slane %v450_v5, 1  ;;  %v455_v11 = vrot.slane %v454_v6, 2 }
 0x26d   :  { %v459_v12 = vrot.slane %v432_v7, 4 }
 0x26e   :  { %v479_v13 = vmul.f32 1.442695, %v472_v8  ;;  %v452_v14 = vmax.f32 %v450_v5, %v451_v9  ;;  %v456_v15 = vmax.f32 %v454_v6, %v455_v11 }
 0x26f   :  { %v460_v16 = vmax.f32 %v432_v7, %v459_v12  ;;  %v434_v17 = vpop.xlane.xlu1 %433 }
 0x270   :  { %1287 = vpow2.f32 %v479_v13  ;;  %v473_v18 = vsub.f32 %v428_v54, %v452_v14  ;;  %v457_v19 = vrot.slane %v456_v15, 1  ;;  %v465_v20 = vrot.slane %v434_v17, 4 }
 0x271   :  { %v461_v21 = vrot.slane %v460_v16, 2 }
 0x272   :  { %v481_v22 = vmul.f32 1.442695, %v473_v18  ;;  %v458_v23 = vmax.f32 %v456_v15, %v457_v19  ;;  %v466_v24 = vmax.f32 %v434_v17, %v465_v20  ;;  %v537_v15 = vunpack.c.l.bf16 %v1485_v28 }
 0x273   :  { %v462_v25 = vmax.f32 %v460_v16, %v461_v21 }
 0x274   :  { %1289 = vpow2.f32 %v481_v22  ;;  %v474_v26 = vsub.f32 %v430_v61, %v458_v23  ;;  %v467_v27 = vrot.slane %v466_v24, 2  ;;  %v538_v22 = vunpack.c.h.bf16 %v1485_v28 }
 0x275   :  { %v463_v31 = vrot.slane %v462_v25, 1 }
 0x276   :  { %v483_v32 = vmul.f32 1.442695, %v474_v26  ;;  %v468_v33 = vmax.f32 %v466_v24, %v467_v27 }
 0x277   :  { %v464_v34 = vmax.f32 %v462_v25, %v463_v31 }
 0x278   :  { %1291 = vpow2.f32 %v483_v32  ;;  %v469_v35 = vrot.slane %v468_v33, 1  ;;  %v539_v32 = vunpack.c.l.bf16 %v1495_v29 }
 0x279   :  { %v1286_v36 = vpop.eup %1285  ;;  %v475_v37 = vsub.f32 %v432_v7, %v464_v34 }
 0x27a   :  { %v489_v38 = vrot.slane %v1286_v36, 4  ;;  %v470_v39 = vmax.f32 %v468_v33, %v469_v35 }
 0x27b   :  { %v485_v40 = vmul.f32 1.442695, %v475_v37 }
 0x27c   :  { %v490_v0 = vadd.f32 %v1286_v36, %v489_v38  ;;  %v476_v10 = vsub.f32 %v434_v17, %v470_v39 }
 0x27d   :  { %v1288_v41 = vpop.eup %1287  ;;  %1293 = vpow2.f32 %v485_v40 }
 0x27e   :  { %v491_v44 = vrot.slane %v490_v0, 2  ;;  %v495_v45 = vrot.slane %v1288_v41, 4  ;;  %v487_v46 = vmul.f32 1.442695, %v476_v10 }
 0x280   :  { %v492_v47 = vadd.f32 %v491_v44, %v490_v0  ;;  %v496_v48 = vadd.f32 %v1288_v41, %v495_v45  ;;  %1295 = vpow2.f32 %v487_v46 }
 0x281   :  { %v1290_v49 = vpop.eup %1289 }
 0x282   :  { %v493_v50 = vrot.slane %v492_v47, 1  ;;  %v497_v51 = vrot.slane %v496_v48, 2  ;;  %v501_v52 = vrot.slane %v1290_v49, 4 }
 0x284   :  { %v494_v53 = vadd.f32 %v493_v50, %v492_v47  ;;  %v498_v54 = vadd.f32 %v497_v51, %v496_v48  ;;  %v502_v55 = vadd.f32 %v1290_v49, %v501_v52  ;;  %v541_v48 = vunpack.c.l.bf16 %v1503_v30 }
 0x285   :  { %v1292_v56 = vpop.eup %1291 }
 0x286   :  { %1297 = vrcp.f32 %v494_v53  ;;  %v499_v57 = vrot.slane %v498_v54, 1  ;;  %v503_v58 = vrot.slane %v502_v55, 2  ;;  %v507_v59 = vrot.slane %v1292_v56, 4 }
 0x288   :  { %v500_v60 = vadd.f32 %v499_v57, %v498_v54  ;;  %v504_v61 = vadd.f32 %v503_v58, %v502_v55  ;;  %v508_v62 = vadd.f32 %v1292_v56, %v507_v59 }
 0x28a   :  { %v1294_v63 = vpop.eup %1293  ;;  %1299 = vrcp.f32 %v500_v60  ;;  %v505_v1 = vrot.slane %v504_v61, 1  ;;  %v509_v2 = vrot.slane %v508_v62, 2 }
 0x28b   :  { %v513_v3 = vrot.slane %v1294_v63, 4 }
 0x28c   :  { %v506_v4 = vadd.f32 %v505_v1, %v504_v61  ;;  %v510_v5 = vadd.f32 %v509_v2, %v508_v62 }
 0x28d   :  { %v1296_v6 = vpop.eup %1295  ;;  %v514_v7 = vadd.f32 %v1294_v63, %v513_v3 }
 0x28e   :  { %1301 = vrcp.f32 %v506_v4  ;;  %v511_v8 = vrot.slane %v510_v5, 1  ;;  %v519_v9 = vrot.slane %v1296_v6, 4 }
 0x28f   :  { %v515_v11 = vrot.slane %v514_v7, 2 }
 0x290   :  { %v512_v12 = vadd.f32 %v511_v8, %v510_v5  ;;  %v520_v13 = vadd.f32 %v1296_v6, %v519_v9 }
 0x291   :  { %v516_v14 = vadd.f32 %v515_v11, %v514_v7 }
 0x292   :  { %1303 = vrcp.f32 %v512_v12  ;;  %v521_v16 = vrot.slane %v520_v13, 2 }
 0x293   :  { %v1298_v17 = vpop.eup %1297  ;;  %v517_v18 = vrot.slane %v516_v14, 1 }
 0x294   :  { %v522_v19 = vadd.f32 %v521_v16, %v520_v13  ;;  %v531_v20 = vmul.f32 %v1298_v17, %v1286_v36  ;;  %v540_v36 = vunpack.c.h.bf16 %v1495_v29  ;;  %v542_v29 = vunpack.c.h.bf16 %v1503_v30 }
 0x295   :  { %v518_v21 = vadd.f32 %v517_v18, %v516_v14 }
 0x296   :  { %v523_v23 = vrot.slane %v522_v19, 1  ;;  %v543_v24 = vmul.f32 %v537_v15, %v531_v20 }
 0x297   :  { %v1300_v25 = vpop.eup %1299  ;;  %1305 = vrcp.f32 %v518_v21 }
 0x298   :  { %v524_v26 = vadd.f32 %v523_v23, %v522_v19  ;;  %v532_v27 = vmul.f32 %v1300_v25, %v1288_v41  ;;  %v549_v31 = vrot.slane %v543_v24, 4 }
 0x29a   :  { %1307 = vrcp.f32 %v524_v26  ;;  %v544_v33 = vmul.f32 %v538_v22, %v532_v27  ;;  %v550_v34 = vadd.f32 %v549_v31, %v543_v24 }
 0x29b   :  { %v1302_v35 = vpop.eup %1301 }
 0x29c   :  { %v533_v37 = vmul.f32 %v1302_v35, %v1290_v49  ;;  %v551_v38 = vrot.slane %v550_v34, 2  ;;  %v555_v39 = vrot.slane %v544_v33, 4 }
 0x29e   :  { %v545_v40 = vmul.f32 %v539_v32, %v533_v37  ;;  %v552_v28 = vadd.f32 %v551_v38, %v550_v34  ;;  %v556_v0 = vadd.f32 %v555_v39, %v544_v33  ;;  %v690_v39 = vpop.f32.mrf.mxu0 }
 0x29f   :  { %v1304_v10 = vpop.eup %1303 }
 0x2a0   :  { %v534_v42 = vmul.f32 %v1304_v10, %v1292_v56  ;;  %v557_v43 = vrot.slane %v556_v0, 2  ;;  %v561_v44 = vrot.slane %v545_v40, 4  ;;  %v553_v41 = vrot.slane %v552_v28, 1  ;;  %v1276_v10 = vld [vmem:[%s1655_s11 + $0x10] ss:$8 sps:$4 sm:$0xff]  }
 0x2a2   :  { %v546_v45 = vmul.f32 %v540_v36, %v534_v42  ;;  %v558_v46 = vadd.f32 %v557_v43, %v556_v0  ;;  %v562_v47 = vadd.f32 %v561_v44, %v545_v40  ;;  %v554_v54 = vadd.f32 %v553_v41, %v552_v28  ;;  %v1195_v36 = vpop.f32.mrf.mxu0  ;;  %v1278_v28 = vld [vmem:[%s1655_s11 + $0x14] ss:$8 sps:$4 sm:$0xff]   ;;  %v1281_v42 = vld [vmem:[%s1655_s11 + $0x4] ss:$8 sps:$4 sm:$0xff]   ;;  %v1279_v43 = vld [vmem:[%s1655_s11] ss:$8 sps:$4 sm:$0xff]  }
 0x2a3   :  { %962 = vmatprep.subr.bf16.mxu0 %v1278_v28  ;;  %v1311_v44 = vmov 0   ;;  %v1037_v41 = vld [vmem:[%s1656_s8] ss:$0 sm:$0xff] }
 0x2a4   :  { %v1306_v50 = vpop.eup %1305  ;;  %v559_v51 = vrot.slane %v558_v46, 1  ;;  %v563_v49 = vrot.slane %v562_v47, 2  ;;  %v567_v52 = vrot.slane %v546_v45, 4  ;;  %v697_v3 = vpack.c.bf16 %v554_v54, %v554_v54  ;;  %v693_v40 = vpop.f32.mrf.mxu0  ;;  %963 = vmatpush1.bf16.msra.mxu0 %v1276_v10  ;;  %982 = vmatprep.mubr.bf16.mxu0 %v1311_v44 }
 0x2a5   :  { %v535_v53 = vmul.f32 %v1306_v50, %v1294_v63  ;;  %964 = vmatprep.subr.bf16.mxu0 %v1281_v42 }
 0x2a6   :  { %v560_v55 = vadd.f32 %v559_v51, %v558_v46  ;;  %v564_v57 = vadd.f32 %v563_v49, %v562_v47  ;;  %v568_v58 = vadd.f32 %v567_v52, %v546_v45  ;;  %v732_v13 = vunpack.c.l.b16 %v697_v3  ;;  %v1196_v0 = vpop.f32.mrf.mxu0  ;;  %v1046_v46 = vld [vmem:[%s1657_s10] ss:$0 sm:$0xff] }
 0x2a7   :  { %v1308_v56 = vpop.eup %1307  ;;  %v547_v59 = vmul.f32 %v541_v48, %v535_v53  ;;  %v691_v45 = vadd.f32 %v1037_v41, %v690_v39 }
 0x2a8   :  { %v536_v60 = vmul.f32 %v1308_v56, %v1296_v6  ;;  %v565_v61 = vrot.slane %v564_v57, 1  ;;  %v569_v62 = vrot.slane %v568_v58, 2  ;;  %v698_v1 = vpack.c.bf16 %v560_v55, %v560_v55  ;;  %965 = vmatpush1.bf16.msra.mxu0 %v1279_v43  ;;  %v858_v56 = vld [vmem:[%s1659_s12] sm:$0x3] }
 0x2a9   :  { %v573_v2 = vrot.slane %v547_v59, 4  ;;  %v696_v48 = vmax.f32 %v691_v45, 0.0  ;;  %v860_v55 = vlaneseq }
 0x2aa   :  { %v548_v4 = vmul.f32 %v542_v29, %v536_v60  ;;  %v566_v5 = vadd.f32 %v565_v61, %v564_v57  ;;  %v570_v7 = vadd.f32 %v569_v62, %v568_v58  ;;  %v733_v9 = vunpack.c.l.b16 %v698_v1 }
 0x2ab   :  { %v574_v8 = vadd.f32 %v573_v2, %v547_v59  ;;  %v861_v57 = vshrl.u32 %v860_v55, 7 }
 0x2ac   :  { %v571_v63 = vrot.slane %v570_v7, 1  ;;  %v579_v11 = vrot.slane %v548_v4, 4  ;;  %v699_v12 = vpack.c.bf16 %v566_v5, %v566_v5  ;;  %v739_v17 = vsel %vm738_vm3, %v733_v9, %v732_v13 }
 0x2ad   :  { %v575_v30 = vrot.slane %v574_v8, 2  ;;  %v862_v58 = vsub.s32 0, %v861_v57  ;;  %v866_v59 = vsub.s32 1, %v861_v57 }
 0x2ae   :  { %v572_v14 = vadd.f32 %v571_v63, %v570_v7  ;;  %v580_v15 = vadd.f32 %v579_v11, %v548_v4  ;;  %v734_v6 = vunpack.c.l.b16 %v699_v12 }
 0x2af   :  { %v576_v16 = vadd.f32 %v575_v30, %v574_v8  ;;  %v863_v60 = vrot.slane %v858_v56, %v862_v58  ;;  %v867_v61 = vrot.slane %v858_v56, %v866_v59 }
 0x2b0   :  { %v581_v18 = vrot.slane %v580_v15, 2  ;;  %v700_v19 = vpack.c.bf16 %v572_v14, %v572_v14  ;;  %v741_v20 = vsel %vm740_vm4, %v734_v6, %v739_v17 }
 0x2b1   :  { %v577_v21 = vrot.slane %v576_v16, 1 }
 0x2b2   :  { %v582_v22 = vadd.f32 %v581_v18, %v580_v15  ;;  %v735_v23 = vunpack.c.l.b16 %v700_v19 }
 0x2b3   :  { %v578_v24 = vadd.f32 %v577_v21, %v576_v16 }
 0x2b4   :  { %v583_v25 = vrot.slane %v582_v22, 1  ;;  %v743_v26 = vsel %vm742_vm5, %v735_v23, %v741_v20 }
 0x2b5   :  { %v701_v27 = vpack.c.bf16 %v578_v24, %v578_v24 }
 0x2b6   :  { %v584_v31 = vadd.f32 %v583_v25, %v582_v22 }
 0x2b7   :  { %v736_v32 = vunpack.c.l.b16 %v701_v27 }
 0x2b8   :  { %v702_v33 = vpack.c.bf16 %v584_v31, %v584_v31 }
 0x2b9   :  { %v745_v34 = vsel %vm744_vm6, %v736_v32, %v743_v26 }
 0x2ba   :  { %v737_v35 = vunpack.c.l.b16 %v702_v33 }
 0x2bc   :  { %v747_v37 = vsel %vm746_vm7, %v737_v35, %v745_v34 }
 0x2bd   :  { %v748_v38 = vpack.c.b16 %v747_v37, %v747_v37 }
 0x2bf   :  { %1214 = vmatmul.mubr.bf16.vlgmr.msra.gmra.mxu1 %v748_v38 }
 0x37f   :  { %v832_v47 = vpop.f32.mrf.mxu1 }
 0x380   :  { %v833_v50 = vadd.f32 %v1046_v46, %v832_v47 }
 0x381   :  { %v1215_v51 = vpop.f32.mrf.mxu1 }
 0x382   :  { %v838_v49 = vmax.f32 %v833_v50, 0.0 }
 0x383   :  { %v835_v52 = vpop.f32.mrf.mxu1 }
 0x384   :  { %v839_v53 = vmul.f32 %v838_v49, %v696_v48 }
 0x385   :  { %v1216_v54 = vpop.f32.mrf.mxu1 }
 0x386   :  { %840 = vst [vmem:[%s1658_s13] sm:$0x3f] %v839_v53  ;;  %v841_v29 = vpack.c.bf16 %v839_v53, %v839_v53 }
 0x388   :  { %983 = vmatmul.mubr.bf16.vlgmr.msra.gmra.mxu0 %v841_v29 }
 0x448   :  { %v984_v62 = vpop.f32.mrf.mxu0 }
 0x449   :  { %v985_v1 = vadd.f32 %v984_v62, %v863_v60 }
 0x44a   :  { %v986_v2 = vpop.f32.mrf.mxu0 }
 0x44b   :  { %v987_v3 = vadd.f32 %v986_v2, %v867_v61  ;;  %v991_v5 = vmax.f32 %v985_v1, 0.0 }
 0x44c   :  { %v988_v4 = vpop.f32.mrf.mxu0 }
 0x44d   :  { %v992_v7 = vmax.f32 %v987_v3, 0.0 }
 0x44e   :  { %v989_v8 = vpop.f32.mrf.mxu0 }
 0x44f   :  { %v1072_v9 = vpack.c.bf16 %v992_v7, %v991_v5 }
 0x451   :  { %1001 = vst [vmem:[%s1660_s14] sm:$0x77] %v1072_v9 }

// kernel: forward.7
= control target key start
LH: loop header
LB: loop body
LE: loop exit
PB: predicated region body
PF: predicated region fallthrough
CT: control target
= control target key end

     0   :  { %s1835_s0 = inlined_call_operand.vmem [shape: f32[6,128], index: 0, kind: input, shape index: {}]   ;;  %s1836_s1 = inlined_call_operand.vmem [shape: bf16[18,6], index: 1, kind: input, shape index: {}]   ;;  %s1837_s2 = inlined_call_operand.vmem [shape: bf16[18,6], index: 2, kind: input, shape index: {}]   ;;  %s1838_s3 = inlined_call_operand.vmem [shape: bf16[2,18], index: 3, kind: input, shape index: {}]   ;;  %s1839_s4 = inlined_call_operand.vmem [shape: bf16[128,128], index: 4, kind: input, shape index: {}]   ;;  %s1840_s5 = inlined_call_operand.vmem [shape: bf16[128,128], index: 5, kind: input, shape index: {}]   ;;  %s1841_s6 = inlined_call_operand.vmem [shape: f32[1,128], index: 6, kind: input, shape index: {}]   ;;  %s1842_s7 = inlined_call_operand.vmem [shape: bf16[128,128], index: 7, kind: input, shape index: {}]   ;;  %s1843_s8 = inlined_call_operand.vmem [shape: f32[1,128], index: 8, kind: input, shape index: {}]   ;;  %s1844_s9 = inlined_call_operand.vmem [shape: bf16[128,128], index: 9, kind: input, shape index: {}]   ;;  %s1845_s10 = inlined_call_operand.vmem [shape: f32[1,128], index: 10, kind: input, shape index: {}]   ;;  %s1846_s11 = inlined_call_operand.vmem [shape: bf16[128,128], index: 11, kind: input, shape index: {}]   ;;  %s1847_s12 = inlined_call_operand.vmem [shape: f32[1,128], index: 12, kind: input, shape index: {}]   ;;  %s1848_s13 = inlined_call_operand.vmem [shape: bf16[128,128], index: 13, kind: input, shape index: {}]   ;;  %s1849_s14 = inlined_call_operand.vmem [shape: f32[1,128], index: 14, kind: input, shape index: {}]   ;;  %s1850_s15 = inlined_call_operand.vmem [shape: bf16[128,128], index: 15, kind: input, shape index: {}]   ;;  %s1851_s16 = inlined_call_operand.vmem [shape: f32[1,128], index: 16, kind: input, shape index: {}]   ;;  %s1852_s17 = inlined_call_operand.hbm [shape: f32[2,128], index: 17, kind: output, shape index: {}]  }
   0x1   :  { %1854 = sst [smem:[#allocation5_spill]] %s1835_s0 }
   0x2   :  { %1855 = sst [smem:[#allocation6_spill]] %s1836_s1 }
   0x3   :  { %v1403_v0 = vld [vmem:[%s1840_s5 + $0x38] sm:$0xff]   ;;  %v1487_v1 = vmov 0.0   ;;  %v1405_v3 = vld [vmem:[%s1840_s5 + $0x30] sm:$0xff]   ;;  %vm1488_vm0 = vmmov 0   ;;  %v1407_v5 = vld [vmem:[%s1840_s5 + $0x28] sm:$0xff]   ;;  %s1856_s26 = sld [smem:[#allocation5_spill]] }
   0x4   :  { %1258 = vmatprep.subr.bf16.mxu1 %v1487_v1  ;;  %1238 = vmatprep.subr.bf16.mxu0 %v1487_v1  ;;  %v1404_v2 = vld [vmem:[%s1839_s4 + $0x38] sm:$0xff]   ;;  %v1406_v4 = vld [vmem:[%s1839_s4 + $0x30] sm:$0xff]   ;;  %v1408_v6 = vld [vmem:[%s1839_s4 + $0x28] sm:$0xff]  }
   0x5   :  { %1259 = vmatpush3.bf16.msra.mxu1 %v1403_v0  ;;  %1274 = vmatprep.mubr.msk.bf16.mxu1 %vm1488_vm0, %v1487_v1  ;;  %v1409_v7 = vld [vmem:[%s1840_s5 + $0x20] sm:$0xff]   ;;  %v1411_v9 = vld [vmem:[%s1840_s5 + $0x18] sm:$0xff]   ;;  %v1413_v11 = vld [vmem:[%s1840_s5 + $0x10] sm:$0xff]  }
   0x6   :  { %1239 = vmatpush3.bf16.msra.mxu0 %v1404_v2  ;;  %1260 = vmatprep.subr.bf16.mxu1 %v1487_v1  ;;  %v1410_v8 = vld [vmem:[%s1839_s4 + $0x20] sm:$0xff]   ;;  %v1412_v10 = vld [vmem:[%s1839_s4 + $0x18] sm:$0xff]   ;;  %v1414_v12 = vld [vmem:[%s1839_s4 + $0x10] sm:$0xff]  }
   0x7   :  { %1240 = vmatprep.subr.bf16.mxu0 %v1487_v1  ;;  %1254 = vmatprep.mubr.msk.bf16.mxu0 %vm1488_vm0, %v1487_v1  ;;  %v1415_v13 = vld [vmem:[%s1840_s5 + $0x8] sm:$0xff]   ;;  %v1417_v15 = vld [vmem:[%s1840_s5] sm:$0xff]  }
   0x8   :  { %v1416_v14 = vld [vmem:[%s1839_s4 + $0x8] sm:$0xff]   ;;  %v1418_v17 = vld [vmem:[%s1839_s4] sm:$0xff]  }
   0x9   :  { %1261 = vmatpush3.bf16.msra.mxu1 %v1405_v3  ;;  %v58_v16 = vld [vmem:[%s1856_s26] sm:$0x3f] }
   0xa   :  { %1241 = vmatpush3.bf16.msra.mxu0 %v1406_v4  ;;  %1262 = vmatprep.subr.bf16.mxu1 %v1487_v1  ;;  %v59_v18 = vpack.c.bf16 %v58_v16, %v58_v16 }
   0xb   :  { %1242 = vmatprep.subr.bf16.mxu0 %v1487_v1 }
   0xd   :  { %1263 = vmatpush3.bf16.msra.mxu1 %v1407_v5 }
   0xe   :  { %1243 = vmatpush3.bf16.msra.mxu0 %v1408_v6  ;;  %1264 = vmatprep.subr.bf16.mxu1 %v1487_v1 }
   0xf   :  { %1244 = vmatprep.subr.bf16.mxu0 %v1487_v1 }
  0x11   :  { %1265 = vmatpush3.bf16.msra.mxu1 %v1409_v7 }
  0x12   :  { %1245 = vmatpush3.bf16.msra.mxu0 %v1410_v8  ;;  %1266 = vmatprep.subr.bf16.mxu1 %v1487_v1 }
  0x13   :  { %1246 = vmatprep.subr.bf16.mxu0 %v1487_v1 }
  0x15   :  { %1267 = vmatpush3.bf16.msra.mxu1 %v1411_v9 }
  0x16   :  { %1247 = vmatpush3.bf16.msra.mxu0 %v1412_v10  ;;  %1268 = vmatprep.subr.bf16.mxu1 %v1487_v1 }
  0x17   :  { %1248 = vmatprep.subr.bf16.mxu0 %v1487_v1 }
  0x19   :  { %1269 = vmatpush3.bf16.msra.mxu1 %v1413_v11 }
  0x1a   :  { %1249 = vmatpush3.bf16.msra.mxu0 %v1414_v12  ;;  %1270 = vmatprep.subr.bf16.mxu1 %v1487_v1 }
  0x1b   :  { %1250 = vmatprep.subr.bf16.mxu0 %v1487_v1 }
  0x1d   :  { %1271 = vmatpush3.bf16.msra.mxu1 %v1415_v13 }
  0x1e   :  { %1251 = vmatpush3.bf16.msra.mxu0 %v1416_v14  ;;  %1272 = vmatprep.subr.bf16.mxu1 %v1487_v1 }
  0x1f   :  { %1252 = vmatprep.subr.bf16.mxu0 %v1487_v1 }
  0x21   :  { %1273 = vmatpush3.bf16.msra.mxu1 %v1417_v15 }
  0x22   :  { %1253 = vmatpush3.bf16.msra.mxu0 %v1418_v17 }
  0x24   :  { %1275 = vmatmul.mubr.bf16.vlgmr.msra.gmra.mxu1 %v59_v18 }
  0x25   :  { %1255 = vmatmul.mubr.bf16.vlgmr.msra.gmra.mxu0 %v59_v18 }
  0x26   :  { %22 = vsyncpa [#allocation3], 0  ;;  %v1419_v19 = vld [vmem:[%s1837_s2] sm:$0xff]   ;;  %vm284_vm1 = vcmask 48128   ;;  %v1423_v20 = vld [vmem:[%s1842_s7 + $0x38] sm:$0xff]   ;;  %vm291_vm2 = vcmask 1042432  }
  0x27   :  { %1280 = vmatprep.mubr.msk.bf16.mxu1 %vm284_vm1, %v1419_v19  ;;  %v1424_v21 = vld [vmem:[%s1842_s7 + $0x30] sm:$0xff]   ;;  %1290 = vmatprep.subr.bf16.mxu0 %v1423_v20  ;;  %v1420_v29 = vld [vmem:[%s1837_s2 + $0x8] ss:$0 sps:$4 sm:$0x11]   ;;  %s1857_s22 = sld [smem:[#allocation6_spill]]  ;;  %v1426_v38 = vld [vmem:[%s1842_s7 + $0x20] sm:$0xff]  }
  0x28   :  { %1291 = vmatpush3.bf16.msra.mxu0 %v1423_v20  ;;  %v1425_v37 = vld [vmem:[%s1842_s7 + $0x28] sm:$0xff]   ;;  %v1427_v39 = vld [vmem:[%s1842_s7 + $0x18] sm:$0xff]   ;;  %v1428_v40 = vld [vmem:[%s1842_s7 + $0x10] sm:$0xff]   ;;  %vm800_vm3 = vcmask 1040384   ;;  %vm796_vm4 = vcmask 146432   ;;  %vm1070_vm5 = vcmask 1041408  }
  0x29   :  { %1292 = vmatprep.subr.bf16.mxu0 %v1424_v21  ;;  %v1429_v41 = vld [vmem:[%s1842_s7 + $0x8] sm:$0xff]   ;;  %v1430_v42 = vld [vmem:[%s1842_s7] sm:$0xff]   ;;  %v1431_v43 = vld [vmem:[%s1844_s9 + $0x38] sm:$0xff]  }
  0x2a   :  { %v1432_v44 = vld [vmem:[%s1844_s9 + $0x30] sm:$0xff]   ;;  %v1433_v45 = vld [vmem:[%s1844_s9 + $0x28] sm:$0xff]   ;;  %v1434_v46 = vld [vmem:[%s1844_s9 + $0x20] sm:$0xff]  }
  0x2b   :  { %v1435_v47 = vld [vmem:[%s1844_s9 + $0x18] sm:$0xff]   ;;  %v1116_v55 = vld [vmem:[%s1841_s6] ss:$0 sm:$0xff]  ;;  %v1436_v5 = vld [vmem:[%s1844_s9 + $0x10] sm:$0xff]  }
  0x2c   :  { %1293 = vmatpush3.bf16.msra.mxu0 %v1424_v21  ;;  %v1437_v6 = vld [vmem:[%s1844_s9 + $0x8] sm:$0xff]   ;;  %v1438_v7 = vld [vmem:[%s1844_s9] sm:$0xff]   ;;  %v1439_v8 = vld [vmem:[%s1846_s11 + $0x38] sm:$0xff]  }
  0x2d   :  { %v1421_v31 = vld [vmem:[%s1857_s22] sm:$0xff]   ;;  %v1422_v36 = vld [vmem:[%s1857_s22 + $0x8] ss:$0 sps:$4 sm:$0x11]   ;;  %1294 = vmatprep.subr.bf16.mxu0 %v1425_v37  ;;  %v1440_v9 = vld [vmem:[%s1846_s11 + $0x30] sm:$0xff]  }
  0x2e   :  { %v1441_v10 = vld [vmem:[%s1846_s11 + $0x28] sm:$0xff]   ;;  %v1442_v11 = vld [vmem:[%s1846_s11 + $0x20] sm:$0xff]   ;;  %v1443_v12 = vld [vmem:[%s1846_s11 + $0x18] sm:$0xff]  }
  0x2f   :  { %v1117_v14 = vld [vmem:[%s1843_s8] ss:$0 sm:$0xff] }
  0x30   :  { %1295 = vmatpush3.bf16.msra.mxu0 %v1425_v37 }
  0x31   :  { %1296 = vmatprep.subr.bf16.mxu0 %v1426_v38 }
  0x34   :  { %1297 = vmatpush3.bf16.msra.mxu0 %v1426_v38 }
  0x35   :  { %1298 = vmatprep.subr.bf16.mxu0 %v1427_v39 }
  0x38   :  { %1299 = vmatpush3.bf16.msra.mxu0 %v1427_v39 }
  0x39   :  { %1300 = vmatprep.subr.bf16.mxu0 %v1428_v40 }
  0x3c   :  { %1301 = vmatpush3.bf16.msra.mxu0 %v1428_v40 }
  0x3d   :  { %1302 = vmatprep.subr.bf16.mxu0 %v1429_v41 }
  0x40   :  { %1303 = vmatpush3.bf16.msra.mxu0 %v1429_v41 }
  0x41   :  { %1304 = vmatprep.subr.bf16.mxu0 %v1430_v42 }
  0x44   :  { %1305 = vmatpush3.bf16.msra.mxu0 %v1430_v42  ;;  %v1135_v42 = vld [vmem:[%s1847_s12] ss:$0 sm:$0xff] }
  0x45   :  { %1330 = vmatprep.subr.bf16.mxu0 %v1439_v8 }
  0xe4   :  { %v262_v22 = vpop.f32.mrf.mxu1 }
  0xe5   :  { %v275_v23 = vpack.c.bf16 %v262_v22, %v262_v22  ;;  %v158_v24 = vpop.f32.mrf.mxu0 }
  0xe6   :  { %v271_v25 = vpack.c.bf16 %v158_v24, %v158_v24  ;;  %v1276_v26 = vpop.f32.mrf.mxu1 }
  0xe7   :  { %v293_v27 = vsel %vm291_vm2, %v275_v23, 0  ;;  %1398 = vmatprep.subr.msk.bf16.mxu1 %vm291_vm2, %v275_v23  ;;  %v1256_v28 = vpop.f32.mrf.mxu0  ;;  %v1444_v26 = vld [vmem:[%s1846_s11 + $0x10] sm:$0xff]  }
  0xe8   :  { %v265_v30 = vpop.f32.mrf.mxu1  ;;  %1279 = vmatpush3.bf16.msra.mxu1 %v293_v27  ;;  %v358_v32 = vsel %vm291_vm2, %v271_v25, 0  ;;  %v1445_v27 = vld [vmem:[%s1846_s11 + $0x8] sm:$0xff]   ;;  %v1446_v28 = vld [vmem:[%s1846_s11] sm:$0xff]  }
  0xe9   :  { %v161_v33 = vpop.f32.mrf.mxu0  ;;  %1399 = vmatprep.subr.msk.bf16.mxu1 %vm291_vm2, %v271_v25  ;;  %v1126_v30 = vld [vmem:[%s1845_s10] ss:$0 sm:$0xff] }
  0xea   :  { %v1277_v34 = vpop.f32.mrf.mxu1 }
  0xeb   :  { %1281 = vmatmul.mubr.msk.bf16.vlgmr.msra.gmra.mxu1 %vm284_vm1, %v1420_v29  ;;  %v1257_v35 = vpop.f32.mrf.mxu0 }
  0xec   :  { %1285 = vmatpush3.bf16.msra.mxu1 %v358_v32  ;;  %1286 = vmatprep.mubr.msk.bf16.mxu1 %vm284_vm1, %v1421_v31 }
  0xed   :  { %1310 = vmatprep.subr.bf16.mxu1 %v1431_v43 }
  0xf3   :  { %1287 = vmatmul.mubr.msk.bf16.vlgmr.msra.gmra.mxu1 %vm284_vm1, %v1422_v36 }
  0xf4   :  { %1311 = vmatpush3.bf16.msra.mxu1 %v1431_v43 }
  0xf5   :  { %1312 = vmatprep.subr.bf16.mxu1 %v1432_v44 }
  0xf8   :  { %1313 = vmatpush3.bf16.msra.mxu1 %v1432_v44 }
  0xf9   :  { %1314 = vmatprep.subr.bf16.mxu1 %v1433_v45 }
  0xfc   :  { %1315 = vmatpush3.bf16.msra.mxu1 %v1433_v45 }
  0xfd   :  { %1316 = vmatprep.subr.bf16.mxu1 %v1434_v46 }
 0x100   :  { %1317 = vmatpush3.bf16.msra.mxu1 %v1434_v46 }
 0x101   :  { %1318 = vmatprep.subr.bf16.mxu1 %v1435_v47 }
 0x104   :  { %1319 = vmatpush3.bf16.msra.mxu1 %v1435_v47 }
 0x105   :  { %1320 = vmatprep.subr.bf16.mxu1 %v1436_v5 }
 0x108   :  { %1321 = vmatpush3.bf16.msra.mxu1 %v1436_v5  ;;  %v1458_v5 = vld [vmem:[%s1850_s15 + $0x20] sm:$0xff]  }
 0x109   :  { %1322 = vmatprep.subr.bf16.mxu1 %v1437_v6 }
 0x10c   :  { %1323 = vmatpush3.bf16.msra.mxu1 %v1437_v6  ;;  %v1459_v6 = vld [vmem:[%s1850_s15 + $0x18] sm:$0xff]  }
 0x10d   :  { %1324 = vmatprep.subr.bf16.mxu1 %v1438_v7 }
 0x110   :  { %1325 = vmatpush3.bf16.msra.mxu1 %v1438_v7  ;;  %v1460_v7 = vld [vmem:[%s1850_s15 + $0x10] sm:$0xff]  }
 0x111   :  { %1350 = vmatprep.subr.bf16.mxu1 %v1487_v1 }
 0x1ab   :  { %v1282_v48 = vpop.f32.mrf.mxu1 }
 0x1ad   :  { %v329_v49 = vpop.f32.mrf.mxu1 }
 0x1af   :  { %v1283_v50 = vpop.f32.mrf.mxu1 }
 0x1b1   :  { %v332_v51 = vpop.f32.mrf.mxu1 }
 0x1b3   :  { %v1288_v52 = vpop.f32.mrf.mxu1 }
 0x1b4   :  { %v403_v53 = vadd.f32 %v1288_v52, %v1282_v48 }
 0x1b5   :  { %v394_v54 = vpop.f32.mrf.mxu1 }
 0x1b6   :  { %v395_v56 = vadd.f32 %v394_v54, %v329_v49  ;;  %v417_v58 = vadd.f32 %v1116_v55, %v403_v53 }
 0x1b7   :  { %v1289_v57 = vpop.f32.mrf.mxu1 }
 0x1b8   :  { %v415_v60 = vadd.f32 %v1116_v55, %v395_v56  ;;  %v420_v63 = vmax.f32 %v417_v58, 0.0  ;;  %v793_v56 = vld [vmem:[%s1838_s3] sm:$0x1]  ;;  %v1447_v57 = vld [vmem:[%s1848_s13 + $0x38] sm:$0xff]   ;;  %v1448_v58 = vld [vmem:[%s1848_s13 + $0x30] sm:$0xff]  }
 0x1b9   :  { %v397_v59 = vpop.f32.mrf.mxu1 }
 0x1ba   :  { %v398_v61 = vadd.f32 %v397_v59, %v332_v51  ;;  %v418_v0 = vmax.f32 %v415_v60, 0.0  ;;  %v422_v4 = vpack.c.bf16 %v420_v63, %v420_v63  ;;  %v1449_v59 = vld [vmem:[%s1848_s13 + $0x28] sm:$0xff]   ;;  %v1450_v60 = vld [vmem:[%s1848_s13 + $0x20] sm:$0xff]  }
 0x1bb   :  { %v1453_v63 = vld [vmem:[%s1848_s13 + $0x8] sm:$0xff]  }
 0x1bc   :  { %v416_v62 = vadd.f32 %v1116_v55, %v398_v61  ;;  %v1451_v61 = vld [vmem:[%s1848_s13 + $0x18] sm:$0xff]  }
 0x1be   :  { %v419_v2 = vmax.f32 %v416_v62, 0.0  ;;  %v1452_v62 = vld [vmem:[%s1848_s13 + $0x10] sm:$0xff]  }
 0x1c0   :  { %v421_v3 = vpack.c.bf16 %v419_v2, %v418_v0  ;;  %v1454_v0 = vld [vmem:[%s1848_s13] sm:$0xff]   ;;  %v1455_v2 = vld [vmem:[%s1850_s15 + $0x38] sm:$0xff]  }
 0x1c2   :  { %1306 = vmatprep.mubr.bf16.mxu0 %v421_v3  ;;  %v1456_v3 = vld [vmem:[%s1850_s15 + $0x30] sm:$0xff]  }
 0x1c3   :  { %1307 = vmatmul.mubr.bf16.vlgmr.msra.gmra.mxu0 %v422_v4  ;;  %v1457_v4 = vld [vmem:[%s1850_s15 + $0x28] sm:$0xff]  }
 0x1c4   :  { %1331 = vmatpush3.bf16.msra.mxu0 %v1439_v8 }
 0x1c5   :  { %1332 = vmatprep.subr.bf16.mxu0 %v1440_v9 }
 0x1c8   :  { %1333 = vmatpush3.bf16.msra.mxu0 %v1440_v9 }
 0x1c9   :  { %1334 = vmatprep.subr.bf16.mxu0 %v1441_v10 }
 0x1cc   :  { %1335 = vmatpush3.bf16.msra.mxu0 %v1441_v10 }
 0x1cd   :  { %1336 = vmatprep.subr.bf16.mxu0 %v1442_v11 }
 0x1d0   :  { %1337 = vmatpush3.bf16.msra.mxu0 %v1442_v11 }
 0x1d1   :  { %1338 = vmatprep.subr.bf16.mxu0 %v1443_v12 }
 0x1d4   :  { %1339 = vmatpush3.bf16.msra.mxu0 %v1443_v12 }
 0x1d5   :  { %1340 = vmatprep.subr.bf16.mxu0 %v1444_v26 }
 0x1d8   :  { %1341 = vmatpush3.bf16.msra.mxu0 %v1444_v26 }
 0x1d9   :  { %1342 = vmatprep.subr.bf16.mxu0 %v1445_v27 }
 0x1dc   :  { %1343 = vmatpush3.bf16.msra.mxu0 %v1445_v27 }
 0x1dd   :  { %1344 = vmatprep.subr.bf16.mxu0 %v1446_v28 }
 0x1e0   :  { %1345 = vmatpush3.bf16.msra.mxu0 %v1446_v28 }
 0x1e1   :  { %1378 = vmatprep.subr.bf16.mxu0 %v1487_v1 }
 0x283   :  { %v1308_v13 = vpop.f32.mrf.mxu0 }
 0x284   :  { %v537_v16 = vadd.f32 %v1308_v13, %v1117_v14  ;;  %v1461_v13 = vld [vmem:[%s1850_s15 + $0x8] sm:$0xff]  }
 0x285   :  { %v528_v15 = vpop.f32.mrf.mxu0 }
 0x286   :  { %v529_v18 = vadd.f32 %v1117_v14, %v528_v15  ;;  %v544_v21 = vmax.f32 %v537_v16, 0.0  ;;  %v1145_v15 = vld [vmem:[%s1849_s14] ss:$0 sm:$0xff]  ;;  %s1489_s14 = smov [#allocation2]  }
 0x287   :  { %v1309_v17 = vpop.f32.mrf.mxu0 }
 0x288   :  { %v542_v22 = vmax.f32 %v529_v18, 0.0  ;;  %v546_v25 = vpack.c.bf16 %v544_v21, %v544_v21 }
 0x289   :  { %v531_v19 = vpop.f32.mrf.mxu0 }
 0x28a   :  { %v532_v20 = vadd.f32 %v1117_v14, %v531_v19  ;;  %v1462_v14 = vld [vmem:[%s1850_s15] sm:$0xff]   ;;  %s1084_s15 = sshll.u32 %s1489_s14, 4  ;;  %s1085_s15 = int_to_ptr.vmem [resolvable:$true] %s1084_s15 }
 0x28b   :  { %s1465_s23 = scalar_lea.vmem %s1085_s15, 32  ;;  %p1470_p1 = scmp.lt.s32.totalorder %s1085_s15, %s1085_s15 }
 0x28c   :  { %v543_v23 = vmax.f32 %v532_v20, 0.0  ;;  %p1466_p0 = scmp.ne.s32.totalorder %s1085_s15, %s1465_s23  ;;  %p1471_p2 = scmp.lt.s32.totalorder %s1465_s23, %s1465_s23 }
 0x28e   :  { %v545_v24 = vpack.c.bf16 %v543_v23, %v542_v22  ;;  %p1472_p3 = por %p1471_p2, %p1470_p1 }
 0x290   :  { %1326 = vmatprep.mubr.bf16.mxu1 %v545_v24  ;;  %p1473_p4 = pnand %p1472_p3, %p1466_p0 }
 0x291   :  { %1327 = vmatmul.mubr.bf16.vlgmr.msra.gmra.mxu1 %v546_v25 }
 0x292   :  { %1354 = vmatprep.mubr.msk.bf16.mxu1 %vm1488_vm0, %v1487_v1 }
 0x351   :  { %v1328_v29 = vpop.f32.mrf.mxu1 }
 0x352   :  { %v661_v32 = vadd.f32 %v1328_v29, %v1126_v30 }
 0x353   :  { %v652_v31 = vpop.f32.mrf.mxu1 }
 0x354   :  { %v653_v34 = vadd.f32 %v1126_v30, %v652_v31  ;;  %v668_v37 = vmax.f32 %v661_v32, 0.0 }
 0x355   :  { %v1329_v33 = vpop.f32.mrf.mxu1 }
 0x356   :  { %v666_v38 = vmax.f32 %v653_v34, 0.0  ;;  %v670_v41 = vpack.c.bf16 %v668_v37, %v668_v37 }
 0x357   :  { %v655_v35 = vpop.f32.mrf.mxu1 }
 0x358   :  { %v656_v36 = vadd.f32 %v1126_v30, %v655_v35 }
 0x35a   :  { %v667_v39 = vmax.f32 %v656_v36, 0.0 }
 0x35c   :  { %v669_v40 = vpack.c.bf16 %v667_v39, %v666_v38 }
 0x35e   :  { %1346 = vmatprep.mubr.bf16.mxu0 %v669_v40 }
 0x35f   :  { %1347 = vmatmul.mubr.bf16.vlgmr.msra.gmra.mxu0 %v670_v41 }
 0x360   :  { %1394 = vmatprep.mubr.msk.bf16.mxu0 %vm1488_vm0, %v1487_v1  ;;  %1379 = vmatpush3.bf16.msra.mxu0 %v1455_v2 }
 0x361   :  { %1380 = vmatprep.subr.bf16.mxu0 %v1487_v1 }
 0x364   :  { %1381 = vmatpush3.bf16.msra.mxu0 %v1456_v3 }
 0x365   :  { %1382 = vmatprep.subr.bf16.mxu0 %v1487_v1 }
 0x368   :  { %1383 = vmatpush3.bf16.msra.mxu0 %v1457_v4 }
 0x369   :  { %1384 = vmatprep.subr.bf16.mxu0 %v1487_v1 }
 0x36c   :  { %1385 = vmatpush3.bf16.msra.mxu0 %v1458_v5 }
 0x36d   :  { %1386 = vmatprep.subr.bf16.mxu0 %v1487_v1 }
 0x370   :  { %1387 = vmatpush3.bf16.msra.mxu0 %v1459_v6 }
 0x371   :  { %1388 = vmatprep.subr.bf16.mxu0 %v1487_v1 }
 0x374   :  { %1389 = vmatpush3.bf16.msra.mxu0 %v1460_v7 }
 0x375   :  { %1390 = vmatprep.subr.bf16.mxu0 %v1487_v1 }
 0x378   :  { %1391 = vmatpush3.bf16.msra.mxu0 %v1461_v13 }
 0x379   :  { %1392 = vmatprep.subr.bf16.mxu0 %v1487_v1 }
 0x37c   :  { %1393 = vmatpush3.bf16.msra.mxu0 %v1462_v14 }
 0x41f   :  { %v1348_v43 = vpop.f32.mrf.mxu0 }
 0x420   :  { %v785_v44 = vadd.f32 %v1348_v43, %v1135_v42 }
 0x421   :  { %v776_v45 = vpop.f32.mrf.mxu0 }
 0x422   :  { %v792_v46 = vmax.f32 %v785_v44, 0.0  ;;  %v777_v49 = vadd.f32 %v1135_v42, %v776_v45 }
 0x423   :  { %v1349_v47 = vpop.f32.mrf.mxu0 }
 0x424   :  { %v795_v48 = vpack.c.bf16 %v792_v46, %v792_v46  ;;  %v790_v53 = vmax.f32 %v777_v49, 0.0 }
 0x425   :  { %v779_v50 = vpop.f32.mrf.mxu0 }
 0x426   :  { %v780_v51 = vadd.f32 %v1135_v42, %v779_v50  ;;  %v802_v52 = vsel %vm800_vm3, %v795_v48, 0 }
 0x427   :  { %1351 = vmatpush3.bf16.msra.mxu1 %v802_v52 }
 0x428   :  { %v791_v54 = vmax.f32 %v780_v51, 0.0  ;;  %1352 = vmatprep.subr.bf16.mxu1 %v1487_v1 }
 0x42a   :  { %v794_v55 = vpack.c.bf16 %v791_v54, %v790_v53 }
 0x42c   :  { %1353 = vmatpush3.bf16.msra.mxu1 %v794_v55 }
 0x42d   :  { %1358 = vmatprep.subr.bf16.mxu1 %v1487_v1 }
 0x42f   :  { %1355 = vmatmul.mubr.msk.bf16.vlgmr.msra.gmra.mxu1 %vm796_vm4, %v793_v56 }
 0x430   :  { %1359 = vmatpush3.bf16.msra.mxu1 %v1447_v57  ;;  %1374 = vmatprep.mubr.msk.bf16.mxu1 %vm1488_vm0, %v1487_v1 }
 0x431   :  { %1360 = vmatprep.subr.bf16.mxu1 %v1487_v1 }
 0x434   :  { %1361 = vmatpush3.bf16.msra.mxu1 %v1448_v58 }
 0x435   :  { %1362 = vmatprep.subr.bf16.mxu1 %v1487_v1 }
 0x438   :  { %1363 = vmatpush3.bf16.msra.mxu1 %v1449_v59 }
 0x439   :  { %1364 = vmatprep.subr.bf16.mxu1 %v1487_v1 }
 0x43c   :  { %1365 = vmatpush3.bf16.msra.mxu1 %v1450_v60 }
 0x43d   :  { %1366 = vmatprep.subr.bf16.mxu1 %v1487_v1 }
 0x440   :  { %1367 = vmatpush3.bf16.msra.mxu1 %v1451_v61 }
 0x441   :  { %1368 = vmatprep.subr.bf16.mxu1 %v1487_v1 }
 0x444   :  { %1369 = vmatpush3.bf16.msra.mxu1 %v1452_v62 }
 0x445   :  { %1370 = vmatprep.subr.bf16.mxu1 %v1487_v1 }
 0x448   :  { %1371 = vmatpush3.bf16.msra.mxu1 %v1453_v63 }
 0x449   :  { %1372 = vmatprep.subr.bf16.mxu1 %v1487_v1  ;;  %v1154_v1 = vld [vmem:[%s1851_s16] ss:$0 sm:$0xff] }
 0x44c   :  { %1373 = vmatpush3.bf16.msra.mxu1 %v1454_v0 }
 0x4ef   :  { %v838_v8 = vpop.f32.mrf.mxu1 }
 0x4f0   :  { %v844_v9 = vpack.c.bf16 %v838_v8, %v838_v8 }
 0x4f1   :  { %v1356_v10 = vpop.f32.mrf.mxu1 }
 0x4f2   :  { %1375 = vmatmul.mubr.bf16.vlgmr.msra.gmra.mxu1 %v844_v9 }
 0x4f3   :  { %v841_v11 = vpop.f32.mrf.mxu1 }
 0x4f5   :  { %v1357_v12 = vpop.f32.mrf.mxu1 }
 0x5b2   :  { %v950_v16 = vpop.f32.mrf.mxu1 }
 0x5b3   :  { %v951_v17 = vadd.f32 %v1145_v15, %v950_v16 }
 0x5b4   :  { %v1376_v18 = vpop.f32.mrf.mxu1 }
 0x5b5   :  { %v956_v19 = vmax.f32 %v951_v17, 0.0 }
 0x5b6   :  { %v953_v20 = vpop.f32.mrf.mxu1 }
 0x5b7   :  { %v957_v21 = vpack.c.bf16 %v956_v19, %v956_v19 }
 0x5b8   :  { %v1377_v22 = vpop.f32.mrf.mxu1 }
 0x5b9   :  { %1395 = vmatmul.mubr.bf16.vlgmr.msra.gmra.mxu0 %v957_v21 }
 0x679   :  { %v1063_v23 = vpop.f32.mrf.mxu0 }
 0x67a   :  { %v1064_v24 = vadd.f32 %v1154_v1, %v1063_v23 }
 0x67b   :  { %v1396_v25 = vpop.f32.mrf.mxu0 }
 0x67c   :  { %v1069_v26 = vmul.f32 %v1064_v24, %v1064_v24 }
 0x67d   :  { %v1066_v27 = vpop.f32.mrf.mxu0 }
 0x67e   :  { %v1071_v28 = vsel %vm1070_vm5, %v1069_v26, 0.0 }
 0x67f   :  { %v1397_v29 = vpop.f32.mrf.mxu0  ;;  %1072 = vadd.xlane.f32.xlu0 %v1071_v28 }
 0x708   :  { %v1073_v30 = vpop.xlane.xlu0 %1072 }
 0x709   :  { %v1074_v31 = vadd.f32 1e-12, %v1073_v30 }
 0x70b   :  { %1463 = vrsqrt.f32 %v1074_v31 }
 0x718   :  { %v1464_v32 = vpop.eup %1463 }
 0x719   :  { %v1076_v33 = vmul.f32 %v1464_v32, %v1064_v24 }
 0x71b   :  { %1077 = vst [vmem:[#allocation2] sm:$0x3] %v1076_v33 }
 0x71c   :  { %1476 = shalt.err (!%p1473_p4)
}
 0x71d   :  { %1087 = dma.vmem_to_hbm [thread:$0]  %s1085_s15, 32, %s1852_s17, [#allocation3]  }
 0x71e   :  { %1485 = dma.done.wait [#allocation3], 32  }
 0x71f   :  { %1486 = vsyncadd [#allocation3], 4294967264 }
 0x720   :  { %1091 = vsyncpa [#allocation3], 1 }

// kernel: forward.4
= control target key start
LH: loop header
LB: loop body
LE: loop exit
PB: predicated region body
PF: predicated region fallthrough
CT: control target
= control target key end

     0   :  { %14 = vsyncpa [#allocation4], 0  ;;  %s3831_s0 = inlined_call_operand.vmem [shape: f32[4,8,64], index: 0, kind: input, shape index: {}]   ;;  %s3832_s1 = inlined_call_operand.vmem [shape: bf16[64,1024], index: 1, kind: input, shape index: {}]   ;;  %s3833_s2 = inlined_call_operand.vmem [shape: bf16[128,512], index: 2, kind: input, shape index: {}]   ;;  %s3834_s3 = inlined_call_operand.hbm [shape: bf16[128,512], index: 3, kind: input, shape index: {}]   ;;  %s3835_s4 = inlined_call_operand.hbm [shape: f32[1,512], index: 4, kind: input, shape index: {}]   ;;  %s3836_s5 = inlined_call_operand.hbm [shape: f32[1,512], index: 5, kind: input, shape index: {}]   ;;  %s3837_s6 = inlined_call_operand.hbm [shape: bf16[128,128], index: 6, kind: input, shape index: {}]   ;;  %s3838_s7 = inlined_call_operand.hbm [shape: bf16[128,128], index: 7, kind: input, shape index: {}]   ;;  %s3839_s8 = inlined_call_operand.vmem [shape: f32[1,128], index: 8, kind: input, shape index: {}]   ;;  %s3840_s9 = inlined_call_operand.vmem [shape: f32[8,128], index: 9, kind: output, shape index: {}]  }
   0x1   :  { %15 = vsyncpa [#allocation6], 0 }
   0x2   :  { %16 = vsyncpa [#allocation9], 0  ;;  %s2918_s30 = smov [#allocation5]   ;;  %s2919_s11 = smov [#allocation8]  }
   0x3   :  { %s41_s10 = sshll.u32 %s2918_s30, 4  ;;  %s60_s12 = sshll.u32 %s2919_s11, 4  ;;  %s42_s10 = int_to_ptr.vmem [resolvable:$true] %s41_s10  ;;  %s61_s12 = int_to_ptr.vmem [resolvable:$true] %s60_s12 }
   0x4   :  { %s2820_s13 = scalar_lea.vmem %s42_s10, 64  ;;  %p2825_p1 = scmp.lt.s32.totalorder %s42_s10, %s42_s10 }
   0x5   :  { %p2821_p0 = scmp.ne.s32.totalorder %s42_s10, %s2820_s13  ;;  %p2826_p2 = scmp.lt.s32.totalorder %s2820_s13, %s2820_s13 }
   0x7   :  { %p2827_p3 = por %p2826_p2, %p2825_p1 }
   0x9   :  { %p2828_p4 = pnand %p2827_p3, %p2821_p0 }
   0xb   :  { %2831 = shalt.err (!%p2828_p4)
}
   0xc   :  { %44 = dma.hbm_to_vmem [thread:$0]  %s3835_s4, 64, %s42_s10, [#allocation6]  }
   0xd   :  { %s2840_s16 = scalar_lea.vmem %s61_s12, 1024  ;;  %p2845_p6 = scmp.lt.s32.totalorder %s61_s12, %s61_s12 }
   0xe   :  { %p2841_p5 = scmp.ne.s32.totalorder %s61_s12, %s2840_s16  ;;  %p2846_p7 = scmp.lt.s32.totalorder %s2840_s16, %s2840_s16 }
  0x10   :  { %p2847_p8 = por %p2846_p7, %p2845_p6 }
  0x12   :  { %p2848_p9 = pnand %p2847_p8, %p2841_p5 }
  0x14   :  { %2851 = shalt.err (!%p2848_p9)
}
  0x15   :  { %s2920_s17 = smov 64   ;;  %s2921_s18 = smov 4  }
  0x16   :  { %66 = dma.hbm_to_vmem [thread:$0]  %s3837_s6, 1024, %s61_s12, [#allocation9], %s2920_s17, %s2920_s17, %s2921_s18  }
  0x17   :  { %s2922_s21 = smov [#allocation3]  }
  0x18   :  { %s28_s22 = sshll.u32 %s2922_s21, 4  ;;  %s29_s22 = int_to_ptr.vmem [resolvable:$true] %s28_s22 }
  0x19   :  { %s2860_s4 = scalar_lea.vmem %s29_s22, 4096  ;;  %p2865_p11 = scmp.lt.s32.totalorder %s29_s22, %s29_s22 }
  0x1a   :  { %p2861_p10 = scmp.ne.s32.totalorder %s29_s22, %s2860_s4  ;;  %p2866_p12 = scmp.lt.s32.totalorder %s2860_s4, %s2860_s4 }
  0x1c   :  { %p2867_p13 = por %p2866_p12, %p2865_p11 }
  0x1e   :  { %p2868_p0 = pnand %p2867_p13, %p2861_p10 }
  0x20   :  { %2871 = shalt.err (!%p2868_p0)
}
  0x21   :  { %s2923_s23 = smov 256   ;;  %s2924_s24 = smov 16  }
  0x22   :  { %34 = dma.hbm_to_vmem [thread:$0]  %s3834_s3, 4096, %s29_s22, [#allocation4], %s2923_s23, %s2923_s23, %s2924_s24  }
  0x23   :  { %s2925_s27 = smov [#allocation7]   ;;  %s2926_s6 = smov [#allocation10]  }
  0x24   :  { %s51_s28 = sshll.u32 %s2925_s27, 4  ;;  %s72_s29 = sshll.u32 %s2926_s6, 4  ;;  %s52_s28 = int_to_ptr.vmem [resolvable:$true] %s51_s28  ;;  %s73_s29 = int_to_ptr.vmem [resolvable:$true] %s72_s29 }
  0x25   :  { %s2880_s30 = scalar_lea.vmem %s52_s28, 64  ;;  %p2885_p2 = scmp.lt.s32.totalorder %s52_s28, %s52_s28 }
  0x26   :  { %p2881_p1 = scmp.ne.s32.totalorder %s52_s28, %s2880_s30  ;;  %p2886_p3 = scmp.lt.s32.totalorder %s2880_s30, %s2880_s30 }
  0x28   :  { %p2887_p4 = por %p2886_p3, %p2885_p2 }
  0x2a   :  { %p2888_p5 = pnand %p2887_p4, %p2881_p1 }
  0x2c   :  { %2891 = shalt.err (!%p2888_p5)
}
  0x2d   :  { %54 = dma.hbm_to_vmem [thread:$0]  %s3836_s5, 64, %s52_s28, [#allocation6]  }
  0x2e   :  { %s2900_s12 = scalar_lea.vmem %s73_s29, 1024  ;;  %p2905_p7 = scmp.lt.s32.totalorder %s73_s29, %s73_s29 }
  0x2f   :  { %p2901_p6 = scmp.ne.s32.totalorder %s73_s29, %s2900_s12  ;;  %p2906_p8 = scmp.lt.s32.totalorder %s2900_s12, %s2900_s12 }
  0x31   :  { %p2907_p9 = por %p2906_p8, %p2905_p7 }
  0x33   :  { %p2908_p10 = pnand %p2907_p9, %p2901_p6 }
  0x35   :  { %2911 = shalt.err (!%p2908_p10)
}
  0x36   :  { %78 = dma.hbm_to_vmem [thread:$0]  %s3838_s7, 1024, %s73_s29, [#allocation9], %s2920_s17, %s2920_s17, %s2921_s18  }
  0x37   :  { %2912 = dma.done.wait [#allocation4], 4096  }
  0x38   :  { %2913 = vsyncadd [#allocation4], 4294963200 }
  0x39   :  { %2914 = dma.done.wait [#allocation6], 128  }
  0x3a   :  { %2915 = vsyncadd [#allocation6], 4294967168 }
  0x3b   :  { %2916 = dma.done.wait [#allocation9], 2048  }
  0x3c   :  { %2917 = vsyncadd [#allocation9], 4294965248  ;;  %v3841_v0 = vmov 0   ;;  %v127_v1 = vld [vmem:[%s3832_s1 + $0xc0] sm:$0xff]  ;;  %v128_v3 = vld [vmem:[%s3832_s1 + $0xc8] sm:$0xff]  ;;  %vm295_vm0 = vcmask 523264  }
  0x3d   :  { %334 = vmatprep.mubr.bf16.mxu0 %v3841_v0  ;;  %387 = vmatprep.mubr.bf16.mxu1 %v3841_v0  ;;  %v131_v2 = vld [vmem:[%s3832_s1 + $0xe0] sm:$0xff]  ;;  %v132_v5 = vld [vmem:[%s3832_s1 + $0xe8] sm:$0xff]  ;;  %v129_v31 = vld [vmem:[%s3832_s1 + $0xd0] sm:$0xff]  ;;  %vm2929_vm1 = vmmov 0  }
  0x3e   :  { %v2286_v4 = vcombine.high %v127_v1, %v131_v2  ;;  %v2285_v6 = vcombine.low %v127_v1, %v131_v2  ;;  %v119_v7 = vld [vmem:[%s3832_s1 + $0x80] sm:$0xff]  ;;  %v2288_v9 = vcombine.high %v128_v3, %v132_v5  ;;  %v2287_v10 = vcombine.low %v128_v3, %v132_v5  ;;  %v120_v12 = vld [vmem:[%s3832_s1 + $0x88] sm:$0xff]  ;;  %v133_v32 = vld [vmem:[%s3832_s1 + $0xf0] sm:$0xff] }
  0x3f   :  { %v123_v8 = vld [vmem:[%s3832_s1 + $0xa0] sm:$0xff]  ;;  %v124_v13 = vld [vmem:[%s3832_s1 + $0xa8] sm:$0xff]  ;;  %v130_v34 = vld [vmem:[%s3832_s1 + $0xd8] sm:$0xff]  ;;  %v2290_v39 = vcombine.high %v129_v31, %v133_v32  ;;  %v2289_v46 = vcombine.low %v129_v31, %v133_v32 }
  0x40   :  { %v2278_v11 = vcombine.high %v119_v7, %v123_v8  ;;  %v111_v14 = vld [vmem:[%s3832_s1 + $0x40] sm:$0xff]  ;;  %310 = vmatprep.subr.bf16.mxu0 %v2286_v4  ;;  %v2280_v15 = vcombine.high %v120_v12, %v124_v13  ;;  %v112_v17 = vld [vmem:[%s3832_s1 + $0x48] sm:$0xff]  ;;  %363 = vmatprep.subr.bf16.mxu1 %v2288_v9  ;;  %v2277_v19 = vcombine.low %v119_v7, %v123_v8  ;;  %v134_v35 = vld [vmem:[%s3832_s1 + $0xf8] sm:$0xff] }
  0x41   :  { %v115_v16 = vld [vmem:[%s3832_s1 + $0x60] sm:$0xff]  ;;  %v116_v18 = vld [vmem:[%s3832_s1 + $0x68] sm:$0xff]  ;;  %311 = vmatpush1.bf16.msra.mxu0 %v2285_v6  ;;  %364 = vmatpush1.bf16.msra.mxu1 %v2287_v10  ;;  %v2279_v20 = vcombine.low %v120_v12, %v124_v13  ;;  %v121_v40 = vld [vmem:[%s3832_s1 + $0x90] sm:$0xff]  ;;  %v2292_v41 = vcombine.high %v130_v34, %v134_v35  ;;  %v2291_v47 = vcombine.low %v130_v34, %v134_v35 }
  0x42   :  { %312 = vmatprep.subr.bf16.mxu0 %v2278_v11  ;;  %v2270_v21 = vcombine.high %v111_v14, %v115_v16  ;;  %365 = vmatprep.subr.bf16.mxu1 %v2280_v15  ;;  %v2272_v22 = vcombine.high %v112_v17, %v116_v18  ;;  %v103_v23 = vld [vmem:[%s3832_s1] sm:$0xff]  ;;  %v104_v25 = vld [vmem:[%s3832_s1 + $0x8] sm:$0xff]  ;;  %v2269_v27 = vcombine.low %v111_v14, %v115_v16  ;;  %v125_v42 = vld [vmem:[%s3832_s1 + $0xb0] sm:$0xff] }
  0x43   :  { %v107_v24 = vld [vmem:[%s3832_s1 + $0x20] sm:$0xff]  ;;  %v108_v26 = vld [vmem:[%s3832_s1 + $0x28] sm:$0xff]  ;;  %v2271_v28 = vcombine.low %v112_v17, %v116_v18  ;;  %v122_v43 = vld [vmem:[%s3832_s1 + $0x98] sm:$0xff]  ;;  %v2282_v48 = vcombine.high %v121_v40, %v125_v42  ;;  %v2281_v55 = vcombine.low %v121_v40, %v125_v42 }
  0x44   :  { %v2262_v29 = vcombine.high %v103_v23, %v107_v24  ;;  %v2264_v30 = vcombine.high %v104_v25, %v108_v26  ;;  %v97_v33 = vld [vmem:[%s3831_s0] sm:$0xff]  ;;  %v2261_v36 = vcombine.low %v103_v23, %v107_v24  ;;  %v98_v37 = vld [vmem:[%s3831_s0 + $0x8] sm:$0xff]  ;;  %v2263_v38 = vcombine.low %v104_v25, %v108_v26  ;;  %v126_v45 = vld [vmem:[%s3832_s1 + $0xb8] sm:$0xff] }
  0x45   :  { %313 = vmatpush1.bf16.msra.mxu0 %v2277_v19  ;;  %366 = vmatpush1.bf16.msra.mxu1 %v2279_v20  ;;  %v3078_v44 = vpack.c.bf16 %v98_v37, %v97_v33  ;;  %v113_v49 = vld [vmem:[%s3832_s1 + $0x50] sm:$0xff]  ;;  %v2284_v50 = vcombine.high %v122_v43, %v126_v45  ;;  %v114_v53 = vld [vmem:[%s3832_s1 + $0x58] sm:$0xff]  ;;  %v2283_v57 = vcombine.low %v122_v43, %v126_v45 }
  0x46   :  { %314 = vmatprep.subr.bf16.mxu0 %v2270_v21  ;;  %367 = vmatprep.subr.bf16.mxu1 %v2272_v22  ;;  %v117_v51 = vld [vmem:[%s3832_s1 + $0x70] sm:$0xff]  ;;  %v118_v54 = vld [vmem:[%s3832_s1 + $0x78] sm:$0xff] }
  0x47   :  { %v99_v52 = vld [vmem:[%s3831_s0 + $0x10] sm:$0xff]  ;;  %v100_v56 = vld [vmem:[%s3831_s0 + $0x18] sm:$0xff]  ;;  %v2274_v58 = vcombine.high %v113_v49, %v117_v51  ;;  %v2276_v60 = vcombine.high %v114_v53, %v118_v54  ;;  %v2273_v2 = vcombine.low %v113_v49, %v117_v51  ;;  %v2275_v3 = vcombine.low %v114_v53, %v118_v54 }
  0x48   :  { %v105_v59 = vld [vmem:[%s3832_s1 + $0x10] sm:$0xff]  ;;  %v106_v62 = vld [vmem:[%s3832_s1 + $0x18] sm:$0xff]  ;;  %v102_v63 = vpack.c.bf16 %v100_v56, %v99_v52 }
  0x49   :  { %315 = vmatpush1.bf16.msra.mxu0 %v2269_v27  ;;  %368 = vmatpush1.bf16.msra.mxu1 %v2271_v28  ;;  %v109_v61 = vld [vmem:[%s3832_s1 + $0x30] sm:$0xff]  ;;  %v110_v1 = vld [vmem:[%s3832_s1 + $0x38] sm:$0xff] }
  0x4a   :  { %316 = vmatprep.subr.bf16.mxu0 %v2262_v29  ;;  %369 = vmatprep.subr.bf16.mxu1 %v2264_v30  ;;  %v2266_v4 = vcombine.high %v105_v59, %v109_v61  ;;  %v2268_v5 = vcombine.high %v106_v62, %v110_v1  ;;  %v2265_v6 = vcombine.low %v105_v59, %v109_v61  ;;  %v3124_v8 = vld [vmem:[%s3833_s2 + $0xe4] ss:$16 sps:$4 sm:$0xff]   ;;  %v3130_v9 = vld [vmem:[%s3833_s2 + $0xec] ss:$16 sps:$4 sm:$0xff]   ;;  %v3136_v10 = vld [vmem:[%s3833_s2 + $0xe0] ss:$16 sps:$4 sm:$0xff]  }
  0x4b   :  { %v2267_v7 = vcombine.low %v106_v62, %v110_v1  ;;  %3878 = vst [vmem:[#allocation14_spill] sm:$0xff] %v3130_v9  ;;  %3879 = vst [vmem:[#allocation15_spill] sm:$0xff] %v3136_v10  ;;  %v3141_v11 = vld [vmem:[%s3833_s2 + $0xe8] ss:$16 sps:$4 sm:$0xff]   ;;  %v3147_v12 = vld [vmem:[%s3833_s2 + $0xc4] ss:$16 sps:$4 sm:$0xff]  }
  0x4c   :  { %3880 = vst [vmem:[#allocation16_spill] sm:$0xff] %v3141_v11  ;;  %3881 = vst [vmem:[#allocation17_spill] sm:$0xff] %v3147_v12  ;;  %v3153_v13 = vld [vmem:[%s3833_s2 + $0xcc] ss:$16 sps:$4 sm:$0xff]   ;;  %v3160_v14 = vld [vmem:[%s3833_s2 + $0xc0] ss:$16 sps:$4 sm:$0xff]  }
  0x4d   :  { %317 = vmatpush1.bf16.msra.mxu0 %v2261_v36  ;;  %370 = vmatpush1.bf16.msra.mxu1 %v2263_v38  ;;  %3882 = vst [vmem:[#allocation18_spill] sm:$0xff] %v3153_v13  ;;  %3883 = vst [vmem:[#allocation19_spill] sm:$0xff] %v3160_v14  ;;  %v3168_v15 = vld [vmem:[%s3833_s2 + $0xc8] ss:$16 sps:$4 sm:$0xff]   ;;  %v3175_v16 = vld [vmem:[%s3833_s2 + $0xa4] ss:$16 sps:$4 sm:$0xff]  }
  0x4e   :  { %416 = vmatprep.subr.bf16.mxu0 %v2290_v39  ;;  %469 = vmatprep.subr.bf16.mxu1 %v2292_v41  ;;  %3884 = vst [vmem:[#allocation20_spill] sm:$0xff] %v3168_v15  ;;  %3885 = vst [vmem:[#allocation21_spill] sm:$0xff] %v3175_v16  ;;  %v3181_v17 = vld [vmem:[%s3833_s2 + $0xac] ss:$16 sps:$4 sm:$0xff]   ;;  %v3189_v18 = vld [vmem:[%s3833_s2 + $0xa0] ss:$16 sps:$4 sm:$0xff]  }
  0x4f   :  { %3886 = vst [vmem:[#allocation22_spill] sm:$0xff] %v3181_v17  ;;  %3887 = vst [vmem:[#allocation23_spill] sm:$0xff] %v3189_v18  ;;  %v3194_v19 = vld [vmem:[%s3833_s2 + $0xa8] ss:$16 sps:$4 sm:$0xff]   ;;  %v3201_v20 = vld [vmem:[%s3833_s2 + $0x84] ss:$16 sps:$4 sm:$0xff]  }
  0x50   :  { %2293 = vmatmul.mubr.msk.bf16.vlgmr.msra.gmra.mxu0 %vm295_vm0, %v3078_v44  ;;  %2295 = vmatmul.mubr.msk.bf16.vlgmr.msra.gmra.mxu1 %vm295_vm0, %v3078_v44  ;;  %3888 = vst [vmem:[#allocation24_spill] sm:$0xff] %v3194_v19  ;;  %3889 = vst [vmem:[#allocation25_spill] sm:$0xff] %v3201_v20  ;;  %v3207_v21 = vld [vmem:[%s3833_s2 + $0x8c] ss:$16 sps:$4 sm:$0xff]   ;;  %v3212_v22 = vld [vmem:[%s3833_s2 + $0x80] ss:$16 sps:$4 sm:$0xff]  }
  0x51   :  { %417 = vmatpush1.bf16.msra.mxu0 %v2289_v46  ;;  %470 = vmatpush1.bf16.msra.mxu1 %v2291_v47  ;;  %3890 = vst [vmem:[#allocation26_spill] sm:$0xff] %v3207_v21  ;;  %3891 = vst [vmem:[#allocation27_spill] sm:$0xff] %v3212_v22  ;;  %v3219_v23 = vld [vmem:[%s3833_s2 + $0x88] ss:$16 sps:$4 sm:$0xff]   ;;  %v3227_v24 = vld [vmem:[%s3833_s2 + $0x64] ss:$16 sps:$4 sm:$0xff]  }
  0x52   :  { %418 = vmatprep.subr.bf16.mxu0 %v2282_v48  ;;  %471 = vmatprep.subr.bf16.mxu1 %v2284_v50  ;;  %3892 = vst [vmem:[#allocation28_spill] sm:$0xff] %v3219_v23  ;;  %3893 = vst [vmem:[#allocation29_spill] sm:$0xff] %v3227_v24  ;;  %v3233_v25 = vld [vmem:[%s3833_s2 + $0x6c] ss:$16 sps:$4 sm:$0xff]   ;;  %v3241_v26 = vld [vmem:[%s3833_s2 + $0x60] ss:$16 sps:$4 sm:$0xff]  }
  0x53   :  { %344 = vmatprep.mubr.bf16.mxu0 %v3841_v0  ;;  %397 = vmatprep.mubr.bf16.mxu1 %v3841_v0  ;;  %3894 = vst [vmem:[#allocation30_spill] sm:$0xff] %v3233_v25  ;;  %3895 = vst [vmem:[#allocation31_spill] sm:$0xff] %v3241_v26  ;;  %v3246_v27 = vld [vmem:[%s3833_s2 + $0x68] ss:$16 sps:$4 sm:$0xff]   ;;  %v3253_v28 = vld [vmem:[%s3833_s2 + $0x44] ss:$16 sps:$4 sm:$0xff]  }
  0x54   :  { %3896 = vst [vmem:[#allocation32_spill] sm:$0xff] %v3246_v27  ;;  %3897 = vst [vmem:[#allocation33_spill] sm:$0xff] %v3253_v28  ;;  %v3259_v29 = vld [vmem:[%s3833_s2 + $0x4c] ss:$16 sps:$4 sm:$0xff]   ;;  %v3264_v30 = vld [vmem:[%s3833_s2 + $0x40] ss:$16 sps:$4 sm:$0xff]  }
  0x55   :  { %419 = vmatpush1.bf16.msra.mxu0 %v2281_v55  ;;  %472 = vmatpush1.bf16.msra.mxu1 %v2283_v57  ;;  %3898 = vst [vmem:[#allocation34_spill] sm:$0xff] %v3259_v29  ;;  %3899 = vst [vmem:[#allocation35_spill] sm:$0xff] %v3264_v30  ;;  %v3270_v31 = vld [vmem:[%s3833_s2 + $0x48] ss:$16 sps:$4 sm:$0xff]   ;;  %v3277_v32 = vld [vmem:[%s3833_s2 + $0x24] ss:$16 sps:$4 sm:$0xff]  }
  0x56   :  { %420 = vmatprep.subr.bf16.mxu0 %v2274_v58  ;;  %473 = vmatprep.subr.bf16.mxu1 %v2276_v60  ;;  %3900 = vst [vmem:[#allocation36_spill] sm:$0xff] %v3270_v31  ;;  %3901 = vst [vmem:[#allocation37_spill] sm:$0xff] %v3277_v32  ;;  %v3283_v33 = vld [vmem:[%s3833_s2 + $0x2c] ss:$16 sps:$4 sm:$0xff]   ;;  %v3288_v34 = vld [vmem:[%s3833_s2 + $0x20] ss:$16 sps:$4 sm:$0xff]  }
  0x57   :  { %3902 = vst [vmem:[#allocation38_spill] sm:$0xff] %v3283_v33  ;;  %3903 = vst [vmem:[#allocation39_spill] sm:$0xff] %v3288_v34  ;;  %v3293_v35 = vld [vmem:[%s3833_s2 + $0x28] ss:$16 sps:$4 sm:$0xff]   ;;  %v3298_v36 = vld [vmem:[%s3833_s2 + $0x4] ss:$16 sps:$4 sm:$0xff]  }
  0x58   :  { %2294 = vmatmul.mubr.msk.bf16.gmra.mxu0 %vm295_vm0, %v102_v63  ;;  %2296 = vmatmul.mubr.msk.bf16.gmra.mxu1 %vm295_vm0, %v102_v63  ;;  %3904 = vst [vmem:[#allocation40_spill] sm:$0xff] %v3293_v35  ;;  %3905 = vst [vmem:[#allocation41_spill] sm:$0xff] %v3298_v36  ;;  %v3304_v37 = vld [vmem:[%s3833_s2 + $0xc] ss:$16 sps:$4 sm:$0xff]   ;;  %v3312_v38 = vld [vmem:[%s3833_s2] ss:$16 sps:$4 sm:$0xff]  }
  0x59   :  { %421 = vmatpush1.bf16.msra.mxu0 %v2273_v2  ;;  %474 = vmatpush1.bf16.msra.mxu1 %v2275_v3  ;;  %3906 = vst [vmem:[#allocation42_spill] sm:$0xff] %v3304_v37  ;;  %3907 = vst [vmem:[#allocation43_spill] sm:$0xff] %v3312_v38  ;;  %v3317_v39 = vld [vmem:[%s3833_s2 + $0x8] ss:$16 sps:$4 sm:$0xff]   ;;  %v3319_v40 = vld [vmem:[#allocation3 + $0xe4] ss:$16 sps:$4 sm:$0xff]  }
  0x5a   :  { %422 = vmatprep.subr.bf16.mxu0 %v2266_v4  ;;  %475 = vmatprep.subr.bf16.mxu1 %v2268_v5  ;;  %3908 = vst [vmem:[#allocation44_spill] sm:$0xff] %v3317_v39  ;;  %3909 = vst [vmem:[#allocation45_spill] sm:$0xff] %v3319_v40  ;;  %v3322_v41 = vld [vmem:[#allocation3 + $0xec] ss:$16 sps:$4 sm:$0xff]   ;;  %v3327_v42 = vld [vmem:[#allocation3 + $0xe0] ss:$16 sps:$4 sm:$0xff]  }
  0x5b   :  { %440 = vmatprep.mubr.bf16.mxu0 %v3841_v0  ;;  %493 = vmatprep.mubr.bf16.mxu1 %v3841_v0  ;;  %3910 = vst [vmem:[#allocation46_spill] sm:$0xff] %v3322_v41  ;;  %v3332_v43 = vld [vmem:[#allocation3 + $0xe8] ss:$16 sps:$4 sm:$0xff]   ;;  %v3337_v45 = vld [vmem:[#allocation3 + $0xcc] ss:$16 sps:$4 sm:$0xff]  }
  0x5c   :  { %v3342_v46 = vld [vmem:[#allocation3 + $0xc0] ss:$16 sps:$4 sm:$0xff]   ;;  %v3346_v47 = vld [vmem:[#allocation3 + $0xc8] ss:$16 sps:$4 sm:$0xff]   ;;  %v3348_v48 = vld [vmem:[#allocation3 + $0xa4] ss:$16 sps:$4 sm:$0xff]  }
  0x5d   :  { %423 = vmatpush1.bf16.msra.mxu0 %v2265_v6  ;;  %476 = vmatpush1.bf16.msra.mxu1 %v2267_v7  ;;  %v3351_v49 = vld [vmem:[#allocation3 + $0xac] ss:$16 sps:$4 sm:$0xff]   ;;  %v3356_v50 = vld [vmem:[#allocation3 + $0xa0] ss:$16 sps:$4 sm:$0xff]   ;;  %v3360_v51 = vld [vmem:[#allocation3 + $0xa8] ss:$16 sps:$4 sm:$0xff]  }
  0x5e   :  { %886 = vmatprep.subr.bf16.mxu0 %v3124_v8  ;;  %927 = vmatprep.subr.bf16.mxu1 %v3130_v9  ;;  %v3362_v52 = vld [vmem:[#allocation3 + $0x84] ss:$16 sps:$4 sm:$0xff]   ;;  %v3365_v53 = vld [vmem:[#allocation3 + $0x8c] ss:$16 sps:$4 sm:$0xff]   ;;  %v3368_v54 = vld [vmem:[#allocation3 + $0x80] ss:$16 sps:$4 sm:$0xff]  }
  0x5f   :  { %v3372_v55 = vld [vmem:[#allocation3 + $0x88] ss:$16 sps:$4 sm:$0xff]   ;;  %v3374_v56 = vld [vmem:[#allocation3 + $0x64] ss:$16 sps:$4 sm:$0xff]   ;;  %v3377_v57 = vld [vmem:[#allocation3 + $0x6c] ss:$16 sps:$4 sm:$0xff]  }
  0x60   :  { %2297 = vmatmul.mubr.msk.bf16.vlgmr.msra.gmra.mxu0 %vm295_vm0, %v3078_v44  ;;  %2299 = vmatmul.mubr.msk.bf16.vlgmr.msra.gmra.mxu1 %vm295_vm0, %v3078_v44  ;;  %v3334_v44 = vld [vmem:[#allocation3 + $0xc4] ss:$16 sps:$4 sm:$0xff]   ;;  %v3380_v58 = vld [vmem:[#allocation3 + $0x60] ss:$16 sps:$4 sm:$0xff]   ;;  %v3384_v59 = vld [vmem:[#allocation3 + $0x68] ss:$16 sps:$4 sm:$0xff]  }
  0x61   :  { %887 = vmatpush1.bf16.msra.mxu0 %v3136_v10  ;;  %928 = vmatpush1.bf16.msra.mxu1 %v3141_v11  ;;  %v3386_v60 = vld [vmem:[#allocation3 + $0x44] ss:$16 sps:$4 sm:$0xff]   ;;  %v3389_v61 = vld [vmem:[#allocation3 + $0x4c] ss:$16 sps:$4 sm:$0xff]   ;;  %v3392_v62 = vld [vmem:[#allocation3 + $0x40] ss:$16 sps:$4 sm:$0xff]  }
  0x62   :  { %888 = vmatprep.subr.bf16.mxu0 %v3147_v12  ;;  %929 = vmatprep.subr.bf16.mxu1 %v3153_v13  ;;  %v3398_v1 = vld [vmem:[#allocation3 + $0x24] ss:$16 sps:$4 sm:$0xff]   ;;  %v3401_v2 = vld [vmem:[#allocation3 + $0x2c] ss:$16 sps:$4 sm:$0xff]   ;;  %v3404_v3 = vld [vmem:[#allocation3 + $0x20] ss:$16 sps:$4 sm:$0xff]  }
  0x63   :  { %450 = vmatprep.mubr.bf16.mxu0 %v3841_v0  ;;  %503 = vmatprep.mubr.bf16.mxu1 %v3841_v0  ;;  %3911 = vst [vmem:[#allocation47_spill] sm:$0xff] %v3401_v2  ;;  %v3408_v4 = vld [vmem:[#allocation3 + $0x28] ss:$16 sps:$4 sm:$0xff]   ;;  %v3410_v5 = vld [vmem:[#allocation3 + $0x4] ss:$16 sps:$4 sm:$0xff]  }
  0x64   :  { %v3413_v6 = vld [vmem:[#allocation3 + $0xc] ss:$16 sps:$4 sm:$0xff]   ;;  %v3416_v7 = vld [vmem:[#allocation3] ss:$16 sps:$4 sm:$0xff]  }
  0x65   :  { %889 = vmatpush1.bf16.msra.mxu0 %v3160_v14  ;;  %930 = vmatpush1.bf16.msra.mxu1 %v3168_v15 }
  0x66   :  { %890 = vmatprep.subr.bf16.mxu0 %v3175_v16  ;;  %931 = vmatprep.subr.bf16.mxu1 %v3181_v17 }
  0x68   :  { %2298 = vmatmul.mubr.msk.bf16.gmra.mxu0 %vm295_vm0, %v102_v63  ;;  %2300 = vmatmul.mubr.msk.bf16.gmra.mxu1 %vm295_vm0, %v102_v63  ;;  %v3396_v63 = vld [vmem:[#allocation3 + $0x48] ss:$16 sps:$4 sm:$0xff]  }
  0x69   :  { %891 = vmatpush1.bf16.msra.mxu0 %v3189_v18  ;;  %932 = vmatpush1.bf16.msra.mxu1 %v3194_v19 }
  0x6a   :  { %892 = vmatprep.subr.bf16.mxu0 %v3201_v20  ;;  %933 = vmatprep.subr.bf16.mxu1 %v3207_v21 }
  0x6b   :  { %918 = vmatprep.mubr.bf16.mxu0 %v3841_v0  ;;  %959 = vmatprep.mubr.bf16.mxu1 %v3841_v0 }
  0x6d   :  { %893 = vmatpush1.bf16.msra.mxu0 %v3212_v22  ;;  %934 = vmatpush1.bf16.msra.mxu1 %v3219_v23 }
  0x6e   :  { %894 = vmatprep.subr.bf16.mxu0 %v3227_v24  ;;  %935 = vmatprep.subr.bf16.mxu1 %v3233_v25 }
  0x71   :  { %895 = vmatpush1.bf16.msra.mxu0 %v3241_v26  ;;  %936 = vmatpush1.bf16.msra.mxu1 %v3246_v27 }
  0x72   :  { %896 = vmatprep.subr.bf16.mxu0 %v3253_v28  ;;  %937 = vmatprep.subr.bf16.mxu1 %v3259_v29 }
  0x75   :  { %897 = vmatpush1.bf16.msra.mxu0 %v3264_v30  ;;  %938 = vmatpush1.bf16.msra.mxu1 %v3270_v31 }
  0x76   :  { %898 = vmatprep.subr.bf16.mxu0 %v3277_v32  ;;  %939 = vmatprep.subr.bf16.mxu1 %v3283_v33 }
  0x79   :  { %899 = vmatpush1.bf16.msra.mxu0 %v3288_v34  ;;  %940 = vmatpush1.bf16.msra.mxu1 %v3293_v35 }
  0x7a   :  { %900 = vmatprep.subr.bf16.mxu0 %v3298_v36  ;;  %941 = vmatprep.subr.bf16.mxu1 %v3304_v37 }
  0x7d   :  { %901 = vmatpush1.bf16.msra.mxu0 %v3312_v38  ;;  %942 = vmatpush1.bf16.msra.mxu1 %v3317_v39 }
  0x7e   :  { %1166 = vmatprep.subr.bf16.mxu0 %v3319_v40  ;;  %1207 = vmatprep.subr.bf16.mxu1 %v3322_v41 }
  0x80   :  { %919 = vmatmul.mubr.bf16.vlgmr.msra.gmra.mxu0 %v3841_v0  ;;  %960 = vmatmul.mubr.bf16.vlgmr.msra.gmra.mxu1 %v3841_v0 }
  0x81   :  { %1167 = vmatpush1.bf16.msra.mxu0 %v3327_v42  ;;  %1208 = vmatpush1.bf16.msra.mxu1 %v3332_v43 }
  0x82   :  { %1168 = vmatprep.subr.bf16.mxu0 %v3334_v44  ;;  %1209 = vmatprep.subr.bf16.mxu1 %v3337_v45 }
  0x83   :  { %1198 = vmatprep.mubr.bf16.mxu0 %v3841_v0  ;;  %1239 = vmatprep.mubr.bf16.mxu1 %v3841_v0  ;;  %v3420_v0 = vld [vmem:[#allocation3 + $0x8] ss:$16 sps:$4 sm:$0xff]  }
  0x85   :  { %1169 = vmatpush1.bf16.msra.mxu0 %v3342_v46  ;;  %1210 = vmatpush1.bf16.msra.mxu1 %v3346_v47 }
  0x86   :  { %1170 = vmatprep.subr.bf16.mxu0 %v3348_v48  ;;  %1211 = vmatprep.subr.bf16.mxu1 %v3351_v49 }
  0x89   :  { %1171 = vmatpush1.bf16.msra.mxu0 %v3356_v50  ;;  %1212 = vmatpush1.bf16.msra.mxu1 %v3360_v51 }
  0x8a   :  { %1172 = vmatprep.subr.bf16.mxu0 %v3362_v52  ;;  %1213 = vmatprep.subr.bf16.mxu1 %v3365_v53 }
  0x8d   :  { %1173 = vmatpush1.bf16.msra.mxu0 %v3368_v54  ;;  %1214 = vmatpush1.bf16.msra.mxu1 %v3372_v55 }
  0x8e   :  { %1174 = vmatprep.subr.bf16.mxu0 %v3374_v56  ;;  %1215 = vmatprep.subr.bf16.mxu1 %v3377_v57 }
  0x91   :  { %1175 = vmatpush1.bf16.msra.mxu0 %v3380_v58  ;;  %1216 = vmatpush1.bf16.msra.mxu1 %v3384_v59 }
  0x92   :  { %1176 = vmatprep.subr.bf16.mxu0 %v3386_v60  ;;  %1217 = vmatprep.subr.bf16.mxu1 %v3389_v61 }
  0x95   :  { %1177 = vmatpush1.bf16.msra.mxu0 %v3392_v62  ;;  %1218 = vmatpush1.bf16.msra.mxu1 %v3396_v63 }
  0x96   :  { %1178 = vmatprep.subr.bf16.mxu0 %v3398_v1  ;;  %1219 = vmatprep.subr.bf16.mxu1 %v3401_v2  ;;  %v3912_v2 = vmov 0  }
  0x99   :  { %1179 = vmatpush1.bf16.msra.mxu0 %v3404_v3  ;;  %1220 = vmatpush1.bf16.msra.mxu1 %v3408_v4 }
  0x9a   :  { %1180 = vmatprep.subr.bf16.mxu0 %v3410_v5  ;;  %1221 = vmatprep.subr.bf16.mxu1 %v3413_v6 }
  0x9d   :  { %1181 = vmatpush1.bf16.msra.mxu0 %v3416_v7  ;;  %1222 = vmatpush1.bf16.msra.mxu1 %v3420_v0 }
  0x9e   :  { %1314 = vmatprep.subr.bf16.mxu0 %v3124_v8  ;;  %1355 = vmatprep.subr.bf16.mxu1 %v3130_v9 }
  0xa0   :  { %1199 = vmatmul.mubr.bf16.vlgmr.msra.gmra.mxu0 %v3912_v2  ;;  %1240 = vmatmul.mubr.bf16.vlgmr.msra.gmra.mxu1 %v3912_v2 }
  0xa1   :  { %1315 = vmatpush1.bf16.msra.mxu0 %v3136_v10  ;;  %1356 = vmatpush1.bf16.msra.mxu1 %v3141_v11 }
  0xa2   :  { %1316 = vmatprep.subr.bf16.mxu0 %v3147_v12  ;;  %1357 = vmatprep.subr.bf16.mxu1 %v3153_v13 }
  0xa3   :  { %1346 = vmatprep.mubr.bf16.mxu0 %v3912_v2  ;;  %1387 = vmatprep.mubr.bf16.mxu1 %v3912_v2 }
  0xa5   :  { %1317 = vmatpush1.bf16.msra.mxu0 %v3160_v14  ;;  %1358 = vmatpush1.bf16.msra.mxu1 %v3168_v15 }
  0xa6   :  { %1318 = vmatprep.subr.bf16.mxu0 %v3175_v16  ;;  %1359 = vmatprep.subr.bf16.mxu1 %v3181_v17 }
  0xa9   :  { %1319 = vmatpush1.bf16.msra.mxu0 %v3189_v18  ;;  %1360 = vmatpush1.bf16.msra.mxu1 %v3194_v19 }
  0xaa   :  { %1320 = vmatprep.subr.bf16.mxu0 %v3201_v20  ;;  %1361 = vmatprep.subr.bf16.mxu1 %v3207_v21 }
  0xad   :  { %1321 = vmatpush1.bf16.msra.mxu0 %v3212_v22  ;;  %1362 = vmatpush1.bf16.msra.mxu1 %v3219_v23 }
  0xae   :  { %1322 = vmatprep.subr.bf16.mxu0 %v3227_v24  ;;  %1363 = vmatprep.subr.bf16.mxu1 %v3233_v25 }
  0xb1   :  { %1323 = vmatpush1.bf16.msra.mxu0 %v3241_v26  ;;  %1364 = vmatpush1.bf16.msra.mxu1 %v3246_v27 }
  0xb2   :  { %1324 = vmatprep.subr.bf16.mxu0 %v3253_v28  ;;  %1365 = vmatprep.subr.bf16.mxu1 %v3259_v29  ;;  %v690_v28 = vld [vmem:[#allocation5] sm:$0xf] }
  0xb5   :  { %1325 = vmatpush1.bf16.msra.mxu0 %v3264_v30  ;;  %1366 = vmatpush1.bf16.msra.mxu1 %v3270_v31  ;;  %v702_v31 = vlaneseq }
  0xb6   :  { %1326 = vmatprep.subr.bf16.mxu0 %v3277_v32  ;;  %1367 = vmatprep.subr.bf16.mxu1 %v3283_v33 }
  0xb9   :  { %1327 = vmatpush1.bf16.msra.mxu0 %v3288_v34  ;;  %1368 = vmatpush1.bf16.msra.mxu1 %v3293_v35  ;;  %v3467_v34 = vshrl.u32 %v702_v31, 7 }
  0xba   :  { %1328 = vmatprep.subr.bf16.mxu0 %v3298_v36  ;;  %1369 = vmatprep.subr.bf16.mxu1 %v3304_v37 }
  0xbd   :  { %1329 = vmatpush1.bf16.msra.mxu0 %v3312_v38  ;;  %1370 = vmatpush1.bf16.msra.mxu1 %v3317_v39  ;;  %v712_v38 = vsub.s32 2, %v3467_v34  ;;  %v716_v39 = vsub.s32 3, %v3467_v34 }
  0xbe   :  { %1414 = vmatprep.subr.bf16.mxu0 %v3319_v40  ;;  %1455 = vmatprep.subr.bf16.mxu1 %v3322_v41  ;;  %v704_v40 = vsub.s32 0, %v3467_v34  ;;  %v708_v41 = vsub.s32 1, %v3467_v34 }
  0xbf   :  { %v3477_v24 = vrot.slane %v690_v28, %v712_v38  ;;  %v3479_v23 = vrot.slane %v690_v28, %v716_v39 }
  0xc0   :  { %v3481_v19 = vrot.slane %v690_v28, %v704_v40  ;;  %v3483_v18 = vrot.slane %v690_v28, %v708_v41 }
 0x110   :  { %v3463_v32 = vpop.f32.mrf.mxu0  ;;  %v3465_v33 = vpop.f32.mrf.mxu1 }
 0x112   :  { %v3469_v35 = vpop.f32.mrf.mxu0  ;;  %v3471_v36 = vpop.f32.mrf.mxu1 }
 0x114   :  { %v340_v37 = vpop.f32.mrf.mxu0  ;;  %v393_v30 = vpop.f32.mrf.mxu1 }
 0x116   :  { %v342_v29 = vpop.f32.mrf.mxu0  ;;  %v395_v26 = vpop.f32.mrf.mxu1 }
 0x117   :  { %v2426_v27 = vpack.c.bf16 %v342_v29, %v340_v37  ;;  %v2427_v25 = vpack.c.bf16 %v395_v26, %v393_v30 }
 0x118   :  { %v346_v31 = vpop.f32.mrf.mxu0  ;;  %v399_v20 = vpop.f32.mrf.mxu1 }
 0x119   :  { %v1305_v22 = vunpack.c.l.bf16 %v2426_v27  ;;  %v1306_v21 = vunpack.c.h.bf16 %v2426_v27  ;;  %v1307_v16 = vunpack.c.l.bf16 %v2427_v25  ;;  %v1308_v34 = vunpack.c.h.bf16 %v2427_v25 }
 0x11a   :  { %v348_v17 = vpop.f32.mrf.mxu0  ;;  %v401_v14 = vpop.f32.mrf.mxu1 }
 0x11b   :  { %v2430_v15 = vpack.c.bf16 %v348_v17, %v346_v31  ;;  %v3486_v29 = vadd.f32 %v1305_v22, %v3481_v19  ;;  %v3489_v26 = vadd.f32 %v1306_v21, %v3483_v18  ;;  %v2431_v37 = vpack.c.bf16 %v401_v14, %v399_v20 }
 0x11c   :  { %v350_v30 = vpop.f32.mrf.mxu0  ;;  %v3492_v27 = vadd.f32 %v1307_v16, %v3477_v24  ;;  %v3495_v13 = vadd.f32 %v1308_v34, %v3479_v23  ;;  %v403_v11 = vpop.f32.mrf.mxu1 }
 0x11d   :  { %3913 = vst [vmem:[#allocation48_spill] sm:$0xff] %v3486_v29  ;;  %3914 = vst [vmem:[#allocation49_spill] sm:$0xff] %v3489_v26  ;;  %v1550_v28 = vunpack.c.l.bf16 %v2430_v15  ;;  %v1551_v12 = vunpack.c.h.bf16 %v2430_v15  ;;  %v1552_v17 = vunpack.c.l.bf16 %v2431_v37  ;;  %v1553_v31 = vunpack.c.h.bf16 %v2431_v37  ;;  %v691_v29 = vld [vmem:[#allocation7] sm:$0xf] }
 0x11e   :  { %3915 = vst [vmem:[#allocation50_spill] sm:$0xff] %v3492_v27  ;;  %3916 = vst [vmem:[#allocation51_spill] sm:$0xff] %v3495_v13  ;;  %v352_v25 = vpop.f32.mrf.mxu0  ;;  %v405_v22 = vpop.f32.mrf.mxu1  ;;  %v3509_v9 = vrot.slane %v691_v29, %v704_v40 }
 0x11f   :  { %v2434_v10 = vpack.c.bf16 %v352_v25, %v350_v30  ;;  %v3498_v21 = vadd.f32 %v1550_v28, %v3481_v19  ;;  %v3501_v14 = vadd.f32 %v1551_v12, %v3483_v18  ;;  %v2435_v20 = vpack.c.bf16 %v405_v22, %v403_v11 }
 0x120   :  { %v442_v16 = vpop.f32.mrf.mxu0  ;;  %v3504_v34 = vadd.f32 %v1552_v17, %v3477_v24  ;;  %v3507_v15 = vadd.f32 %v1553_v31, %v3479_v23  ;;  %v495_v37 = vpop.f32.mrf.mxu1  ;;  %v3511_v28 = vrot.slane %v691_v29, %v708_v41  ;;  %v3521_v22 = vrot.slane %v691_v29, %v716_v39 }
 0x121   :  { %3917 = vst [vmem:[#allocation52_spill] sm:$0xff] %v3498_v21  ;;  %3918 = vst [vmem:[#allocation53_spill] sm:$0xff] %v3501_v14  ;;  %v1792_v13 = vunpack.c.l.bf16 %v2434_v10  ;;  %v1793_v27 = vunpack.c.h.bf16 %v2434_v10  ;;  %v1794_v25 = vunpack.c.l.bf16 %v2435_v20  ;;  %v1795_v26 = vunpack.c.h.bf16 %v2435_v20 }
 0x122   :  { %3919 = vst [vmem:[#allocation54_spill] sm:$0xff] %v3504_v34  ;;  %3920 = vst [vmem:[#allocation55_spill] sm:$0xff] %v3507_v15  ;;  %v444_v30 = vpop.f32.mrf.mxu0  ;;  %v497_v14 = vpop.f32.mrf.mxu1  ;;  %v3513_v21 = vrot.slane %v691_v29, %v712_v38 }
 0x123   :  { %v2424_v12 = vpack.c.bf16 %v444_v30, %v442_v16  ;;  %v3516_v11 = vadd.f32 %v1792_v13, %v3481_v19  ;;  %v3519_v17 = vadd.f32 %v1793_v27, %v3483_v18  ;;  %v2425_v10 = vpack.c.bf16 %v497_v14, %v495_v37 }
 0x124   :  { %v446_v31 = vpop.f32.mrf.mxu0  ;;  %v3524_v20 = vadd.f32 %v1794_v25, %v3477_v24  ;;  %v3527_v40 = vadd.f32 %v1795_v26, %v3479_v23  ;;  %v499_v38 = vpop.f32.mrf.mxu1 }
 0x125   :  { %3921 = vst [vmem:[#allocation56_spill] sm:$0xff] %v3516_v11  ;;  %3922 = vst [vmem:[#allocation57_spill] sm:$0xff] %v3519_v17  ;;  %v1889_v41 = vunpack.c.l.bf16 %v2424_v12  ;;  %v1890_v16 = vunpack.c.h.bf16 %v2424_v12  ;;  %v1891_v15 = vunpack.c.l.bf16 %v2425_v10  ;;  %v1892_v13 = vunpack.c.h.bf16 %v2425_v10 }
 0x126   :  { %3923 = vst [vmem:[#allocation58_spill] sm:$0xff] %v3524_v20  ;;  %3924 = vst [vmem:[#allocation59_spill] sm:$0xff] %v3527_v40  ;;  %v448_v30 = vpop.f32.mrf.mxu0  ;;  %v501_v34 = vpop.f32.mrf.mxu1 }
 0x127   :  { %v2428_v11 = vpack.c.bf16 %v448_v30, %v446_v31  ;;  %v3530_v27 = vadd.f32 %v1889_v41, %v3509_v9  ;;  %v3533_v39 = vadd.f32 %v1890_v16, %v3511_v28  ;;  %v2429_v14 = vpack.c.bf16 %v501_v34, %v499_v38 }
 0x128   :  { %v452_v29 = vpop.f32.mrf.mxu0  ;;  %v3536_v37 = vadd.f32 %v1891_v15, %v3513_v21  ;;  %v3539_v26 = vadd.f32 %v1892_v13, %v3521_v22  ;;  %v505_v40 = vpop.f32.mrf.mxu1 }
 0x129   :  { %3925 = vst [vmem:[#allocation60_spill] sm:$0xff] %v3530_v27  ;;  %3926 = vst [vmem:[#allocation61_spill] sm:$0xff] %v3533_v39  ;;  %v1647_v25 = vunpack.c.l.bf16 %v2428_v11  ;;  %v1648_v12 = vunpack.c.h.bf16 %v2428_v11  ;;  %v1649_v10 = vunpack.c.l.bf16 %v2429_v14  ;;  %v1650_v31 = vunpack.c.h.bf16 %v2429_v14 }
 0x12a   :  { %3927 = vst [vmem:[#allocation62_spill] sm:$0xff] %v3536_v37  ;;  %3928 = vst [vmem:[#allocation63_spill] sm:$0xff] %v3539_v26  ;;  %v454_v30 = vpop.f32.mrf.mxu0  ;;  %v507_v41 = vpop.f32.mrf.mxu1 }
 0x12b   :  { %v2432_v20 = vpack.c.bf16 %v454_v30, %v452_v29  ;;  %v3542_v27 = vadd.f32 %v1647_v25, %v3509_v9  ;;  %v3545_v16 = vadd.f32 %v1648_v12, %v3511_v28  ;;  %v2433_v34 = vpack.c.bf16 %v507_v41, %v505_v40 }
 0x12c   :  { %v3548_v15 = vadd.f32 %v1649_v10, %v3513_v21  ;;  %v3551_v38 = vadd.f32 %v1650_v31, %v3521_v22  ;;  %v2422_v10 = vpack.c.bf16 %v3469_v35, %v3463_v32  ;;  %v509_v31 = vpop.f32.mrf.mxu1  ;;  %v456_v30 = vpop.f32.mrf.mxu0 }
 0x12d   :  { %3929 = vst [vmem:[#allocation64_spill] sm:$0xff] %v3542_v27  ;;  %3930 = vst [vmem:[#allocation65_spill] sm:$0xff] %v3545_v16  ;;  %v1405_v11 = vunpack.c.l.bf16 %v2432_v20  ;;  %v1406_v13 = vunpack.c.h.bf16 %v2432_v20  ;;  %v1407_v26 = vunpack.c.l.bf16 %v2433_v34  ;;  %v1408_v14 = vunpack.c.h.bf16 %v2433_v34 }
 0x12e   :  { %3931 = vst [vmem:[#allocation66_spill] sm:$0xff] %v3548_v15  ;;  %3932 = vst [vmem:[#allocation67_spill] sm:$0xff] %v3551_v38  ;;  %v697_v20 = vunpack.c.l.bf16 %v2422_v10  ;;  %v698_v41 = vunpack.c.h.bf16 %v2422_v10  ;;  %v511_v34 = vpop.f32.mrf.mxu1  ;;  %v458_v37 = vpop.f32.mrf.mxu0 }
 0x12f   :  { %v3554_v29 = vadd.f32 %v1405_v11, %v3509_v9  ;;  %v3557_v25 = vadd.f32 %v1406_v13, %v3511_v28  ;;  %v3560_v12 = vadd.f32 %v1407_v26, %v3513_v21  ;;  %v3563_v40 = vadd.f32 %v1408_v14, %v3521_v22 }
 0x130   :  { %v722_v11 = vadd.f32 %v3481_v19, %v697_v20  ;;  %v723_v26 = vadd.f32 %v3483_v18, %v698_v41  ;;  %v2423_v14 = vpack.c.bf16 %v3471_v36, %v3465_v33 }
 0x131   :  { %3933 = vst [vmem:[#allocation68_spill] sm:$0xff] %v3560_v12  ;;  %3934 = vst [vmem:[#allocation69_spill] sm:$0xff] %v3563_v40 }
 0x132   :  { %v699_v40 = vunpack.c.l.bf16 %v2423_v14  ;;  %v700_v20 = vunpack.c.h.bf16 %v2423_v14 }
 0x134   :  { %v725_v41 = vadd.f32 %v3479_v23, %v700_v20 }
 0x140   :  { %v920_v39 = vpop.f32.mrf.mxu0  ;;  %v961_v17 = vpop.f32.mrf.mxu1 }
 0x141   :  { %v968_v13 = vadd.f32 %v920_v39, %v722_v11  ;;  %v724_v39 = vadd.f32 %v3477_v24, %v699_v40 }
 0x142   :  { %v922_v38 = vpop.f32.mrf.mxu0  ;;  %v963_v32 = vpop.f32.mrf.mxu1 }
 0x143   :  { %v2381_v15 = vmul.f32 -1.442695, %v968_v13  ;;  %v969_v16 = vadd.f32 %v922_v38, %v723_v26  ;;  %v970_v11 = vadd.f32 %v961_v17, %v724_v39  ;;  %v971_v36 = vadd.f32 %v963_v32, %v725_v41 }
 0x144   :  { %v924_v35 = vpop.f32.mrf.mxu0  ;;  %v965_v10 = vpop.f32.mrf.mxu1  ;;  %v2437_v32 = vpack.c.bf16 %v511_v34, %v509_v31 }
 0x145   :  { %2620 = vpow2.f32 %v2381_v15  ;;  %v2382_v27 = vmul.f32 -1.442695, %v969_v16  ;;  %v2383_v18 = vmul.f32 -1.442695, %v970_v11  ;;  %v2436_v16 = vpack.c.bf16 %v458_v37, %v456_v30 }
 0x146   :  { %v925_v12 = vpop.f32.mrf.mxu0  ;;  %v966_v19 = vpop.f32.mrf.mxu1  ;;  %v980_v34 = vunpack.c.h.bf16 %v2437_v32 }
 0x147   :  { %2622 = vpow2.f32 %v2382_v27  ;;  %v977_v12 = vunpack.c.l.bf16 %v2436_v16  ;;  %v978_v27 = vunpack.c.h.bf16 %v2436_v16 }
 0x148   :  { %2624 = vpow2.f32 %v2383_v18 }
 0x149   :  { %v1002_v26 = vadd.f32 %v3509_v9, %v977_v12  ;;  %v1003_v23 = vadd.f32 %v3511_v28, %v978_v27  ;;  %v1005_v27 = vadd.f32 %v3521_v22, %v980_v34  ;;  %v3940_v34 = vld [vmem:[#allocation18_spill] sm:$0xff] }
 0x152   :  { %v2621_v33 = vpop.eup %2620 }
 0x153   :  { %v1261_v13 = vadd.f32 1.0, %v2621_v33 }
 0x154   :  { %v2623_v38 = vpop.eup %2622 }
 0x155   :  { %2626 = vrcp.f32 %v1261_v13  ;;  %v1262_v15 = vadd.f32 1.0, %v2623_v38  ;;  %v2625_v40 = vpop.eup %2624  ;;  %v979_v13 = vunpack.c.l.bf16 %v2437_v32 }
 0x156   :  { %2628 = vtanh.f32 %v971_v36  ;;  %v1263_v37 = vadd.f32 1.0, %v2625_v40 }
 0x157   :  { %2630 = vrcp.f32 %v1262_v15  ;;  %v1004_v31 = vadd.f32 %v3513_v21, %v979_v13  ;;  %v3936_v13 = vld [vmem:[#allocation14_spill] sm:$0xff] }
 0x160   :  { %v1200_v24 = vpop.f32.mrf.mxu0  ;;  %v1241_v14 = vpop.f32.mrf.mxu1 }
 0x161   :  { %v1248_v17 = vadd.f32 %v1200_v24, %v1002_v26  ;;  %v1250_v16 = vadd.f32 %v1241_v14, %v1004_v31  ;;  %v3939_v31 = vld [vmem:[#allocation17_spill] sm:$0xff] }
 0x162   :  { %v2627_v35 = vpop.eup %2626  ;;  %v1202_v10 = vpop.f32.mrf.mxu0 }
 0x163   :  { %v2629_v19 = vpop.eup %2628  ;;  %v2384_v39 = vmul.f32 -1.442695, %v1248_v17  ;;  %v1249_v20 = vadd.f32 %v1202_v10, %v1003_v23  ;;  %v1243_v11 = vpop.f32.mrf.mxu1  ;;  %v2386_v12 = vmul.f32 -1.442695, %v1250_v16  ;;  %v3941_v16 = vld [vmem:[#allocation19_spill] sm:$0xff] }
 0x164   :  { %v2631_v18 = vpop.eup %2630  ;;  %v1204_v30 = vpop.f32.mrf.mxu0  ;;  %v1272_v33 = vmul.f32 %v2629_v19, %v2627_v35  ;;  %v1251_v24 = vadd.f32 %v1243_v11, %v1005_v27  ;;  %v3944_v27 = vld [vmem:[#allocation22_spill] sm:$0xff] }
 0x165   :  { %v1271_v41 = vmul.f32 0.0, %v2631_v18  ;;  %2632 = vpow2.f32 %v2384_v39  ;;  %v2385_v9 = vmul.f32 -1.442695, %v1249_v20  ;;  %v1245_v36 = vpop.f32.mrf.mxu1  ;;  %v3935_v30 = vld [vmem:[#allocation47_spill] sm:$0xff] }
 0x166   :  { %v1205_v38 = vpop.f32.mrf.mxu0 }
 0x167   :  { %v3575_v15 = vadd.f32 %v1272_v33, %v1271_v41  ;;  %2634 = vpow2.f32 %v2385_v9  ;;  %v1246_v28 = vpop.f32.mrf.mxu1  ;;  %v3937_v38 = vld [vmem:[#allocation15_spill] sm:$0xff] }
 0x168   :  { %2636 = vrcp.f32 %v1263_v37  ;;  %v3938_v28 = vld [vmem:[#allocation16_spill] sm:$0xff] }
 0x169   :  { %2638 = vtanh.f32 %v3575_v15 }
 0x16a   :  { %2640 = vpow2.f32 %v2386_v12  ;;  %v3942_v12 = vld [vmem:[#allocation20_spill] sm:$0xff] }
 0x172   :  { %v2633_v26 = vpop.eup %2632 }
 0x173   :  { %v1285_v40 = vadd.f32 1.0, %v2633_v26  ;;  %v3945_v26 = vld [vmem:[#allocation23_spill] sm:$0xff] }
 0x174   :  { %v2635_v17 = vpop.eup %2634 }
 0x175   :  { %v2637_v23 = vpop.eup %2636  ;;  %2642 = vrcp.f32 %v1285_v40  ;;  %v1286_v35 = vadd.f32 1.0, %v2635_v17  ;;  %v3947_v40 = vld [vmem:[#allocation25_spill] sm:$0xff]  ;;  %v3948_v17 = vld [vmem:[#allocation26_spill] sm:$0xff] }
 0x176   :  { %v2639_v10 = vpop.eup %2638  ;;  %2644 = vtanh.f32 %v1251_v24  ;;  %v3946_v24 = vld [vmem:[#allocation24_spill] sm:$0xff] }
 0x177   :  { %2646 = vrcp.f32 %v1286_v35  ;;  %v1275_v19 = vmul.f32 %v2639_v10, %v2637_v23  ;;  %v2641_v21 = vpop.eup %2640  ;;  %v3949_v23 = vld [vmem:[#allocation27_spill] sm:$0xff]  ;;  %v3950_v35 = vld [vmem:[#allocation28_spill] sm:$0xff]  ;;  %v3951_v10 = vld [vmem:[#allocation29_spill] sm:$0xff] }
 0x178   :  { %v1287_v20 = vadd.f32 1.0, %v2641_v21  ;;  %v3954_v21 = vld [vmem:[#allocation32_spill] sm:$0xff] }
 0x179   :  { %v1313_v39 = vpack.c.bf16 %v1275_v19, %v1275_v19  ;;  %v3952_v19 = vld [vmem:[#allocation30_spill] sm:$0xff] }
 0x17a   :  { %2648 = vrcp.f32 %v1287_v20  ;;  %v3958_v20 = vld [vmem:[#allocation36_spill] sm:$0xff] }
 0x17b   :  { %1347 = vmatmul.mubr.bf16.vlgmr.msra.gmra.mxu0 %v1313_v39  ;;  %1388 = vmatmul.mubr.bf16.vlgmr.msra.gmra.mxu1 %v1313_v39  ;;  %v3953_v39 = vld [vmem:[#allocation31_spill] sm:$0xff] }
 0x17c   :  { %1415 = vmatpush1.bf16.msra.mxu0 %v3327_v42  ;;  %1456 = vmatpush1.bf16.msra.mxu1 %v3332_v43 }
 0x17d   :  { %1416 = vmatprep.subr.bf16.mxu0 %v3334_v44  ;;  %1457 = vmatprep.subr.bf16.mxu1 %v3337_v45 }
 0x17e   :  { %1446 = vmatprep.mubr.bf16.mxu0 %v3912_v2  ;;  %1487 = vmatprep.mubr.bf16.mxu1 %v3912_v2 }
 0x180   :  { %1417 = vmatpush1.bf16.msra.mxu0 %v3342_v46  ;;  %1458 = vmatpush1.bf16.msra.mxu1 %v3346_v47 }
 0x181   :  { %1418 = vmatprep.subr.bf16.mxu0 %v3348_v48  ;;  %1459 = vmatprep.subr.bf16.mxu1 %v3351_v49 }
 0x182   :  { %v2643_v22 = vpop.eup %2642 }
 0x183   :  { %v2645_v14 = vpop.eup %2644 }
 0x184   :  { %v2647_v32 = vpop.eup %2646  ;;  %1419 = vmatpush1.bf16.msra.mxu0 %v3356_v50  ;;  %1460 = vmatpush1.bf16.msra.mxu1 %v3360_v51  ;;  %v1296_v18 = vmul.f32 %v2645_v14, %v2643_v22  ;;  %v3955_v22 = vld [vmem:[#allocation33_spill] sm:$0xff]  ;;  %v3956_v14 = vld [vmem:[#allocation34_spill] sm:$0xff] }
 0x185   :  { %v1295_v11 = vmul.f32 0.0, %v2647_v32  ;;  %1420 = vmatprep.subr.bf16.mxu0 %v3362_v52  ;;  %1461 = vmatprep.subr.bf16.mxu1 %v3365_v53  ;;  %v3957_v32 = vld [vmem:[#allocation35_spill] sm:$0xff] }
 0x187   :  { %v3594_v37 = vadd.f32 %v1296_v18, %v1295_v11  ;;  %v2649_v41 = vpop.eup %2648  ;;  %v3959_v11 = vld [vmem:[#allocation37_spill] sm:$0xff]  ;;  %v3960_v18 = vld [vmem:[#allocation38_spill] sm:$0xff] }
 0x188   :  { %1421 = vmatpush1.bf16.msra.mxu0 %v3368_v54  ;;  %1462 = vmatpush1.bf16.msra.mxu1 %v3372_v55 }
 0x189   :  { %2650 = vtanh.f32 %v3594_v37  ;;  %1422 = vmatprep.subr.bf16.mxu0 %v3374_v56  ;;  %1463 = vmatprep.subr.bf16.mxu1 %v3377_v57 }
 0x18c   :  { %1423 = vmatpush1.bf16.msra.mxu0 %v3380_v58  ;;  %1464 = vmatpush1.bf16.msra.mxu1 %v3384_v59 }
 0x18d   :  { %1424 = vmatprep.subr.bf16.mxu0 %v3386_v60  ;;  %1465 = vmatprep.subr.bf16.mxu1 %v3389_v61 }
 0x190   :  { %1425 = vmatpush1.bf16.msra.mxu0 %v3392_v62  ;;  %1466 = vmatpush1.bf16.msra.mxu1 %v3396_v63 }
 0x191   :  { %1426 = vmatprep.subr.bf16.mxu0 %v3398_v1  ;;  %1467 = vmatprep.subr.bf16.mxu1 %v3935_v30 }
 0x194   :  { %1427 = vmatpush1.bf16.msra.mxu0 %v3404_v3  ;;  %1468 = vmatpush1.bf16.msra.mxu1 %v3408_v4 }
 0x195   :  { %1428 = vmatprep.subr.bf16.mxu0 %v3410_v5  ;;  %1469 = vmatprep.subr.bf16.mxu1 %v3413_v6 }
 0x196   :  { %v2651_v33 = vpop.eup %2650 }
 0x197   :  { %v1299_v9 = vmul.f32 %v2651_v33, %v2649_v41  ;;  %v3961_v41 = vld [vmem:[#allocation39_spill] sm:$0xff]  ;;  %v3962_v33 = vld [vmem:[#allocation40_spill] sm:$0xff] }
 0x198   :  { %1429 = vmatpush1.bf16.msra.mxu0 %v3416_v7  ;;  %1470 = vmatpush1.bf16.msra.mxu1 %v3420_v0 }
 0x199   :  { %v1413_v36 = vpack.c.bf16 %v1299_v9, %v1299_v9  ;;  %1559 = vmatprep.subr.bf16.mxu0 %v3124_v8  ;;  %1600 = vmatprep.subr.bf16.mxu1 %v3936_v13  ;;  %v3943_v8 = vld [vmem:[#allocation21_spill] sm:$0xff]  ;;  %v3965_v13 = vld [vmem:[#allocation43_spill] sm:$0xff] }
 0x19a   :  { %v3963_v9 = vld [vmem:[#allocation41_spill] sm:$0xff] }
 0x19b   :  { %1447 = vmatmul.mubr.bf16.vlgmr.msra.gmra.mxu0 %v1413_v36  ;;  %1488 = vmatmul.mubr.bf16.vlgmr.msra.gmra.mxu1 %v1413_v36  ;;  %v3964_v36 = vld [vmem:[#allocation42_spill] sm:$0xff] }
 0x19c   :  { %1560 = vmatpush1.bf16.msra.mxu0 %v3937_v38  ;;  %1601 = vmatpush1.bf16.msra.mxu1 %v3938_v28  ;;  %v3966_v38 = vld [vmem:[#allocation44_spill] sm:$0xff]  ;;  %v3967_v28 = vld [vmem:[#allocation45_spill] sm:$0xff] }
 0x19d   :  { %1561 = vmatprep.subr.bf16.mxu0 %v3939_v31  ;;  %1602 = vmatprep.subr.bf16.mxu1 %v3940_v34  ;;  %v3968_v31 = vld [vmem:[#allocation46_spill] sm:$0xff] }
 0x19e   :  { %1591 = vmatprep.mubr.bf16.mxu0 %v3912_v2  ;;  %1632 = vmatprep.mubr.bf16.mxu1 %v3912_v2 }
 0x1a0   :  { %1562 = vmatpush1.bf16.msra.mxu0 %v3941_v16  ;;  %1603 = vmatpush1.bf16.msra.mxu1 %v3942_v12  ;;  %v3969_v12 = vld [vmem:[#allocation48_spill] sm:$0xff] }
 0x1a1   :  { %1563 = vmatprep.subr.bf16.mxu0 %v3943_v8  ;;  %1604 = vmatprep.subr.bf16.mxu1 %v3944_v27 }
 0x1a4   :  { %1564 = vmatpush1.bf16.msra.mxu0 %v3945_v26  ;;  %1605 = vmatpush1.bf16.msra.mxu1 %v3946_v24 }
 0x1a5   :  { %1565 = vmatprep.subr.bf16.mxu0 %v3947_v40  ;;  %1606 = vmatprep.subr.bf16.mxu1 %v3948_v17  ;;  %v3970_v40 = vld [vmem:[#allocation49_spill] sm:$0xff] }
 0x1a8   :  { %1566 = vmatpush1.bf16.msra.mxu0 %v3949_v23  ;;  %1607 = vmatpush1.bf16.msra.mxu1 %v3950_v35 }
 0x1a9   :  { %1567 = vmatprep.subr.bf16.mxu0 %v3951_v10  ;;  %1608 = vmatprep.subr.bf16.mxu1 %v3952_v19 }
 0x1ac   :  { %1568 = vmatpush1.bf16.msra.mxu0 %v3953_v39  ;;  %1609 = vmatpush1.bf16.msra.mxu1 %v3954_v21  ;;  %v3971_v21 = vld [vmem:[#allocation50_spill] sm:$0xff] }
 0x1ad   :  { %1569 = vmatprep.subr.bf16.mxu0 %v3955_v22  ;;  %1610 = vmatprep.subr.bf16.mxu1 %v3956_v14 }
 0x1b0   :  { %1570 = vmatpush1.bf16.msra.mxu0 %v3957_v32  ;;  %1611 = vmatpush1.bf16.msra.mxu1 %v3958_v20  ;;  %v3972_v32 = vld [vmem:[#allocation51_spill] sm:$0xff] }
 0x1b1   :  { %1571 = vmatprep.subr.bf16.mxu0 %v3959_v11  ;;  %1612 = vmatprep.subr.bf16.mxu1 %v3960_v18 }
 0x1b4   :  { %1572 = vmatpush1.bf16.msra.mxu0 %v3961_v41  ;;  %1613 = vmatpush1.bf16.msra.mxu1 %v3962_v33 }
 0x1b5   :  { %1573 = vmatprep.subr.bf16.mxu0 %v3963_v9  ;;  %1614 = vmatprep.subr.bf16.mxu1 %v3964_v36 }
 0x1b8   :  { %1574 = vmatpush1.bf16.msra.mxu0 %v3965_v13  ;;  %1615 = vmatpush1.bf16.msra.mxu1 %v3966_v38 }
 0x1b9   :  { %1656 = vmatprep.subr.bf16.mxu0 %v3967_v28  ;;  %1697 = vmatprep.subr.bf16.mxu1 %v3968_v31 }
 0x23b   :  { %v1348_v34 = vpop.f32.mrf.mxu0  ;;  %v1389_v16 = vpop.f32.mrf.mxu1 }
 0x23c   :  { %v1396_v8 = vadd.f32 %v1348_v34, %v3969_v12  ;;  %v1398_v22 = vadd.f32 %v1389_v16, %v3971_v21 }
 0x23d   :  { %v1350_v27 = vpop.f32.mrf.mxu0  ;;  %v1391_v26 = vpop.f32.mrf.mxu1 }
 0x23e   :  { %v2387_v24 = vmul.f32 -1.442695, %v1396_v8  ;;  %v1397_v17 = vadd.f32 %v1350_v27, %v3970_v40  ;;  %v2389_v14 = vmul.f32 -1.442695, %v1398_v22  ;;  %v1399_v20 = vadd.f32 %v1391_v26, %v3972_v32 }
 0x23f   :  { %v1352_v23 = vpop.f32.mrf.mxu0  ;;  %v1393_v35 = vpop.f32.mrf.mxu1 }
 0x240   :  { %2652 = vpow2.f32 %v2387_v24  ;;  %v2388_v10 = vmul.f32 -1.442695, %v1397_v17 }
 0x241   :  { %v1353_v19 = vpop.f32.mrf.mxu0  ;;  %v1394_v39 = vpop.f32.mrf.mxu1 }
 0x242   :  { %2654 = vpow2.f32 %v2388_v10 }
 0x243   :  { %2656 = vpow2.f32 %v2389_v14 }
 0x244   :  { %2658 = vtanh.f32 %v1399_v20 }
 0x24d   :  { %v2653_v11 = vpop.eup %2652 }
 0x24e   :  { %v1509_v18 = vadd.f32 1.0, %v2653_v11 }
 0x24f   :  { %v2655_v41 = vpop.eup %2654 }
 0x250   :  { %2660 = vrcp.f32 %v1509_v18  ;;  %v1510_v33 = vadd.f32 1.0, %v2655_v41  ;;  %v2657_v9 = vpop.eup %2656 }
 0x251   :  { %v2659_v38 = vpop.eup %2658  ;;  %v1511_v24 = vadd.f32 1.0, %v2657_v9 }
 0x252   :  { %2662 = vrcp.f32 %v1510_v33 }
 0x25b   :  { %v1448_v36 = vpop.f32.mrf.mxu0  ;;  %v1489_v13 = vpop.f32.mrf.mxu1 }
 0x25c   :  { %v1496_v28 = vadd.f32 %v1448_v36, %v3554_v29  ;;  %v3973_v29 = vld [vmem:[#allocation68_spill] sm:$0xff] }
 0x25d   :  { %v2661_v31 = vpop.eup %2660  ;;  %v1450_v34 = vpop.f32.mrf.mxu0  ;;  %v1498_v21 = vadd.f32 %v1489_v13, %v3973_v29 }
 0x25e   :  { %v1491_v16 = vpop.f32.mrf.mxu1  ;;  %v1520_v12 = vmul.f32 %v2661_v31, %v2659_v38  ;;  %v2390_v8 = vmul.f32 -1.442695, %v1496_v28  ;;  %v1497_v27 = vadd.f32 %v1450_v34, %v3557_v25  ;;  %v3974_v25 = vld [vmem:[#allocation69_spill] sm:$0xff]  ;;  %v2771_v31 = vld [vmem:[%s3833_s2 + $0x48] ss:$16 sps:$4 sm:$0xff]  }
 0x25f   :  { %v2663_v26 = vpop.eup %2662  ;;  %v1452_v40 = vpop.f32.mrf.mxu0  ;;  %v2392_v22 = vmul.f32 -1.442695, %v1498_v21  ;;  %v1499_v14 = vadd.f32 %v1491_v16, %v3974_v25  ;;  %v2770_v28 = vld [vmem:[%s3833_s2 + $0x40] ss:$16 sps:$4 sm:$0xff]   ;;  %v2772_v34 = vld [vmem:[%s3833_s2 + $0x24] ss:$16 sps:$4 sm:$0xff]  }
 0x260   :  { %v1493_v17 = vpop.f32.mrf.mxu1  ;;  %v1519_v23 = vmul.f32 %v2663_v26, %v3575_v15  ;;  %2664 = vpow2.f32 %v2390_v8  ;;  %v2391_v35 = vmul.f32 -1.442695, %v1497_v27  ;;  %v2773_v16 = vld [vmem:[%s3833_s2 + $0x2c] ss:$16 sps:$4 sm:$0xff]   ;;  %v2775_v8 = vld [vmem:[%s3833_s2 + $0x28] ss:$16 sps:$4 sm:$0xff]  }
 0x261   :  { %v1453_v10 = vpop.f32.mrf.mxu0  ;;  %v2776_v27 = vld [vmem:[%s3833_s2 + $0x4] ss:$16 sps:$4 sm:$0xff]   ;;  %v2777_v26 = vld [vmem:[%s3833_s2 + $0xc] ss:$16 sps:$4 sm:$0xff]   ;;  %v2779_v40 = vld [vmem:[%s3833_s2 + $0x8] ss:$16 sps:$4 sm:$0xff]  }
 0x262   :  { %v1494_v19 = vpop.f32.mrf.mxu1  ;;  %v3658_v39 = vadd.f32 %v1520_v12, %v1519_v23  ;;  %2666 = vpow2.f32 %v2391_v35  ;;  %v2774_v12 = vld [vmem:[%s3833_s2 + $0x20] ss:$16 sps:$4 sm:$0xff]   ;;  %v2780_v17 = vld [vmem:[#allocation3 + $0xe4] ss:$16 sps:$4 sm:$0xff]   ;;  %v2781_v23 = vld [vmem:[#allocation3 + $0xec] ss:$16 sps:$4 sm:$0xff]  }
 0x263   :  { %2668 = vrcp.f32 %v1511_v24  ;;  %v2778_v24 = vld [vmem:[%s3833_s2] ss:$16 sps:$4 sm:$0xff]   ;;  %v3975_v19 = vld [vmem:[#allocation52_spill] sm:$0xff] }
 0x264   :  { %2670 = vtanh.f32 %v3658_v39 }
 0x265   :  { %2672 = vpow2.f32 %v2392_v22 }
 0x266   :  { %2674 = vtanh.f32 %v1499_v14  ;;  %v3976_v14 = vld [vmem:[#allocation53_spill] sm:$0xff] }
 0x26d   :  { %v2665_v32 = vpop.eup %2664 }
 0x26e   :  { %v1533_v20 = vadd.f32 1.0, %v2665_v32 }
 0x26f   :  { %v2667_v11 = vpop.eup %2666 }
 0x270   :  { %v2669_v15 = vpop.eup %2668  ;;  %2676 = vrcp.f32 %v1533_v20  ;;  %v1534_v18 = vadd.f32 1.0, %v2667_v11 }
 0x271   :  { %v2671_v41 = vpop.eup %2670 }
 0x272   :  { %2678 = vrcp.f32 %v1534_v18  ;;  %v1523_v33 = vmul.f32 %v2671_v41, %v2669_v15  ;;  %v2673_v36 = vpop.eup %2672 }
 0x273   :  { %v2675_v13 = vpop.eup %2674 }
 0x274   :  { %v1558_v9 = vpack.c.bf16 %v1523_v33, %v1523_v33  ;;  %v3977_v33 = vld [vmem:[#allocation54_spill] sm:$0xff] }
 0x276   :  { %1592 = vmatmul.mubr.bf16.vlgmr.msra.gmra.mxu0 %v1558_v9  ;;  %1633 = vmatmul.mubr.bf16.vlgmr.msra.gmra.mxu1 %v1558_v9 }
 0x277   :  { %1657 = vmatpush1.bf16.msra.mxu0 %v3327_v42  ;;  %1698 = vmatpush1.bf16.msra.mxu1 %v3332_v43 }
 0x278   :  { %1658 = vmatprep.subr.bf16.mxu0 %v3334_v44  ;;  %1699 = vmatprep.subr.bf16.mxu1 %v3337_v45  ;;  %v1535_v44 = vadd.f32 1.0, %v2673_v36 }
 0x279   :  { %1688 = vmatprep.mubr.bf16.mxu0 %v3912_v2  ;;  %1729 = vmatprep.mubr.bf16.mxu1 %v3912_v2 }
 0x27a   :  { %2680 = vrcp.f32 %v1535_v44 }
 0x27b   :  { %1659 = vmatpush1.bf16.msra.mxu0 %v3342_v46  ;;  %1700 = vmatpush1.bf16.msra.mxu1 %v3346_v47 }
 0x27c   :  { %1660 = vmatprep.subr.bf16.mxu0 %v3348_v48  ;;  %1701 = vmatprep.subr.bf16.mxu1 %v3351_v49 }
 0x27d   :  { %v2677_v42 = vpop.eup %2676 }
 0x27e   :  { %v1544_v43 = vmul.f32 %v2677_v42, %v2675_v13  ;;  %v3978_v13 = vld [vmem:[#allocation55_spill] sm:$0xff] }
 0x27f   :  { %v2679_v38 = vpop.eup %2678  ;;  %1661 = vmatpush1.bf16.msra.mxu0 %v3356_v50  ;;  %1702 = vmatpush1.bf16.msra.mxu1 %v3360_v51  ;;  %v2748_v51 = vld [vmem:[%s3833_s2 + $0xe4] ss:$16 sps:$4 sm:$0xff]  }
 0x280   :  { %v1543_v45 = vmul.f32 %v2679_v38, %v3594_v37  ;;  %1662 = vmatprep.subr.bf16.mxu0 %v3362_v52  ;;  %1703 = vmatprep.subr.bf16.mxu1 %v3365_v53  ;;  %v2749_v52 = vld [vmem:[%s3833_s2 + $0xec] ss:$16 sps:$4 sm:$0xff]   ;;  %v2750_v53 = vld [vmem:[%s3833_s2 + $0xe0] ss:$16 sps:$4 sm:$0xff]   ;;  %v2768_v37 = vld [vmem:[%s3833_s2 + $0x44] ss:$16 sps:$4 sm:$0xff]  }
 0x282   :  { %v3678_v46 = vadd.f32 %v1544_v43, %v1543_v45 }
 0x283   :  { %1663 = vmatpush1.bf16.msra.mxu0 %v3368_v54  ;;  %1704 = vmatpush1.bf16.msra.mxu1 %v3372_v55  ;;  %v2752_v54 = vld [vmem:[%s3833_s2 + $0xc4] ss:$16 sps:$4 sm:$0xff]   ;;  %v2753_v55 = vld [vmem:[%s3833_s2 + $0xcc] ss:$16 sps:$4 sm:$0xff]  }
 0x284   :  { %2682 = vtanh.f32 %v3678_v46  ;;  %1664 = vmatprep.subr.bf16.mxu0 %v3374_v56  ;;  %1705 = vmatprep.subr.bf16.mxu1 %v3377_v57  ;;  %v2754_v56 = vld [vmem:[%s3833_s2 + $0xc0] ss:$16 sps:$4 sm:$0xff]   ;;  %v2755_v57 = vld [vmem:[%s3833_s2 + $0xc8] ss:$16 sps:$4 sm:$0xff]  }
 0x287   :  { %1665 = vmatpush1.bf16.msra.mxu0 %v3380_v58  ;;  %1706 = vmatpush1.bf16.msra.mxu1 %v3384_v59  ;;  %v2681_v47 = vpop.eup %2680  ;;  %v2756_v58 = vld [vmem:[%s3833_s2 + $0xa4] ss:$16 sps:$4 sm:$0xff]   ;;  %v2757_v59 = vld [vmem:[%s3833_s2 + $0xac] ss:$16 sps:$4 sm:$0xff]  }
 0x288   :  { %1666 = vmatprep.subr.bf16.mxu0 %v3386_v60  ;;  %1707 = vmatprep.subr.bf16.mxu1 %v3389_v61  ;;  %v2758_v60 = vld [vmem:[%s3833_s2 + $0xa0] ss:$16 sps:$4 sm:$0xff]   ;;  %v2759_v61 = vld [vmem:[%s3833_s2 + $0xa8] ss:$16 sps:$4 sm:$0xff]  }
 0x28b   :  { %1667 = vmatpush1.bf16.msra.mxu0 %v3392_v62  ;;  %1708 = vmatpush1.bf16.msra.mxu1 %v3396_v63  ;;  %v2760_v62 = vld [vmem:[%s3833_s2 + $0x84] ss:$16 sps:$4 sm:$0xff]   ;;  %v2761_v63 = vld [vmem:[%s3833_s2 + $0x8c] ss:$16 sps:$4 sm:$0xff]  }
 0x28c   :  { %1668 = vmatprep.subr.bf16.mxu0 %v3398_v1  ;;  %1709 = vmatprep.subr.bf16.mxu1 %v3935_v30  ;;  %v2762_v1 = vld [vmem:[%s3833_s2 + $0x80] ss:$16 sps:$4 sm:$0xff]   ;;  %v2769_v30 = vld [vmem:[%s3833_s2 + $0x4c] ss:$16 sps:$4 sm:$0xff]  }
 0x28f   :  { %1669 = vmatpush1.bf16.msra.mxu0 %v3404_v3  ;;  %1710 = vmatpush1.bf16.msra.mxu1 %v3408_v4  ;;  %v2763_v3 = vld [vmem:[%s3833_s2 + $0x88] ss:$16 sps:$4 sm:$0xff]   ;;  %v2764_v4 = vld [vmem:[%s3833_s2 + $0x64] ss:$16 sps:$4 sm:$0xff]  }
 0x290   :  { %1670 = vmatprep.subr.bf16.mxu0 %v3410_v5  ;;  %1711 = vmatprep.subr.bf16.mxu1 %v3413_v6  ;;  %v2765_v5 = vld [vmem:[%s3833_s2 + $0x6c] ss:$16 sps:$4 sm:$0xff]   ;;  %v2766_v6 = vld [vmem:[%s3833_s2 + $0x60] ss:$16 sps:$4 sm:$0xff]  }
 0x291   :  { %v2683_v48 = vpop.eup %2682 }
 0x292   :  { %v1547_v49 = vmul.f32 %v2683_v48, %v2681_v47 }
 0x293   :  { %1671 = vmatpush1.bf16.msra.mxu0 %v3416_v7  ;;  %1712 = vmatpush1.bf16.msra.mxu1 %v3420_v0  ;;  %v2751_v0 = vld [vmem:[%s3833_s2 + $0xe8] ss:$16 sps:$4 sm:$0xff]  }
 0x294   :  { %v1655_v50 = vpack.c.bf16 %v1547_v49, %v1547_v49  ;;  %1801 = vmatprep.subr.bf16.mxu0 %v2748_v51  ;;  %1842 = vmatprep.subr.bf16.mxu1 %v2749_v52  ;;  %v2767_v7 = vld [vmem:[%s3833_s2 + $0x68] ss:$16 sps:$4 sm:$0xff]  }
 0x295   :  { %v3979_v51 = vld [vmem:[#allocation64_spill] sm:$0xff] }
 0x296   :  { %1689 = vmatmul.mubr.bf16.vlgmr.msra.gmra.mxu0 %v1655_v50  ;;  %1730 = vmatmul.mubr.bf16.vlgmr.msra.gmra.mxu1 %v1655_v50 }
 0x297   :  { %1802 = vmatpush1.bf16.msra.mxu0 %v2750_v53  ;;  %1843 = vmatpush1.bf16.msra.mxu1 %v2751_v0 }
 0x298   :  { %1803 = vmatprep.subr.bf16.mxu0 %v2752_v54  ;;  %1844 = vmatprep.subr.bf16.mxu1 %v2753_v55 }
 0x299   :  { %1833 = vmatprep.mubr.bf16.mxu0 %v3912_v2  ;;  %1874 = vmatprep.mubr.bf16.mxu1 %v3912_v2 }
 0x29b   :  { %1804 = vmatpush1.bf16.msra.mxu0 %v2754_v56  ;;  %1845 = vmatpush1.bf16.msra.mxu1 %v2755_v57  ;;  %v3980_v57 = vld [vmem:[#allocation65_spill] sm:$0xff] }
 0x29c   :  { %1805 = vmatprep.subr.bf16.mxu0 %v2756_v58  ;;  %1846 = vmatprep.subr.bf16.mxu1 %v2757_v59 }
 0x29f   :  { %1806 = vmatpush1.bf16.msra.mxu0 %v2758_v60  ;;  %1847 = vmatpush1.bf16.msra.mxu1 %v2759_v61 }
 0x2a0   :  { %1807 = vmatprep.subr.bf16.mxu0 %v2760_v62  ;;  %1848 = vmatprep.subr.bf16.mxu1 %v2761_v63 }
 0x2a3   :  { %1808 = vmatpush1.bf16.msra.mxu0 %v2762_v1  ;;  %1849 = vmatpush1.bf16.msra.mxu1 %v2763_v3 }
 0x2a4   :  { %1809 = vmatprep.subr.bf16.mxu0 %v2764_v4  ;;  %1850 = vmatprep.subr.bf16.mxu1 %v2765_v5 }
 0x2a7   :  { %1810 = vmatpush1.bf16.msra.mxu0 %v2766_v6  ;;  %1851 = vmatpush1.bf16.msra.mxu1 %v2767_v7  ;;  %v3981_v6 = vld [vmem:[#allocation66_spill] sm:$0xff] }
 0x2a8   :  { %1811 = vmatprep.subr.bf16.mxu0 %v2768_v37  ;;  %1852 = vmatprep.subr.bf16.mxu1 %v2769_v30  ;;  %v3982_v30 = vld [vmem:[#allocation67_spill] sm:$0xff] }
 0x2ab   :  { %1812 = vmatpush1.bf16.msra.mxu0 %v2770_v28  ;;  %1853 = vmatpush1.bf16.msra.mxu1 %v2771_v31 }
 0x2ac   :  { %1813 = vmatprep.subr.bf16.mxu0 %v2772_v34  ;;  %1854 = vmatprep.subr.bf16.mxu1 %v2773_v16 }
 0x2af   :  { %1814 = vmatpush1.bf16.msra.mxu0 %v2774_v12  ;;  %1855 = vmatpush1.bf16.msra.mxu1 %v2775_v8 }
 0x2b0   :  { %1815 = vmatprep.subr.bf16.mxu0 %v2776_v27  ;;  %1856 = vmatprep.subr.bf16.mxu1 %v2777_v26 }
 0x2b3   :  { %1816 = vmatpush1.bf16.msra.mxu0 %v2778_v24  ;;  %1857 = vmatpush1.bf16.msra.mxu1 %v2779_v40  ;;  %v2782_v24 = vld [vmem:[#allocation3 + $0xe0] ss:$16 sps:$4 sm:$0xff]   ;;  %v2783_v40 = vld [vmem:[#allocation3 + $0xe8] ss:$16 sps:$4 sm:$0xff]  }
 0x2b4   :  { %1898 = vmatprep.subr.bf16.mxu0 %v2780_v17  ;;  %1939 = vmatprep.subr.bf16.mxu1 %v2781_v23  ;;  %v2784_v17 = vld [vmem:[#allocation3 + $0xc4] ss:$16 sps:$4 sm:$0xff]   ;;  %v2785_v23 = vld [vmem:[#allocation3 + $0xcc] ss:$16 sps:$4 sm:$0xff]  }
 0x336   :  { %v1593_v35 = vpop.f32.mrf.mxu0  ;;  %v1634_v10 = vpop.f32.mrf.mxu1 }
 0x337   :  { %v1641_v29 = vadd.f32 %v1593_v35, %v3975_v19  ;;  %v1643_v9 = vadd.f32 %v1634_v10, %v3977_v33  ;;  %v2786_v10 = vld [vmem:[#allocation3 + $0xc0] ss:$16 sps:$4 sm:$0xff]   ;;  %v2787_v19 = vld [vmem:[#allocation3 + $0xc8] ss:$16 sps:$4 sm:$0xff]  }
 0x338   :  { %v1595_v21 = vpop.f32.mrf.mxu0  ;;  %v1636_v22 = vpop.f32.mrf.mxu1 }
 0x339   :  { %v2393_v25 = vmul.f32 -1.442695, %v1641_v29  ;;  %v1642_v32 = vadd.f32 %v1595_v21, %v3976_v14  ;;  %v2395_v36 = vmul.f32 -1.442695, %v1643_v9  ;;  %v1644_v42 = vadd.f32 %v1636_v22, %v3978_v13  ;;  %v2788_v21 = vld [vmem:[#allocation3 + $0xa4] ss:$16 sps:$4 sm:$0xff]  }
 0x33a   :  { %v1597_v20 = vpop.f32.mrf.mxu0  ;;  %v1638_v11 = vpop.f32.mrf.mxu1  ;;  %v2789_v22 = vld [vmem:[#allocation3 + $0xac] ss:$16 sps:$4 sm:$0xff]   ;;  %v2794_v9 = vld [vmem:[#allocation3 + $0x80] ss:$16 sps:$4 sm:$0xff]   ;;  %v2796_v13 = vld [vmem:[#allocation3 + $0x64] ss:$16 sps:$4 sm:$0xff]  }
 0x33b   :  { %2684 = vpow2.f32 %v2393_v25  ;;  %v2394_v15 = vmul.f32 -1.442695, %v1642_v32  ;;  %v2790_v11 = vld [vmem:[#allocation3 + $0xa0] ss:$16 sps:$4 sm:$0xff]  }
 0x33c   :  { %v1598_v18 = vpop.f32.mrf.mxu0  ;;  %v1639_v41 = vpop.f32.mrf.mxu1 }
 0x33d   :  { %2686 = vpow2.f32 %v2394_v15  ;;  %v2791_v15 = vld [vmem:[#allocation3 + $0xa8] ss:$16 sps:$4 sm:$0xff]   ;;  %v2792_v18 = vld [vmem:[#allocation3 + $0x84] ss:$16 sps:$4 sm:$0xff]   ;;  %v2793_v41 = vld [vmem:[#allocation3 + $0x8c] ss:$16 sps:$4 sm:$0xff]  }
 0x33e   :  { %2688 = vpow2.f32 %v2395_v36  ;;  %v2795_v36 = vld [vmem:[#allocation3 + $0x88] ss:$16 sps:$4 sm:$0xff]  }
 0x33f   :  { %2690 = vtanh.f32 %v1644_v42  ;;  %v2797_v42 = vld [vmem:[#allocation3 + $0x6c] ss:$16 sps:$4 sm:$0xff]  }
 0x348   :  { %v2685_v43 = vpop.eup %2684 }
 0x349   :  { %v1751_v38 = vadd.f32 1.0, %v2685_v43  ;;  %v2798_v43 = vld [vmem:[#allocation3 + $0x60] ss:$16 sps:$4 sm:$0xff]  }
 0x34a   :  { %v2687_v44 = vpop.eup %2686 }
 0x34b   :  { %2692 = vrcp.f32 %v1751_v38  ;;  %v1752_v45 = vadd.f32 1.0, %v2687_v44  ;;  %v2689_v47 = vpop.eup %2688  ;;  %v2800_v38 = vld [vmem:[#allocation3 + $0x44] ss:$16 sps:$4 sm:$0xff]   ;;  %v2801_v44 = vld [vmem:[#allocation3 + $0x4c] ss:$16 sps:$4 sm:$0xff]  }
 0x34c   :  { %v2691_v50 = vpop.eup %2690  ;;  %v1753_v60 = vadd.f32 1.0, %v2689_v47  ;;  %v2803_v47 = vld [vmem:[#allocation3 + $0x48] ss:$16 sps:$4 sm:$0xff]  }
 0x34d   :  { %2694 = vrcp.f32 %v1752_v45  ;;  %v2802_v45 = vld [vmem:[#allocation3 + $0x40] ss:$16 sps:$4 sm:$0xff]  }
 0x356   :  { %v1690_v48 = vpop.f32.mrf.mxu0  ;;  %v1731_v49 = vpop.f32.mrf.mxu1 }
 0x357   :  { %v1738_v52 = vadd.f32 %v1690_v48, %v3979_v51  ;;  %v1740_v7 = vadd.f32 %v1731_v49, %v3981_v6  ;;  %v2804_v48 = vld [vmem:[#allocation3 + $0x24] ss:$16 sps:$4 sm:$0xff]   ;;  %v2805_v49 = vld [vmem:[#allocation3 + $0x2c] ss:$16 sps:$4 sm:$0xff]   ;;  %v2807_v51 = vld [vmem:[#allocation3 + $0x28] ss:$16 sps:$4 sm:$0xff]  }
 0x358   :  { %v2693_v53 = vpop.eup %2692  ;;  %v1692_v0 = vpop.f32.mrf.mxu0  ;;  %v2611_v6 = vld [vmem:[#allocation8] sm:$0xff]  }
 0x359   :  { %v1733_v54 = vpop.f32.mrf.mxu1  ;;  %v1762_v55 = vmul.f32 %v2693_v53, %v2691_v50  ;;  %v2396_v56 = vmul.f32 -1.442695, %v1738_v52  ;;  %v1739_v58 = vadd.f32 %v1692_v0, %v3980_v57  ;;  %v2398_v37 = vmul.f32 -1.442695, %v1740_v7  ;;  %v2806_v50 = vld [vmem:[#allocation3 + $0x20] ss:$16 sps:$4 sm:$0xff]  }
 0x35a   :  { %v2695_v59 = vpop.eup %2694  ;;  %v1694_v61 = vpop.f32.mrf.mxu0  ;;  %v1741_v28 = vadd.f32 %v1733_v54, %v3982_v30  ;;  %v2808_v53 = vld [vmem:[#allocation3 + $0x4] ss:$16 sps:$4 sm:$0xff]   ;;  %v2809_v0 = vld [vmem:[#allocation3 + $0xc] ss:$16 sps:$4 sm:$0xff]   ;;  %v2811_v57 = vld [vmem:[#allocation3 + $0x8] ss:$16 sps:$4 sm:$0xff]  }
 0x35b   :  { %v1735_v62 = vpop.f32.mrf.mxu1  ;;  %v1761_v63 = vmul.f32 %v2695_v59, %v3658_v39  ;;  %2696 = vpow2.f32 %v2396_v56  ;;  %v2397_v1 = vmul.f32 -1.442695, %v1739_v58  ;;  %v2810_v56 = vld [vmem:[#allocation3] ss:$16 sps:$4 sm:$0xff]   ;;  %v2605_v61 = vld [vmem:[#allocation8 + $0x30] sm:$0xff]  }
 0x35c   :  { %v1695_v3 = vpop.f32.mrf.mxu0  ;;  %v2604_v59 = vld [vmem:[#allocation8 + $0x38] sm:$0xff]   ;;  %v2606_v62 = vld [vmem:[#allocation8 + $0x28] sm:$0xff]  }
 0x35d   :  { %v1736_v4 = vpop.f32.mrf.mxu1  ;;  %v3804_v5 = vadd.f32 %v1762_v55, %v1761_v63  ;;  %2698 = vpow2.f32 %v2397_v1  ;;  %v2607_v63 = vld [vmem:[#allocation8 + $0x20] sm:$0xff]   ;;  %v2608_v1 = vld [vmem:[#allocation8 + $0x18] sm:$0xff]   ;;  %v2609_v3 = vld [vmem:[#allocation8 + $0x10] sm:$0xff]  }
 0x35e   :  { %2700 = vrcp.f32 %v1753_v60  ;;  %v2928_v60 = vmov 0.0   ;;  %v2610_v4 = vld [vmem:[#allocation8 + $0x8] sm:$0xff]   ;;  %v2612_v7 = vld [vmem:[#allocation10 + $0x38] sm:$0xff]  }
 0x35f   :  { %2702 = vtanh.f32 %v3804_v5  ;;  %v2614_v30 = vld [vmem:[#allocation10 + $0x28] sm:$0xff]  }
 0x360   :  { %2704 = vpow2.f32 %v2398_v37  ;;  %v2613_v37 = vld [vmem:[#allocation10 + $0x30] sm:$0xff]  }
 0x361   :  { %2706 = vtanh.f32 %v1741_v28  ;;  %v2615_v28 = vld [vmem:[#allocation10 + $0x20] sm:$0xff]  }
 0x368   :  { %v2697_v31 = vpop.eup %2696 }
 0x369   :  { %v1775_v34 = vadd.f32 1.0, %v2697_v31  ;;  %v2616_v31 = vld [vmem:[#allocation10 + $0x18] sm:$0xff]  }
 0x36a   :  { %v2699_v16 = vpop.eup %2698 }
 0x36b   :  { %v2701_v39 = vpop.eup %2700  ;;  %2708 = vrcp.f32 %v1775_v34  ;;  %v1776_v12 = vadd.f32 1.0, %v2699_v16  ;;  %v2617_v34 = vld [vmem:[#allocation10 + $0x10] sm:$0xff]   ;;  %v2618_v16 = vld [vmem:[#allocation10 + $0x8] sm:$0xff]  }
 0x36c   :  { %v2703_v8 = vpop.eup %2702 }
 0x36d   :  { %2710 = vrcp.f32 %v1776_v12  ;;  %v1765_v27 = vmul.f32 %v2703_v8, %v2701_v39  ;;  %v2705_v35 = vpop.eup %2704  ;;  %v2619_v39 = vld [vmem:[#allocation10] sm:$0xff]  }
 0x36e   :  { %v2707_v29 = vpop.eup %2706  ;;  %v1777_v20 = vadd.f32 1.0, %v2705_v35 }
 0x36f   :  { %v1800_v26 = vpack.c.bf16 %v1765_v27, %v1765_v27  ;;  %v3983_v27 = vld [vmem:[#allocation56_spill] sm:$0xff] }
 0x370   :  { %2712 = vrcp.f32 %v1777_v20  ;;  %v3986_v20 = vld [vmem:[#allocation59_spill] sm:$0xff] }
 0x371   :  { %1834 = vmatmul.mubr.bf16.vlgmr.msra.gmra.mxu0 %v1800_v26  ;;  %1875 = vmatmul.mubr.bf16.vlgmr.msra.gmra.mxu1 %v1800_v26 }
 0x372   :  { %1899 = vmatpush1.bf16.msra.mxu0 %v2782_v24  ;;  %1940 = vmatpush1.bf16.msra.mxu1 %v2783_v40 }
 0x373   :  { %1900 = vmatprep.subr.bf16.mxu0 %v2784_v17  ;;  %1941 = vmatprep.subr.bf16.mxu1 %v2785_v23  ;;  %v3984_v23 = vld [vmem:[#allocation57_spill] sm:$0xff] }
 0x374   :  { %1930 = vmatprep.mubr.bf16.mxu0 %v3912_v2  ;;  %1971 = vmatprep.mubr.bf16.mxu1 %v3912_v2 }
 0x376   :  { %1901 = vmatpush1.bf16.msra.mxu0 %v2786_v10  ;;  %1942 = vmatpush1.bf16.msra.mxu1 %v2787_v19 }
 0x377   :  { %1902 = vmatprep.subr.bf16.mxu0 %v2788_v21  ;;  %1943 = vmatprep.subr.bf16.mxu1 %v2789_v22 }
 0x378   :  { %v2709_v25 = vpop.eup %2708 }
 0x379   :  { %v1786_v14 = vmul.f32 %v2709_v25, %v2707_v29  ;;  %v3985_v25 = vld [vmem:[#allocation58_spill] sm:$0xff] }
 0x37a   :  { %v2711_v32 = vpop.eup %2710  ;;  %1903 = vmatpush1.bf16.msra.mxu0 %v2790_v11  ;;  %1944 = vmatpush1.bf16.msra.mxu1 %v2791_v15 }
 0x37b   :  { %v1785_v2 = vmul.f32 %v2711_v32, %v3678_v46  ;;  %1904 = vmatprep.subr.bf16.mxu0 %v2792_v18  ;;  %1945 = vmatprep.subr.bf16.mxu1 %v2793_v41  ;;  %v2799_v46 = vld [vmem:[#allocation3 + $0x68] ss:$16 sps:$4 sm:$0xff]  }
 0x37d   :  { %v3812_v33 = vadd.f32 %v1786_v14, %v1785_v2  ;;  %v2713_v52 = vpop.eup %2712 }
 0x37e   :  { %1905 = vmatpush1.bf16.msra.mxu0 %v2794_v9  ;;  %1946 = vmatpush1.bf16.msra.mxu1 %v2795_v36 }
 0x37f   :  { %2714 = vtanh.f32 %v3812_v33  ;;  %1906 = vmatprep.subr.bf16.mxu0 %v2796_v13  ;;  %1947 = vmatprep.subr.bf16.mxu1 %v2797_v42 }
 0x382   :  { %1907 = vmatpush1.bf16.msra.mxu0 %v2798_v43  ;;  %1948 = vmatpush1.bf16.msra.mxu1 %v2799_v46  ;;  %v3987_v43 = vld [vmem:[#allocation60_spill] sm:$0xff] }
 0x383   :  { %1908 = vmatprep.subr.bf16.mxu0 %v2800_v38  ;;  %1949 = vmatprep.subr.bf16.mxu1 %v2801_v44 }
 0x386   :  { %1909 = vmatpush1.bf16.msra.mxu0 %v2802_v45  ;;  %1950 = vmatpush1.bf16.msra.mxu1 %v2803_v47 }
 0x387   :  { %1910 = vmatprep.subr.bf16.mxu0 %v2804_v48  ;;  %1951 = vmatprep.subr.bf16.mxu1 %v2805_v49  ;;  %v3988_v49 = vld [vmem:[#allocation61_spill] sm:$0xff] }
 0x38a   :  { %1911 = vmatpush1.bf16.msra.mxu0 %v2806_v50  ;;  %1952 = vmatpush1.bf16.msra.mxu1 %v2807_v51 }
 0x38b   :  { %1912 = vmatprep.subr.bf16.mxu0 %v2808_v53  ;;  %1953 = vmatprep.subr.bf16.mxu1 %v2809_v0 }
 0x38c   :  { %v2715_v54 = vpop.eup %2714 }
 0x38d   :  { %v1789_v55 = vmul.f32 %v2715_v54, %v2713_v52 }
 0x38e   :  { %1913 = vmatpush1.bf16.msra.mxu0 %v2810_v56  ;;  %1954 = vmatpush1.bf16.msra.mxu1 %v2811_v57 }
 0x38f   :  { %v1897_v58 = vpack.c.bf16 %v1789_v55, %v1789_v55  ;;  %2476 = vmatprep.subr.bf16.mxu1 %v2928_v60  ;;  %2456 = vmatprep.subr.bf16.mxu0 %v2928_v60 }
 0x391   :  { %1931 = vmatmul.mubr.bf16.vlgmr.msra.gmra.mxu0 %v1897_v58  ;;  %1972 = vmatmul.mubr.bf16.vlgmr.msra.gmra.mxu1 %v1897_v58 }
 0x392   :  { %2477 = vmatpush3.bf16.msra.mxu1 %v2604_v59  ;;  %2492 = vmatprep.mubr.msk.bf16.mxu1 %vm2929_vm1, %v2928_v60  ;;  %v3989_v59 = vld [vmem:[#allocation62_spill] sm:$0xff] }
 0x393   :  { %2478 = vmatprep.subr.bf16.mxu1 %v2928_v60  ;;  %2472 = vmatprep.mubr.msk.bf16.mxu0 %vm2929_vm1, %v2928_v60 }
 0x394   :  { %2457 = vmatpush3.bf16.msra.mxu0 %v2612_v7 }
 0x395   :  { %2458 = vmatprep.subr.bf16.mxu0 %v2928_v60 }
 0x396   :  { %2479 = vmatpush3.bf16.msra.mxu1 %v2605_v61 }
 0x397   :  { %2480 = vmatprep.subr.bf16.mxu1 %v2928_v60 }
 0x398   :  { %2459 = vmatpush3.bf16.msra.mxu0 %v2613_v37 }
 0x399   :  { %2460 = vmatprep.subr.bf16.mxu0 %v2928_v60 }
 0x39a   :  { %2481 = vmatpush3.bf16.msra.mxu1 %v2606_v62  ;;  %v3990_v62 = vld [vmem:[#allocation63_spill] sm:$0xff] }
 0x39b   :  { %2482 = vmatprep.subr.bf16.mxu1 %v2928_v60 }
 0x39c   :  { %2461 = vmatpush3.bf16.msra.mxu0 %v2614_v30 }
 0x39d   :  { %2462 = vmatprep.subr.bf16.mxu0 %v2928_v60 }
 0x39e   :  { %2483 = vmatpush3.bf16.msra.mxu1 %v2607_v63 }
 0x39f   :  { %2484 = vmatprep.subr.bf16.mxu1 %v2928_v60 }
 0x3a0   :  { %2463 = vmatpush3.bf16.msra.mxu0 %v2615_v28 }
 0x3a1   :  { %2464 = vmatprep.subr.bf16.mxu0 %v2928_v60 }
 0x3a2   :  { %2485 = vmatpush3.bf16.msra.mxu1 %v2608_v1 }
 0x3a3   :  { %2486 = vmatprep.subr.bf16.mxu1 %v2928_v60 }
 0x3a4   :  { %2465 = vmatpush3.bf16.msra.mxu0 %v2616_v31 }
 0x3a5   :  { %2466 = vmatprep.subr.bf16.mxu0 %v2928_v60 }
 0x3a6   :  { %2487 = vmatpush3.bf16.msra.mxu1 %v2609_v3 }
 0x3a7   :  { %2488 = vmatprep.subr.bf16.mxu1 %v2928_v60 }
 0x3a8   :  { %2467 = vmatpush3.bf16.msra.mxu0 %v2617_v34 }
 0x3a9   :  { %2468 = vmatprep.subr.bf16.mxu0 %v2928_v60 }
 0x3aa   :  { %2489 = vmatpush3.bf16.msra.mxu1 %v2610_v4 }
 0x3ab   :  { %2490 = vmatprep.subr.bf16.mxu1 %v2928_v60 }
 0x3ac   :  { %2469 = vmatpush3.bf16.msra.mxu0 %v2618_v16 }
 0x3ad   :  { %2470 = vmatprep.subr.bf16.mxu0 %v2928_v60 }
 0x3ae   :  { %2491 = vmatpush3.bf16.msra.mxu1 %v2611_v6 }
 0x3b0   :  { %2471 = vmatpush3.bf16.msra.mxu0 %v2619_v39 }
 0x431   :  { %v1835_v12 = vpop.f32.mrf.mxu0  ;;  %v1876_v8 = vpop.f32.mrf.mxu1 }
 0x432   :  { %v1883_v26 = vadd.f32 %v1835_v12, %v3983_v27  ;;  %v1885_v14 = vadd.f32 %v1876_v8, %v3985_v25 }
 0x433   :  { %v1837_v24 = vpop.f32.mrf.mxu0  ;;  %v1878_v40 = vpop.f32.mrf.mxu1 }
 0x434   :  { %v2399_v17 = vmul.f32 -1.442695, %v1883_v26  ;;  %v1884_v35 = vadd.f32 %v1837_v24, %v3984_v23  ;;  %v2401_v32 = vmul.f32 -1.442695, %v1885_v14  ;;  %v1886_v11 = vadd.f32 %v1878_v40, %v3986_v20 }
 0x435   :  { %v1839_v10 = vpop.f32.mrf.mxu0  ;;  %v1880_v19 = vpop.f32.mrf.mxu1 }
 0x436   :  { %2716 = vpow2.f32 %v2399_v17  ;;  %v2400_v29 = vmul.f32 -1.442695, %v1884_v35 }
 0x437   :  { %v1840_v21 = vpop.f32.mrf.mxu0  ;;  %v1881_v22 = vpop.f32.mrf.mxu1 }
 0x438   :  { %2718 = vpow2.f32 %v2400_v29  ;;  %v2421_v21 = vld [vmem:[%s3839_s8] ss:$0 sm:$0xff] }
 0x439   :  { %2720 = vpow2.f32 %v2401_v32 }
 0x43a   :  { %2722 = vtanh.f32 %v1886_v11 }
 0x443   :  { %v2717_v15 = vpop.eup %2716 }
 0x444   :  { %v1993_v2 = vadd.f32 1.0, %v2717_v15 }
 0x445   :  { %v2719_v18 = vpop.eup %2718 }
 0x446   :  { %2724 = vrcp.f32 %v1993_v2  ;;  %v1994_v41 = vadd.f32 1.0, %v2719_v18  ;;  %v2721_v9 = vpop.eup %2720 }
 0x447   :  { %v2723_v42 = vpop.eup %2722  ;;  %v1995_v52 = vadd.f32 1.0, %v2721_v9 }
 0x448   :  { %2726 = vrcp.f32 %v1994_v41 }
 0x451   :  { %v1932_v36 = vpop.f32.mrf.mxu0  ;;  %v1973_v13 = vpop.f32.mrf.mxu1 }
 0x452   :  { %v1980_v46 = vadd.f32 %v1932_v36, %v3987_v43  ;;  %v1982_v60 = vadd.f32 %v1973_v13, %v3989_v59 }
 0x453   :  { %v2725_v38 = vpop.eup %2724  ;;  %v1934_v44 = vpop.f32.mrf.mxu0 }
 0x454   :  { %v1975_v45 = vpop.f32.mrf.mxu1  ;;  %v2004_v47 = vmul.f32 %v2725_v38, %v2723_v42  ;;  %v2402_v48 = vmul.f32 -1.442695, %v1980_v46  ;;  %v1981_v50 = vadd.f32 %v1934_v44, %v3988_v49  ;;  %v2404_v61 = vmul.f32 -1.442695, %v1982_v60 }
 0x455   :  { %v2727_v51 = vpop.eup %2726  ;;  %v1936_v53 = vpop.f32.mrf.mxu0  ;;  %v1983_v63 = vadd.f32 %v1975_v45, %v3990_v62 }
 0x456   :  { %v1977_v0 = vpop.f32.mrf.mxu1  ;;  %v2003_v54 = vmul.f32 %v2727_v51, %v3804_v5  ;;  %2728 = vpow2.f32 %v2402_v48  ;;  %v2403_v55 = vmul.f32 -1.442695, %v1981_v50 }
 0x457   :  { %v1937_v56 = vpop.f32.mrf.mxu0 }
 0x458   :  { %v1978_v57 = vpop.f32.mrf.mxu1  ;;  %v2005_v58 = vadd.f32 %v2004_v47, %v2003_v54  ;;  %2730 = vpow2.f32 %v2403_v55 }
 0x459   :  { %2732 = vrcp.f32 %v1995_v52 }
 0x45a   :  { %2734 = vtanh.f32 %v2005_v58 }
 0x45b   :  { %2736 = vpow2.f32 %v2404_v61 }
 0x45c   :  { %2738 = vtanh.f32 %v1983_v63 }
 0x463   :  { %v2729_v1 = vpop.eup %2728 }
 0x464   :  { %v2017_v3 = vadd.f32 1.0, %v2729_v1 }
 0x465   :  { %v2731_v4 = vpop.eup %2730 }
 0x466   :  { %v2733_v6 = vpop.eup %2732  ;;  %2740 = vrcp.f32 %v2017_v3  ;;  %v2018_v5 = vadd.f32 1.0, %v2731_v4 }
 0x467   :  { %v2735_v7 = vpop.eup %2734 }
 0x468   :  { %2742 = vrcp.f32 %v2018_v5  ;;  %v2007_v37 = vmul.f32 %v2735_v7, %v2733_v6  ;;  %v2737_v28 = vpop.eup %2736 }
 0x469   :  { %v2739_v31 = vpop.eup %2738  ;;  %v2019_v12 = vadd.f32 1.0, %v2737_v28 }
 0x46a   :  { %v2032_v30 = vpack.c.bf16 %v2007_v37, %v2007_v37 }
 0x46b   :  { %2744 = vrcp.f32 %v2019_v12 }
 0x46c   :  { %2493 = vmatmul.mubr.bf16.vlgmr.msra.gmra.mxu1 %v2032_v30 }
 0x473   :  { %v2741_v34 = vpop.eup %2740 }
 0x474   :  { %v2028_v16 = vmul.f32 %v2741_v34, %v2739_v31 }
 0x475   :  { %v2743_v39 = vpop.eup %2742 }
 0x476   :  { %v2027_v8 = vmul.f32 %v2743_v39, %v3812_v33 }
 0x478   :  { %v2029_v27 = vadd.f32 %v2028_v16, %v2027_v8  ;;  %v2745_v26 = vpop.eup %2744 }
 0x47a   :  { %2746 = vtanh.f32 %v2029_v27 }
 0x487   :  { %v2747_v24 = vpop.eup %2746 }
 0x488   :  { %v2031_v40 = vmul.f32 %v2747_v24, %v2745_v26 }
 0x48a   :  { %v2049_v17 = vpack.c.bf16 %v2031_v40, %v2031_v40 }
 0x48c   :  { %2473 = vmatmul.mubr.bf16.vlgmr.msra.gmra.mxu0 %v2049_v17 }
 0x52c   :  { %v2236_v23 = vpop.f32.mrf.mxu1 }
 0x52e   :  { %v2494_v35 = vpop.f32.mrf.mxu1 }
 0x530   :  { %v2239_v10 = vpop.f32.mrf.mxu1 }
 0x532   :  { %v2495_v19 = vpop.f32.mrf.mxu1 }
 0x54c   :  { %v2148_v29 = vpop.f32.mrf.mxu0 }
 0x54d   :  { %v2237_v22 = vadd.f32 %v2236_v23, %v2148_v29 }
 0x54e   :  { %v2474_v25 = vpop.f32.mrf.mxu0 }
 0x54f   :  { %v2249_v33 = vadd.f32 %v2421_v21, %v2237_v22 }
 0x550   :  { %v2151_v14 = vpop.f32.mrf.mxu0 }
 0x551   :  { %2250 = vst [vmem:[%s3840_s9] sm:$0xff] %v2249_v33 }
 0x552   :  { %v2475_v32 = vpop.f32.mrf.mxu0 }
 0x553   :  { %2255 = vsyncpa [#allocation4], 1 }
 0x554   :  { %2256 = vsyncpa [#allocation6], 1 }
 0x555   :  { %2257 = vsyncpa [#allocation9], 1 }

</bundles_post_ra>
